<compile_context>
chip_gen: v7x
topology: tpu7x:2x2x1
jax: 0.10.0
libtpu: 0.0.40
codegen_flags: <defaults>
</compile_context>

<pallas_src>
import functools

import jax
import jax.numpy as jnp
from jax.experimental import pallas as pl
from jax.experimental.pallas import tpu as pltpu

C_IN = 7          # conv1 input channels
C_HID = 80        # hidden channels
K = 3             # kernel size
PAD = 2           # conv padding
CP = 128          # lane-padded channel width
C1_OFF = 6        # per-sample data offset of the layer-1 input inside a block
TAIL = 8          # extra zero rows per block so shifted tap loads stay in-bounds


def _round_up(x, m):
    return -(-x // m) * m


def _prefer_two_steps():
    """>=2 balanced parallel grid steps only pay off on 2-TensorCore chips (v7x)."""
    try:
        kind = jax.devices()[0].device_kind.lower()
    except Exception:
        return False
    return "7" in kind


def _choose_tiling(batch, s, *, max_rows=2048):
    """Pick bb (samples per grid step, multiple of 8 for dense output stores)
    and b_pad (batch zero-padded to a multiple of bb)."""
    bb_cap = max(8, (max_rows // s) // 8 * 8)
    b8 = _round_up(batch, 8)
    if b8 <= bb_cap:                      # whole batch fits in one fat step
        bb = b8
        if _prefer_two_steps() and b8 >= 16:
            bb = _round_up(b8 // 2, 8)    # two balanced steps for the 2 TCs
    else:
        bb = bb_cap
    b_pad = _round_up(b8, bb)
    return bb, b_pad


def _encoder_kernel(x_ref, w1_ref, w2_ref, w3_ref, b_ref, m1_ref, m2_ref,
                    pool_ref, out_ref, h1_scr, h2_scr, *, rows, tail, mm_dtype):
    """One grid step processes bb samples stacked along the sublane axis.

    x_ref    : (rows+TAIL, CP)  layer-1 input, 7 channels in the low lanes
    wN_ref   : (K, CP, CP)      per-tap conv weights (zero padded)
    b_ref    : (8, CP)          rows 0..2 hold the three zero-padded biases
    mN_ref   : (rows, 1)        1.0 on rows holding layer-N's valid conv output
    pool_ref : (bb, rows)       block-diagonal mean-pool matrix (1/l_pool)
    out_ref  : (bb, CP)         per-sample mean-pooled features
    hN_scr   : (rows+TAIL, CP)  persistent VMEM activation scratch
    """
    # Zero the scratch tails (read by the k>0 tap loads for the last -- masked
    # -- rows of the block).  Done every step: trivially cheap and megacore-safe.
    zero_tail = jnp.zeros((tail, CP), mm_dtype)
    h1_scr[rows:rows + tail, :] = zero_tail
    h2_scr[rows:rows + tail, :] = zero_tail

    def conv(src_ref, w_ref):
        # One conv layer = K accumulating MXU dots fed by statically shifted
        # ref loads (no value-level im2col / concat copies).
        acc = jnp.dot(src_ref[pl.ds(0, rows), :], w_ref[0],
                      preferred_element_type=jnp.float32)
        for k in range(1, K):
            acc = acc + jnp.dot(src_ref[pl.ds(k, rows), :], w_ref[k],
                                preferred_element_type=jnp.float32)
        return acc                                     # (rows, CP) f32

    # layer 1: Conv1d(7->80, pad=2) + ReLU; mask zeroes pad / inter-sample rows
    h1 = jnp.maximum(conv(x_ref, w1_ref) + b_ref[0:1, :], 0.0) * m1_ref[...]
    h1_scr[pl.ds(0, rows), :] = h1.astype(mm_dtype)

    # layer 2: Conv1d(80->80, pad=2) + ReLU
    h2 = jnp.maximum(conv(h1_scr, w2_ref) + b_ref[1:2, :], 0.0) * m2_ref[...]
    h2_scr[pl.ds(0, rows), :] = h2.astype(mm_dtype)

    # layer 3: Conv1d(80->80, pad=2) + ReLU (its row mask lives in the pool matrix)
    h3 = jnp.maximum(conv(h2_scr, w3_ref) + b_ref[2:3, :], 0.0)

    # Fused layer-3 mask + AdaptiveAvgPool1d(1): block-diagonal (bb, rows)
    # matrix with 1/l_pool on each sample's valid rows -> per-sample channel
    # means, computed on the MXU, written as a dense (bb, 128) block.
    out_ref[...] = jnp.dot(pool_ref[...], h3, preferred_element_type=jnp.float32)


def cnn1d_encoder(x_ncl, params, *, mm_dtype=jnp.bfloat16, max_rows=2048):
    """x_ncl: (B, 7, L) float32 (PyTorch NCL). Returns (B//6, 6, 80) float32.

    mm_dtype=bfloat16 uses bf16 MXU operands with f32 accumulation (loose
    tolerance); mm_dtype=float32 matches the PyTorch reference tightly.
    """
    w1, b1, w2, b2, w3, b3 = params     # PyTorch layout: W (Cout, Cin, K), b (Cout,)
    B, c_in, L = x_ncl.shape
    assert c_in == C_IN and B % 6 == 0
    node_number = B // 6

    l_pool = L + 3 * (2 * PAD - (K - 1))            # length after the 3 convs (L + 6)
    s = _round_up(L + C1_OFF + (K - 1), 8)          # per-sample rows inside a block
    # Cross-sample isolation: the shifted tap reads of a sample's last valid
    # output row must stay inside its own s rows.
    assert s - (L + C1_OFF) >= K - 1

    bb, b_pad = _choose_tiling(B, s, max_rows=max_rows)
    rows = bb * s
    num_steps = b_pad // bb

    # ---- layer-1 input: (num_steps*(rows+TAIL), 128), channels in lanes [0,7)
    x_lc = jnp.transpose(x_ncl, (0, 2, 1)).astype(jnp.float32)          # (B, L, 7)
    x_lc = jnp.pad(x_lc, ((0, b_pad - B), (0, 0), (0, 0)))              # dummy samples
    xb = jnp.pad(x_lc, ((0, 0), (C1_OFF, s - C1_OFF - L), (0, CP - C_IN)))
    xb = xb.reshape(num_steps, rows, CP)
    xb = jnp.pad(xb, ((0, 0), (0, TAIL), (0, 0)))                       # per-step tail
    x_in = xb.reshape(num_steps * (rows + TAIL), CP).astype(mm_dtype)

    # ---- per-tap conv weights (K, 128, 128); biases stacked into (8, 128) ----
    def prep_w(w, cin):
        wk = jnp.transpose(w.astype(jnp.float32), (2, 1, 0))            # (K, cin, 80)
        wk = jnp.pad(wk, ((0, 0), (0, CP - cin), (0, CP - C_HID)))
        return wk.astype(mm_dtype)

    w1p, w2p, w3p = prep_w(w1, C_IN), prep_w(w2, C_HID), prep_w(w3, C_HID)

    bias = jnp.zeros((8, CP), jnp.float32)
    for i, b in enumerate((b1, b2, b3)):
        bias = bias.at[i, :C_HID].set(b.astype(jnp.float32))

    # ---- row-validity masks for layers 1/2 (layer 3's lives in the pool matrix)
    j = jnp.arange(s)
    hi = j < (L + C1_OFF)
    m1 = jnp.tile(((j >= C1_OFF - 2) & hi).astype(jnp.float32), bb).reshape(rows, 1)
    m2 = jnp.tile(((j >= C1_OFF - 4) & hi).astype(jnp.float32), bb).reshape(rows, 1)

    # ---- block-diagonal pooling matrix: layer-3 mask + AdaptiveAvgPool1d(1) ---
    r_idx = jnp.arange(rows)
    pool = ((r_idx[None, :] // s == jnp.arange(bb)[:, None])
            & ((r_idx % s)[None, :] < l_pool)).astype(jnp.float32) / l_pool

    itemsize = jnp.dtype(mm_dtype).itemsize
    cost = pl.CostEstimate(
        flops=int(num_steps * (2 * rows * CP * CP * 3 * K + 2 * bb * rows * CP)),
        transcendentals=0,
        bytes_accessed=int(num_steps * (rows + TAIL) * CP * itemsize
                           + 3 * K * CP * CP * itemsize + 8 * CP * 4
                           + 2 * rows * 4 + bb * rows * 4 + b_pad * CP * 4))

    kernel = functools.partial(_encoder_kernel, rows=rows, tail=TAIL,
                               mm_dtype=mm_dtype)

    out = pl.pallas_call(
        kernel,
        out_shape=jax.ShapeDtypeStruct((b_pad, CP), jnp.float32),
        grid_spec=pltpu.PrefetchScalarGridSpec(
            num_scalar_prefetch=0,
            grid=(num_steps,),
            in_specs=[
                pl.BlockSpec((rows + TAIL, CP), lambda b: (b, 0)),   # layer-1 input
                pl.BlockSpec((K, CP, CP), lambda b: (0, 0, 0)),      # w1 taps
                pl.BlockSpec((K, CP, CP), lambda b: (0, 0, 0)),      # w2 taps
                pl.BlockSpec((K, CP, CP), lambda b: (0, 0, 0)),      # w3 taps
                pl.BlockSpec((8, CP), lambda b: (0, 0)),             # biases
                pl.BlockSpec((rows, 1), lambda b: (0, 0)),           # mask layer 1
                pl.BlockSpec((rows, 1), lambda b: (0, 0)),           # mask layer 2
                pl.BlockSpec((bb, rows), lambda b: (0, 0)),          # pool matrix
            ],
            out_specs=pl.BlockSpec((bb, CP), lambda b: (b, 0)),
            scratch_shapes=[pltpu.VMEM((rows + TAIL, CP), mm_dtype),
                            pltpu.VMEM((rows + TAIL, CP), mm_dtype)],
        ),
        compiler_params=pltpu.CompilerParams(
            dimension_semantics=("parallel",),
            vmem_limit_bytes=48 * 1024 * 1024),
        cost_estimate=cost,
    )(x_in, w1p, w2p, w3p, bias, m1, m2, pool)

    return out[:B, :C_HID].reshape(node_number, 6, C_HID)


def ref_forward(x_ncl, params):
    """Plain-JAX reference of the PyTorch forward (NCL layout throughout)."""
    w1, b1, w2, b2, w3, b3 = params

    def conv1d(x, w, b):
        xp = jnp.pad(x, ((0, 0), (0, 0), (PAD, PAD)))
        l_out = x.shape[-1] + 2 * PAD - K + 1
        out = jnp.zeros((x.shape[0], w.shape[0], l_out), jnp.float32)
        for k in range(K):
            out = out + jnp.einsum('bcl,oc->bol', xp[:, :, k:k + l_out], w[:, :, k])
        return out + b[None, :, None]

    h = jax.nn.relu(conv1d(x_ncl, w1, b1))
    h = jax.nn.relu(conv1d(h, w2, b2))
    h = jax.nn.relu(conv1d(h, w3, b3))
    pooled = jnp.mean(h, axis=-1)                    # AdaptiveAvgPool1d(1)
    return pooled.reshape(x_ncl.shape[0] // 6, 6, C_HID)


def init_params(key):
    """Deterministic synthetic weights with PyTorch Conv1d shapes."""
    ks = jax.random.split(key, 6)
    w1 = 0.2 * jax.random.normal(ks[0], (C_HID, C_IN, K), jnp.float32)
    b1 = 0.1 * jax.random.normal(ks[1], (C_HID,), jnp.float32)
    w2 = 0.1 * jax.random.normal(ks[2], (C_HID, C_HID, K), jnp.float32)
    b2 = 0.1 * jax.random.normal(ks[3], (C_HID,), jnp.float32)
    w3 = 0.1 * jax.random.normal(ks[4], (C_HID, C_HID, K), jnp.float32)
    b3 = 0.1 * jax.random.normal(ks[5], (C_HID,), jnp.float32)
    return (w1, b1, w2, b2, w3, b3)


if __name__ == "__main__":
    key = jax.random.PRNGKey(0)
    k_x, k_p = jax.random.split(key)

    node_number = 2
    B = 6 * node_number     # batch = 12 (must be divisible by 6, as in forward)
    L = 16                  # sequence length
    x = jax.random.normal(k_x, (B, C_IN, L), jnp.float32)   # PyTorch NCL input
    params = init_params(k_p)

    ref = ref_forward(x, params)

    # f32 matmul operands: tight check of the forward semantics.
    out_f32 = jax.block_until_ready(cnn1d_encoder(x, params, mm_dtype=jnp.float32))
    assert out_f32.shape == (node_number, 6, C_HID), out_f32.shape
    assert jnp.allclose(out_f32, ref, rtol=1e-3, atol=1e-3), \
        f"f32 max abs err {jnp.max(jnp.abs(out_f32 - ref))}"

    # bf16 matmul operands (MXU-native on v6e/v7x), f32 accumulation: loose check.
    out_bf16 = jax.block_until_ready(cnn1d_encoder(x, params, mm_dtype=jnp.bfloat16))
    assert out_bf16.shape == (node_number, 6, C_HID), out_bf16.shape
    assert jnp.allclose(out_bf16, ref, rtol=5e-2, atol=5e-2), \
        f"bf16 max abs err {jnp.max(jnp.abs(out_bf16 - ref))}"

    print("KERNEL_OK")
</pallas_src>

<mosaic_0001>
module attributes {stable_mosaic.version = 11 : i64} {
  func.func @_encoder_kernel(%arg0: i32, %arg1: memref<392x128xf32, #tpu.memory_space<vmem>>, %arg2: memref<3x128x128xf32, #tpu.memory_space<vmem>>, %arg3: memref<3x128x128xf32, #tpu.memory_space<vmem>>, %arg4: memref<3x128x128xf32, #tpu.memory_space<vmem>>, %arg5: memref<8x128xf32, #tpu.memory_space<vmem>>, %arg6: memref<384x1xf32, #tpu.memory_space<vmem>>, %arg7: memref<384x1xf32, #tpu.memory_space<vmem>>, %arg8: memref<16x384xf32, #tpu.memory_space<vmem>>, %arg9: memref<16x128xf32, #tpu.memory_space<vmem>>, %arg10: memref<392x128xf32, #tpu.memory_space<vmem>>, %arg11: memref<392x128xf32, #tpu.memory_space<vmem>>) attributes {dimension_semantics = [#tpu.dimension_semantics<parallel>], iteration_bounds = array<i64: 1>, scalar_prefetch = 0 : i64, scratch_operands = 2 : i64, tpu.core_type = #tpu.core_type<tc>, window_params = [{transform_indices = @transform_0, window_bounds = array<i64: 392, 128>}, {pipeline_mode = #tpu.pipeline_mode<synchronous>, transform_indices = @transform_1, window_bounds = array<i64: 3, 128, 128>}, {pipeline_mode = #tpu.pipeline_mode<synchronous>, transform_indices = @transform_2, window_bounds = array<i64: 3, 128, 128>}, {pipeline_mode = #tpu.pipeline_mode<synchronous>, transform_indices = @transform_3, window_bounds = array<i64: 3, 128, 128>}, {pipeline_mode = #tpu.pipeline_mode<synchronous>, transform_indices = @transform_4, window_bounds = array<i64: 8, 128>}, {pipeline_mode = #tpu.pipeline_mode<synchronous>, transform_indices = @transform_5, window_bounds = array<i64: 384, 1>}, {pipeline_mode = #tpu.pipeline_mode<synchronous>, transform_indices = @transform_6, window_bounds = array<i64: 384, 1>}, {pipeline_mode = #tpu.pipeline_mode<synchronous>, transform_indices = @transform_7, window_bounds = array<i64: 16, 384>}, {transform_indices = @transform_8, window_bounds = array<i64: 16, 128>}]} {
    %cst = arith.constant 0.000000e+00 : f32
    %0 = vector.broadcast %cst : f32 to vector<8x128xf32>
    %c384 = arith.constant 384 : index
    %c0 = arith.constant 0 : index
    %1 = vector.load %arg10[%c384, %c0] : memref<392x128xf32, #tpu.memory_space<vmem>>, vector<8x128xf32>
    tpu.vector_store %arg10[%c384, %c0], %0 {strides = array<i32>} : memref<392x128xf32, #tpu.memory_space<vmem>>, vector<8x128xf32>,
    %c384_0 = arith.constant 384 : index
    %c0_1 = arith.constant 0 : index
    %2 = vector.load %arg11[%c384_0, %c0_1] : memref<392x128xf32, #tpu.memory_space<vmem>>, vector<8x128xf32>
    tpu.vector_store %arg11[%c384_0, %c0_1], %0 {strides = array<i32>} : memref<392x128xf32, #tpu.memory_space<vmem>>, vector<8x128xf32>,
    %c0_2 = arith.constant 0 : index
    %c0_3 = arith.constant 0 : index
    %3 = vector.load %arg1[%c0_2, %c0_3] : memref<392x128xf32, #tpu.memory_space<vmem>>, vector<384x128xf32>
    %c0_4 = arith.constant 0 : index
    %c0_5 = arith.constant 0 : index
    %c0_6 = arith.constant 0 : index
    %4 = vector.load %arg2[%c0_4, %c0_5, %c0_6] : memref<3x128x128xf32, #tpu.memory_space<vmem>>, vector<1x128x128xf32>
    %5 = vector.shape_cast %4 : vector<1x128x128xf32> to vector<128x128xf32>
    %cst_7 = arith.constant dense<0.000000e+00> : vector<384x128xf32>
    %6 = tpu.matmul %3, %5, %cst_7 {dimension_numbers = #tpu.dot_dimension_numbers<[1], [0], [0], [1], [0, 0, 1, 1], [], []>} : vector<384x128xf32>, vector<128x128xf32>, vector<384x128xf32> -> vector<384x128xf32>
    %c1 = arith.constant 1 : index
    %c0_8 = arith.constant 0 : index
    %7 = vector.load %arg1[%c1, %c0_8] : memref<392x128xf32, #tpu.memory_space<vmem>>, vector<384x128xf32>
    %c1_9 = arith.constant 1 : index
    %c0_10 = arith.constant 0 : index
    %c0_11 = arith.constant 0 : index
    %8 = vector.load %arg2[%c1_9, %c0_10, %c0_11] : memref<3x128x128xf32, #tpu.memory_space<vmem>>, vector<1x128x128xf32>
    %9 = vector.shape_cast %8 : vector<1x128x128xf32> to vector<128x128xf32>
    %cst_12 = arith.constant dense<0.000000e+00> : vector<384x128xf32>
    %10 = tpu.matmul %7, %9, %cst_12 {dimension_numbers = #tpu.dot_dimension_numbers<[1], [0], [0], [1], [0, 0, 1, 1], [], []>} : vector<384x128xf32>, vector<128x128xf32>, vector<384x128xf32> -> vector<384x128xf32>
    %11 = arith.addf %6, %10 : vector<384x128xf32>
    %c2 = arith.constant 2 : index
    %c0_13 = arith.constant 0 : index
    %12 = vector.load %arg1[%c2, %c0_13] : memref<392x128xf32, #tpu.memory_space<vmem>>, vector<384x128xf32>
    %c2_14 = arith.constant 2 : index
    %c0_15 = arith.constant 0 : index
    %c0_16 = arith.constant 0 : index
    %13 = vector.load %arg2[%c2_14, %c0_15, %c0_16] : memref<3x128x128xf32, #tpu.memory_space<vmem>>, vector<1x128x128xf32>
    %14 = vector.shape_cast %13 : vector<1x128x128xf32> to vector<128x128xf32>
    %cst_17 = arith.constant dense<0.000000e+00> : vector<384x128xf32>
    %15 = tpu.matmul %12, %14, %cst_17 {dimension_numbers = #tpu.dot_dimension_numbers<[1], [0], [0], [1], [0, 0, 1, 1], [], []>} : vector<384x128xf32>, vector<128x128xf32>, vector<384x128xf32> -> vector<384x128xf32>
    %16 = arith.addf %11, %15 : vector<384x128xf32>
    %c0_18 = arith.constant 0 : index
    %c0_19 = arith.constant 0 : index
    %17 = vector.load %arg5[%c0_18, %c0_19] : memref<8x128xf32, #tpu.memory_space<vmem>>, vector<1x128xf32>
    %18 = vector.broadcast %17 : vector<1x128xf32> to vector<384x128xf32>
    %19 = arith.addf %16, %18 : vector<384x128xf32>
    %cst_20 = arith.constant 0.000000e+00 : f32
    %20 = vector.broadcast %cst_20 : f32 to vector<384x128xf32>
    %21 = arith.maximumf %19, %20 : vector<384x128xf32>
    %c0_21 = arith.constant 0 : index
    %c0_22 = arith.constant 0 : index
    %22 = vector.load %arg6[%c0_21, %c0_22] : memref<384x1xf32, #tpu.memory_space<vmem>>, vector<384x1xf32>
    %23 = vector.broadcast %22 : vector<384x1xf32> to vector<384x128xf32>
    %24 = arith.mulf %21, %23 : vector<384x128xf32>
    %c0_23 = arith.constant 0 : index
    %c0_24 = arith.constant 0 : index
    %25 = vector.load %arg10[%c0_23, %c0_24] : memref<392x128xf32, #tpu.memory_space<vmem>>, vector<384x128xf32>
    tpu.vector_store %arg10[%c0_23, %c0_24], %24 {strides = array<i32>} : memref<392x128xf32, #tpu.memory_space<vmem>>, vector<384x128xf32>,
    %c0_25 = arith.constant 0 : index
    %c0_26 = arith.constant 0 : index
    %26 = vector.load %arg10[%c0_25, %c0_26] : memref<392x128xf32, #tpu.memory_space<vmem>>, vector<384x128xf32>
    %c0_27 = arith.constant 0 : index
    %c0_28 = arith.constant 0 : index
    %c0_29 = arith.constant 0 : index
    %27 = vector.load %arg3[%c0_27, %c0_28, %c0_29] : memref<3x128x128xf32, #tpu.memory_space<vmem>>, vector<1x128x128xf32>
    %28 = vector.shape_cast %27 : vector<1x128x128xf32> to vector<128x128xf32>
    %cst_30 = arith.constant dense<0.000000e+00> : vector<384x128xf32>
    %29 = tpu.matmul %26, %28, %cst_30 {dimension_numbers = #tpu.dot_dimension_numbers<[1], [0], [0], [1], [0, 0, 1, 1], [], []>} : vector<384x128xf32>, vector<128x128xf32>, vector<384x128xf32> -> vector<384x128xf32>
    %c1_31 = arith.constant 1 : index
    %c0_32 = arith.constant 0 : index
    %30 = vector.load %arg10[%c1_31, %c0_32] : memref<392x128xf32, #tpu.memory_space<vmem>>, vector<384x128xf32>
    %c1_33 = arith.constant 1 : index
    %c0_34 = arith.constant 0 : index
    %c0_35 = arith.constant 0 : index
    %31 = vector.load %arg3[%c1_33, %c0_34, %c0_35] : memref<3x128x128xf32, #tpu.memory_space<vmem>>, vector<1x128x128xf32>
    %32 = vector.shape_cast %31 : vector<1x128x128xf32> to vector<128x128xf32>
    %cst_36 = arith.constant dense<0.000000e+00> : vector<384x128xf32>
    %33 = tpu.matmul %30, %32, %cst_36 {dimension_numbers = #tpu.dot_dimension_numbers<[1], [0], [0], [1], [0, 0, 1, 1], [], []>} : vector<384x128xf32>, vector<128x128xf32>, vector<384x128xf32> -> vector<384x128xf32>
    %34 = arith.addf %29, %33 : vector<384x128xf32>
    %c2_37 = arith.constant 2 : index
    %c0_38 = arith.constant 0 : index
    %35 = vector.load %arg10[%c2_37, %c0_38] : memref<392x128xf32, #tpu.memory_space<vmem>>, vector<384x128xf32>
    %c2_39 = arith.constant 2 : index
    %c0_40 = arith.constant 0 : index
    %c0_41 = arith.constant 0 : index
    %36 = vector.load %arg3[%c2_39, %c0_40, %c0_41] : memref<3x128x128xf32, #tpu.memory_space<vmem>>, vector<1x128x128xf32>
    %37 = vector.shape_cast %36 : vector<1x128x128xf32> to vector<128x128xf32>
    %cst_42 = arith.constant dense<0.000000e+00> : vector<384x128xf32>
    %38 = tpu.matmul %35, %37, %cst_42 {dimension_numbers = #tpu.dot_dimension_numbers<[1], [0], [0], [1], [0, 0, 1, 1], [], []>} : vector<384x128xf32>, vector<128x128xf32>, vector<384x128xf32> -> vector<384x128xf32>
    %39 = arith.addf %34, %38 : vector<384x128xf32>
    %c1_43 = arith.constant 1 : index
    %c0_44 = arith.constant 0 : index
    %40 = vector.load %arg5[%c1_43, %c0_44] : memref<8x128xf32, #tpu.memory_space<vmem>>, vector<1x128xf32>
    %41 = vector.broadcast %40 : vector<1x128xf32> to vector<384x128xf32>
    %42 = arith.addf %39, %41 : vector<384x128xf32>
    %cst_45 = arith.constant 0.000000e+00 : f32
    %43 = vector.broadcast %cst_45 : f32 to vector<384x128xf32>
    %44 = arith.maximumf %42, %43 : vector<384x128xf32>
    %c0_46 = arith.constant 0 : index
    %c0_47 = arith.constant 0 : index
    %45 = vector.load %arg7[%c0_46, %c0_47] : memref<384x1xf32, #tpu.memory_space<vmem>>, vector<384x1xf32>
    %46 = vector.broadcast %45 : vector<384x1xf32> to vector<384x128xf32>
    %47 = arith.mulf %44, %46 : vector<384x128xf32>
    %c0_48 = arith.constant 0 : index
    %c0_49 = arith.constant 0 : index
    %48 = vector.load %arg11[%c0_48, %c0_49] : memref<392x128xf32, #tpu.memory_space<vmem>>, vector<384x128xf32>
    tpu.vector_store %arg11[%c0_48, %c0_49], %47 {strides = array<i32>} : memref<392x128xf32, #tpu.memory_space<vmem>>, vector<384x128xf32>,
    %c0_50 = arith.constant 0 : index
    %c0_51 = arith.constant 0 : index
    %49 = vector.load %arg11[%c0_50, %c0_51] : memref<392x128xf32, #tpu.memory_space<vmem>>, vector<384x128xf32>
    %c0_52 = arith.constant 0 : index
    %c0_53 = arith.constant 0 : index
    %c0_54 = arith.constant 0 : index
    %50 = vector.load %arg4[%c0_52, %c0_53, %c0_54] : memref<3x128x128xf32, #tpu.memory_space<vmem>>, vector<1x128x128xf32>
    %51 = vector.shape_cast %50 : vector<1x128x128xf32> to vector<128x128xf32>
    %cst_55 = arith.constant dense<0.000000e+00> : vector<384x128xf32>
    %52 = tpu.matmul %49, %51, %cst_55 {dimension_numbers = #tpu.dot_dimension_numbers<[1], [0], [0], [1], [0, 0, 1, 1], [], []>} : vector<384x128xf32>, vector<128x128xf32>, vector<384x128xf32> -> vector<384x128xf32>
    %c1_56 = arith.constant 1 : index
    %c0_57 = arith.constant 0 : index
    %53 = vector.load %arg11[%c1_56, %c0_57] : memref<392x128xf32, #tpu.memory_space<vmem>>, vector<384x128xf32>
    %c1_58 = arith.constant 1 : index
    %c0_59 = arith.constant 0 : index
    %c0_60 = arith.constant 0 : index
    %54 = vector.load %arg4[%c1_58, %c0_59, %c0_60] : memref<3x128x128xf32, #tpu.memory_space<vmem>>, vector<1x128x128xf32>
    %55 = vector.shape_cast %54 : vector<1x128x128xf32> to vector<128x128xf32>
    %cst_61 = arith.constant dense<0.000000e+00> : vector<384x128xf32>
    %56 = tpu.matmul %53, %55, %cst_61 {dimension_numbers = #tpu.dot_dimension_numbers<[1], [0], [0], [1], [0, 0, 1, 1], [], []>} : vector<384x128xf32>, vector<128x128xf32>, vector<384x128xf32> -> vector<384x128xf32>
    %57 = arith.addf %52, %56 : vector<384x128xf32>
    %c2_62 = arith.constant 2 : index
    %c0_63 = arith.constant 0 : index
    %58 = vector.load %arg11[%c2_62, %c0_63] : memref<392x128xf32, #tpu.memory_space<vmem>>, vector<384x128xf32>
    %c2_64 = arith.constant 2 : index
    %c0_65 = arith.constant 0 : index
    %c0_66 = arith.constant 0 : index
    %59 = vector.load %arg4[%c2_64, %c0_65, %c0_66] : memref<3x128x128xf32, #tpu.memory_space<vmem>>, vector<1x128x128xf32>
    %60 = vector.shape_cast %59 : vector<1x128x128xf32> to vector<128x128xf32>
    %cst_67 = arith.constant dense<0.000000e+00> : vector<384x128xf32>
    %61 = tpu.matmul %58, %60, %cst_67 {dimension_numbers = #tpu.dot_dimension_numbers<[1], [0], [0], [1], [0, 0, 1, 1], [], []>} : vector<384x128xf32>, vector<128x128xf32>, vector<384x128xf32> -> vector<384x128xf32>
    %62 = arith.addf %57, %61 : vector<384x128xf32>
    %c2_68 = arith.constant 2 : index
    %c0_69 = arith.constant 0 : index
    %63 = vector.load %arg5[%c2_68, %c0_69] : memref<8x128xf32, #tpu.memory_space<vmem>>, vector<1x128xf32>
    %64 = vector.broadcast %63 : vector<1x128xf32> to vector<384x128xf32>
    %65 = arith.addf %62, %64 : vector<384x128xf32>
    %cst_70 = arith.constant 0.000000e+00 : f32
    %66 = vector.broadcast %cst_70 : f32 to vector<384x128xf32>
    %67 = arith.maximumf %65, %66 : vector<384x128xf32>
    %c0_71 = arith.constant 0 : index
    %c0_72 = arith.constant 0 : index
    %68 = vector.load %arg8[%c0_71, %c0_72] : memref<16x384xf32, #tpu.memory_space<vmem>>, vector<16x384xf32>
    %cst_73 = arith.constant dense<0.000000e+00> : vector<16x128xf32>
    %69 = tpu.matmul %68, %67, %cst_73 {dimension_numbers = #tpu.dot_dimension_numbers<[1], [0], [0], [1], [0, 0, 1, 1], [], []>} : vector<16x384xf32>, vector<384x128xf32>, vector<16x128xf32> -> vector<16x128xf32>
    %c0_74 = arith.constant 0 : index
    %c0_75 = arith.constant 0 : index
    %70 = vector.load %arg9[%c0_74, %c0_75] : memref<16x128xf32, #tpu.memory_space<vmem>>, vector<16x128xf32>
    tpu.vector_store %arg9[%c0_74, %c0_75], %69 {strides = array<i32>} : memref<16x128xf32, #tpu.memory_space<vmem>>, vector<16x128xf32>,
    return
  }
  func.func @transform_0(%arg0: i32) -> (i32, i32) {
    %c0_i32 = arith.constant 0 : i32
    %c0_i32_0 = arith.constant 0 : i32
    return %arg0, %c0_i32 : i32, i32
  }
  func.func @transform_1(%arg0: i32) -> (i32, i32, i32) {
    %c0_i32 = arith.constant 0 : i32
    %c0_i32_0 = arith.constant 0 : i32
    %c0_i32_1 = arith.constant 0 : i32
    %c0_i32_2 = arith.constant 0 : i32
    return %c0_i32, %c0_i32_0, %c0_i32_1 : i32, i32, i32
  }
  func.func @transform_2(%arg0: i32) -> (i32, i32, i32) {
    %c0_i32 = arith.constant 0 : i32
    %c0_i32_0 = arith.constant 0 : i32
    %c0_i32_1 = arith.constant 0 : i32
    %c0_i32_2 = arith.constant 0 : i32
    return %c0_i32, %c0_i32_0, %c0_i32_1 : i32, i32, i32
  }
  func.func @transform_3(%arg0: i32) -> (i32, i32, i32) {
    %c0_i32 = arith.constant 0 : i32
    %c0_i32_0 = arith.constant 0 : i32
    %c0_i32_1 = arith.constant 0 : i32
    %c0_i32_2 = arith.constant 0 : i32
    return %c0_i32, %c0_i32_0, %c0_i32_1 : i32, i32, i32
  }
  func.func @transform_4(%arg0: i32) -> (i32, i32) {
    %c0_i32 = arith.constant 0 : i32
    %c0_i32_0 = arith.constant 0 : i32
    %c0_i32_1 = arith.constant 0 : i32
    return %c0_i32, %c0_i32_0 : i32, i32
  }
  func.func @transform_5(%arg0: i32) -> (i32, i32) {
    %c0_i32 = arith.constant 0 : i32
    %c0_i32_0 = arith.constant 0 : i32
    %c0_i32_1 = arith.constant 0 : i32
    return %c0_i32, %c0_i32_0 : i32, i32
  }
  func.func @transform_6(%arg0: i32) -> (i32, i32) {
    %c0_i32 = arith.constant 0 : i32
    %c0_i32_0 = arith.constant 0 : i32
    %c0_i32_1 = arith.constant 0 : i32
    return %c0_i32, %c0_i32_0 : i32, i32
  }
  func.func @transform_7(%arg0: i32) -> (i32, i32) {
    %c0_i32 = arith.constant 0 : i32
    %c0_i32_0 = arith.constant 0 : i32
    %c0_i32_1 = arith.constant 0 : i32
    return %c0_i32, %c0_i32_0 : i32, i32
  }
  func.func @transform_8(%arg0: i32) -> (i32, i32) {
    %c0_i32 = arith.constant 0 : i32
    %c0_i32_0 = arith.constant 0 : i32
    return %arg0, %c0_i32 : i32, i32
  }
}

</mosaic_0001>

<bundles_post_ra>
// kernel: tpu_custom_call.1
= control target key start
LH: loop header
LB: loop body
LE: loop exit
PB: predicated region body
PF: predicated region fallthrough
CT: control target
= control target key end

     0   :  { %13 = vsyncpa [#allocation5], 0  ;;  %s9047_s0 = inlined_call_operand.vmem [shape: f32[392,128], index: 0, kind: input, shape index: {}]   ;;  %s9048_s1 = inlined_call_operand.vmem [shape: f32[3,128,128], index: 1, kind: input, shape index: {}]   ;;  %s9049_s2 = inlined_call_operand.hbm [shape: f32[3,128,128], index: 2, kind: input, shape index: {}]   ;;  %s9050_s3 = inlined_call_operand.hbm [shape: f32[3,128,128], index: 3, kind: input, shape index: {}]   ;;  %s9051_s4 = inlined_call_operand.vmem [shape: f32[8,128], index: 4, kind: input, shape index: {}]   ;;  %s9052_s5 = inlined_call_operand.vmem [shape: f32[384,1], index: 5, kind: input, shape index: {}]   ;;  %s9053_s6 = inlined_call_operand.vmem [shape: f32[384,1], index: 6, kind: input, shape index: {}]   ;;  %s9054_s7 = inlined_call_operand.hbm [shape: f32[16,384], index: 7, kind: input, shape index: {}]   ;;  %s9055_s8 = inlined_call_operand.hbm [shape: f32[16,128], index: 8, kind: output, shape index: {}]  }
   0x1   :  { %14 = vsyncpa [#allocation8], 0 }
   0x2   :  { %15 = vsyncpa [#allocation6], 0  ;;  %s7175_s27 = smov [#allocation7]   ;;  %s7176_s29 = smov [#allocation4]  }
   0x3   :  { %s37_s28 = sshll.u32 %s7175_s27, 4  ;;  %s25_s30 = sshll.u32 %s7176_s29, 4  ;;  %s38_s28 = int_to_ptr.vmem [resolvable:$true] %s37_s28  ;;  %s7230_s30 = int_to_ptr.vmem [resolvable:$true] %s25_s30 }
   0x4   :  { %s7081_s11 = scalar_lea.hbm %s9050_s3, 6144 }
   0x5   :  { %p7082_p0 = scmp.ne.s32.totalorder %s9050_s3, %s7081_s11  ;;  %p7085_p1 = scmp.lt.u32.totalorder %s7081_s11, %s9050_s3 }
   0x7   :  { %p7087_p2 = pnand %p7085_p1, %p7082_p0 }
   0x9   :  { %7090 = shalt.err (!%p7087_p2)
}
   0xa   :  { %s7091_s16 = scalar_lea.vmem %s38_s28, 6144  ;;  %p7096_p4 = scmp.lt.s32.totalorder %s38_s28, %s38_s28 }
   0xb   :  { %p7092_p3 = scmp.ne.s32.totalorder %s38_s28, %s7091_s16  ;;  %p7097_p5 = scmp.lt.s32.totalorder %s7091_s16, %s7091_s16 }
   0xd   :  { %p7098_p6 = por %p7097_p5, %p7096_p4 }
   0xf   :  { %p7099_p7 = pnand %p7098_p6, %p7092_p3 }
  0x11   :  { %7102 = shalt.err (!%p7099_p7)
}
  0x12   :  { %s7177_s17 = smov 128   ;;  %s7178_s18 = smov 8  }
  0x13   :  { %43 = dma.hbm_to_vmem [thread:$0]  %s9050_s3, 6144, %s38_s28, [#allocation8], %s7177_s17, %s7177_s17, %s7178_s18  }
  0x14   :  { %s7103_s23 = scalar_lea.hbm %s9049_s2, 6144 }
  0x15   :  { %p7104_p8 = scmp.ne.s32.totalorder %s9049_s2, %s7103_s23  ;;  %p7107_p9 = scmp.lt.u32.totalorder %s7103_s23, %s9049_s2 }
  0x17   :  { %p7109_p10 = pnand %p7107_p9, %p7104_p8 }
  0x19   :  { %7112 = shalt.err (!%p7109_p10)
}
  0x1a   :  { %s7113_s29 = scalar_lea.vmem %s7230_s30, 6144  ;;  %p7118_p12 = scmp.lt.s32.totalorder %s7230_s30, %s7230_s30 }
  0x1b   :  { %p7114_p11 = scmp.ne.s32.totalorder %s7230_s30, %s7113_s29  ;;  %p7119_p13 = scmp.lt.s32.totalorder %s7113_s29, %s7113_s29 }
  0x1d   :  { %p7120_p0 = por %p7119_p13, %p7118_p12 }
  0x1f   :  { %p7121_p1 = pnand %p7120_p0, %p7114_p11 }
  0x21   :  { %7124 = shalt.err (!%p7121_p1)
}
  0x22   :  { %31 = dma.hbm_to_vmem [thread:$0]  %s9049_s2, 6144, %s7230_s30, [#allocation5], %s7177_s17, %s7177_s17, %s7178_s18  }
  0x23   :  { %s7179_s9 = smov [#allocation9]   ;;  %s7125_s13 = scalar_lea.hbm %s9054_s7, 768 }
  0x24   :  { %s55_s10 = sshll.u32 %s7179_s9, 4  ;;  %p7126_p2 = scmp.ne.s32.totalorder %s9054_s7, %s7125_s13  ;;  %s56_s10 = int_to_ptr.vmem [resolvable:$true] %s55_s10 }
  0x25   :  { %p7129_p3 = scmp.lt.u32.totalorder %s7125_s13, %s9054_s7 }
  0x27   :  { %p7131_p4 = pnand %p7129_p3, %p7126_p2 }
  0x29   :  { %7134 = shalt.err (!%p7131_p4)
}
  0x2a   :  { %s7135_s20 = scalar_lea.vmem %s56_s10, 768  ;;  %p7140_p6 = scmp.lt.s32.totalorder %s56_s10, %s56_s10 }
  0x2b   :  { %p7136_p5 = scmp.ne.s32.totalorder %s56_s10, %s7135_s20  ;;  %p7141_p7 = scmp.lt.s32.totalorder %s7135_s20, %s7135_s20 }
  0x2d   :  { %p7142_p8 = por %p7141_p7, %p7140_p6 }
  0x2f   :  { %p7143_p9 = pnand %p7142_p8, %p7136_p5 }
  0x31   :  { %7146 = shalt.err (!%p7143_p9)
}
  0x32   :  { %s7180_s2 = smov 384   ;;  %s7181_s30 = smov 24  }
  0x33   :  { %61 = dma.hbm_to_vmem [thread:$0]  %s9054_s7, 768, %s56_s10, [#allocation8], %s7180_s2, %s7180_s2, %s7181_s30  }
  0x34   :  { %7169 = dma.done.wait [#allocation5], 6144  }
  0x35   :  { %7170 = vsyncadd [#allocation5], 4294961152 }
  0x36   :  { %7171 = dma.done.wait [#allocation8], 6912  }
  0x37   :  { %7172 = vsyncadd [#allocation8], 4294960384  ;;  %v7182_v0 = vmov 0   ;;  %v121_v1 = vld [vmem:[%s9048_s1] sm:$0xff]  ;;  %v122_v2 = vld [vmem:[%s9048_s1 + $0x8] sm:$0xff] }
  0x38   :  { %7079 = vset.pattern.permute.xlu0 %v7182_v0  ;;  %7080 = vset.pattern.permute.xlu1 %v7182_v0  ;;  %v123_v3 = vld [vmem:[%s9048_s1 + $0x10] sm:$0xff]  ;;  %v6461_v4 = vpack.c.bf16 %v122_v2, %v121_v1  ;;  %v124_v5 = vld [vmem:[%s9048_s1 + $0x18] sm:$0xff]  ;;  %v125_v7 = vld [vmem:[%s9048_s1 + $0x20] sm:$0xff] }
  0x39   :  { %v6465_v6 = vpack.c.bf16 %v124_v5, %v123_v3  ;;  %v126_v8 = vld [vmem:[%s9048_s1 + $0x28] sm:$0xff]  ;;  %v1331_v10 = vld [vmem:[%s9052_s5] sm:$0xff]  ;;  %v127_v12 = vld [vmem:[%s9048_s1 + $0x30] sm:$0xff] }
  0x3a   :  { %6462 = vmatprep.subr.bf16.mxu0 %v6461_v4  ;;  %v6469_v9 = vpack.c.bf16 %v126_v8, %v125_v7  ;;  %v73_v11 = vld [vmem:[%s9047_s0] sm:$0xff]  ;;  %v128_v13 = vld [vmem:[%s9048_s1 + $0x38] sm:$0xff]  ;;  %1381 = vperm.xlu0 %7079, %v1331_v10   ;;  %v1333_v14 = vld [vmem:[%s9052_s5 + $0x10] sm:$0xff] }
  0x3b   :  { %6464 = vmatpush3.bf16.msra.mxu0 %v6461_v4  ;;  %5594 = vmatprep.mubr.f32.mxu0 %v73_v11  ;;  %v1332_v15 = vld [vmem:[%s9052_s5 + $0x8] sm:$0xff]  ;;  %v1334_v16 = vld [vmem:[%s9052_s5 + $0x18] sm:$0xff]  ;;  %v6473_v17 = vpack.c.bf16 %v128_v13, %v127_v12  ;;  %v129_v18 = vld [vmem:[%s9048_s1 + $0x40] sm:$0xff] }
  0x3c   :  { %6466 = vmatprep.subr.bf16.mxu0 %v6465_v6  ;;  %1391 = vperm.xlu1 %7080, %v1333_v14   ;;  %v130_v19 = vld [vmem:[%s9048_s1 + $0x48] sm:$0xff]  ;;  %v1335_v20 = vld [vmem:[%s9052_s5 + $0x20] sm:$0xff]  ;;  %v131_v23 = vld [vmem:[%s9048_s1 + $0x50] sm:$0xff] }
  0x3d   :  { %v1336_v21 = vld [vmem:[%s9052_s5 + $0x28] sm:$0xff]  ;;  %v6477_v22 = vpack.c.bf16 %v130_v19, %v129_v18  ;;  %v132_v24 = vld [vmem:[%s9048_s1 + $0x58] sm:$0xff]  ;;  %v1337_v25 = vld [vmem:[%s9052_s5 + $0x30] sm:$0xff] }
  0x3e   :  { %1386 = vperm.xlu0 %7079, %v1332_v15   ;;  %v1338_v26 = vld [vmem:[%s9052_s5 + $0x38] sm:$0xff]  ;;  %v6481_v27 = vpack.c.bf16 %v132_v24, %v131_v23  ;;  %v133_v28 = vld [vmem:[%s9048_s1 + $0x60] sm:$0xff]  ;;  %v134_v29 = vld [vmem:[%s9048_s1 + $0x68] sm:$0xff] }
  0x3f   :  { %6468 = vmatpush3.bf16.msra.mxu0 %v6465_v6  ;;  %v1339_v30 = vld [vmem:[%s9052_s5 + $0x40] sm:$0xff]  ;;  %v1340_v31 = vld [vmem:[%s9052_s5 + $0x48] sm:$0xff]  ;;  %v6485_v32 = vpack.c.bf16 %v134_v29, %v133_v28  ;;  %v135_v33 = vld [vmem:[%s9048_s1 + $0x70] sm:$0xff] }
  0x40   :  { %6470 = vmatprep.subr.bf16.mxu0 %v6469_v9  ;;  %1396 = vperm.xlu1 %7080, %v1334_v16   ;;  %v136_v34 = vld [vmem:[%s9048_s1 + $0x78] sm:$0xff]  ;;  %v1341_v35 = vld [vmem:[%s9052_s5 + $0x50] sm:$0xff]  ;;  %v1343_v38 = vld [vmem:[%s9052_s5 + $0x60] sm:$0xff] }
  0x41   :  { %v1342_v36 = vld [vmem:[%s9052_s5 + $0x58] sm:$0xff]  ;;  %v6489_v37 = vpack.c.bf16 %v136_v34, %v135_v33  ;;  %v4791_v39 = vld [vmem:[%s9048_s1 + $0x80] sm:$0xff]  ;;  %v4792_v40 = vld [vmem:[%s9048_s1 + $0x88] sm:$0xff] }
  0x42   :  { %1401 = vperm.xlu0 %7079, %v1335_v20   ;;  %v1344_v41 = vld [vmem:[%s9052_s5 + $0x68] sm:$0xff]  ;;  %v6429_v42 = vpack.c.bf16 %v4792_v40, %v4791_v39  ;;  %v4807_v43 = vld [vmem:[%s9048_s1 + $0x100] sm:$0xff]  ;;  %v4793_v46 = vld [vmem:[%s9048_s1 + $0x90] sm:$0xff] }
  0x43   :  { %6472 = vmatpush3.bf16.msra.mxu0 %v6469_v9  ;;  %v4808_v44 = vld [vmem:[%s9048_s1 + $0x108] sm:$0xff]  ;;  %v4794_v48 = vld [vmem:[%s9048_s1 + $0x98] sm:$0xff]  ;;  %v1345_v49 = vld [vmem:[%s9052_s5 + $0x70] sm:$0xff] }
  0x44   :  { %6474 = vmatprep.subr.bf16.mxu0 %v6473_v17  ;;  %1406 = vperm.xlu1 %7080, %v1336_v21   ;;  %v6493_v45 = vpack.c.bf16 %v4808_v44, %v4807_v43  ;;  %v74_v47 = vld [vmem:[%s9047_s0 + $0x8] sm:$0xff]  ;;  %v6433_v50 = vpack.c.bf16 %v4794_v48, %v4793_v46  ;;  %v4809_v51 = vld [vmem:[%s9048_s1 + $0x110] sm:$0xff]  ;;  %v4810_v52 = vld [vmem:[%s9048_s1 + $0x118] sm:$0xff] }
  0x45   :  { %6430 = vmatprep.subr.bf16.mxu1 %v6429_v42  ;;  %v1346_v53 = vld [vmem:[%s9052_s5 + $0x78] sm:$0xff]  ;;  %v4795_v54 = vld [vmem:[%s9048_s1 + $0xa0] sm:$0xff]  ;;  %v4796_v55 = vld [vmem:[%s9048_s1 + $0xa8] sm:$0xff]  ;;  %v6497_v57 = vpack.c.bf16 %v4810_v52, %v4809_v51 }
  0x46   :  { %1411 = vperm.xlu0 %7079, %v1337_v25   ;;  %6432 = vmatpush3.bf16.msra.mxu1 %v6429_v42  ;;  %v75_v56 = vld [vmem:[%s9047_s0 + $0x10] sm:$0xff]  ;;  %v6437_v58 = vpack.c.bf16 %v4796_v55, %v4795_v54  ;;  %v4811_v59 = vld [vmem:[%s9048_s1 + $0x120] sm:$0xff]  ;;  %v4812_v60 = vld [vmem:[%s9048_s1 + $0x128] sm:$0xff] }
  0x47   :  { %6476 = vmatpush3.bf16.msra.mxu0 %v6473_v17  ;;  %6434 = vmatprep.subr.bf16.mxu1 %v6433_v50  ;;  %v1347_v61 = vld [vmem:[%s9052_s5 + $0x80] sm:$0xff]  ;;  %v4797_v62 = vld [vmem:[%s9048_s1 + $0xb0] sm:$0xff]  ;;  %v4798_v63 = vld [vmem:[%s9048_s1 + $0xb8] sm:$0xff]  ;;  %v6501_v3 = vpack.c.bf16 %v4812_v60, %v4811_v59 }
  0x48   :  { %6478 = vmatprep.subr.bf16.mxu0 %v6477_v22  ;;  %1416 = vperm.xlu1 %7080, %v1338_v26   ;;  %v76_v0 = vld [vmem:[%s9047_s0 + $0x18] sm:$0xff]  ;;  %v1348_v1 = vld [vmem:[%s9052_s5 + $0x88] sm:$0xff]  ;;  %v77_v2 = vld [vmem:[%s9047_s0 + $0x20] sm:$0xff]  ;;  %v6441_v4 = vpack.c.bf16 %v4798_v63, %v4797_v62 }
  0x49   :  { %v4813_v5 = vld [vmem:[%s9048_s1 + $0x130] sm:$0xff]  ;;  %v4814_v6 = vld [vmem:[%s9048_s1 + $0x138] sm:$0xff]  ;;  %v4799_v8 = vld [vmem:[%s9048_s1 + $0xc0] sm:$0xff] }
  0x4a   :  { %1421 = vperm.xlu0 %7079, %v1339_v30   ;;  %6436 = vmatpush3.bf16.msra.mxu1 %v6433_v50  ;;  %v1349_v7 = vld [vmem:[%s9052_s5 + $0x90] sm:$0xff]  ;;  %v4800_v9 = vld [vmem:[%s9048_s1 + $0xc8] sm:$0xff]  ;;  %v1350_v11 = vld [vmem:[%s9052_s5 + $0x98] sm:$0xff]  ;;  %v6505_v13 = vpack.c.bf16 %v4814_v6, %v4813_v5 }
  0x4b   :  { %6480 = vmatpush3.bf16.msra.mxu0 %v6477_v22  ;;  %6438 = vmatprep.subr.bf16.mxu1 %v6437_v58  ;;  %v78_v10 = vld [vmem:[%s9047_s0 + $0x28] sm:$0xff]  ;;  %v79_v12 = vld [vmem:[%s9047_s0 + $0x30] sm:$0xff]  ;;  %v6445_v14 = vpack.c.bf16 %v4800_v9, %v4799_v8  ;;  %v4815_v15 = vld [vmem:[%s9048_s1 + $0x140] sm:$0xff] }
  0x4c   :  { %6482 = vmatprep.subr.bf16.mxu0 %v6481_v27  ;;  %1426 = vperm.xlu1 %7080, %v1340_v31   ;;  %v4816_v16 = vld [vmem:[%s9048_s1 + $0x148] sm:$0xff]  ;;  %v1351_v17 = vld [vmem:[%s9052_s5 + $0xa0] sm:$0xff]  ;;  %v4801_v18 = vld [vmem:[%s9048_s1 + $0xd0] sm:$0xff] }
  0x4d   :  { %v4802_v19 = vld [vmem:[%s9048_s1 + $0xd8] sm:$0xff]  ;;  %v1352_v21 = vld [vmem:[%s9052_s5 + $0xa8] sm:$0xff]  ;;  %v81_v22 = vld [vmem:[%s9047_s0 + $0x40] sm:$0xff]  ;;  %v6509_v23 = vpack.c.bf16 %v4816_v16, %v4815_v15 }
  0x4e   :  { %1431 = vperm.xlu0 %7079, %v1341_v35   ;;  %6440 = vmatpush3.bf16.msra.mxu1 %v6437_v58  ;;  %v80_v20 = vld [vmem:[%s9047_s0 + $0x38] sm:$0xff]  ;;  %v6449_v24 = vpack.c.bf16 %v4802_v19, %v4801_v18  ;;  %v4817_v25 = vld [vmem:[%s9048_s1 + $0x150] sm:$0xff]  ;;  %v4803_v28 = vld [vmem:[%s9048_s1 + $0xe0] sm:$0xff] }
  0x4f   :  { %6484 = vmatpush3.bf16.msra.mxu0 %v6481_v27  ;;  %6442 = vmatprep.subr.bf16.mxu1 %v6441_v4  ;;  %v4818_v26 = vld [vmem:[%s9048_s1 + $0x158] sm:$0xff]  ;;  %v1353_v27 = vld [vmem:[%s9052_s5 + $0xb0] sm:$0xff]  ;;  %v4804_v29 = vld [vmem:[%s9048_s1 + $0xe8] sm:$0xff] }
  0x50   :  { %6486 = vmatprep.subr.bf16.mxu0 %v6485_v32  ;;  %1436 = vperm.xlu1 %7080, %v1342_v36   ;;  %v82_v30 = vld [vmem:[%s9047_s0 + $0x48] sm:$0xff]  ;;  %v1354_v31 = vld [vmem:[%s9052_s5 + $0xb8] sm:$0xff]  ;;  %v6513_v33 = vpack.c.bf16 %v4818_v26, %v4817_v25  ;;  %v6453_v34 = vpack.c.bf16 %v4804_v29, %v4803_v28  ;;  %v4819_v35 = vld [vmem:[%s9048_s1 + $0x160] sm:$0xff] }
  0x51   :  { %v4820_v36 = vld [vmem:[%s9048_s1 + $0x168] sm:$0xff]  ;;  %v4806_v39 = vld [vmem:[%s9048_s1 + $0xf8] sm:$0xff]  ;;  %v85_v42 = vld [vmem:[%s9047_s0 + $0x60] sm:$0xff] }
  0x52   :  { %1441 = vperm.xlu0 %7079, %v1343_v38   ;;  %6444 = vmatpush3.bf16.msra.mxu1 %v6441_v4  ;;  %v4805_v38 = vld [vmem:[%s9048_s1 + $0xf0] sm:$0xff]  ;;  %v84_v40 = vld [vmem:[%s9047_s0 + $0x58] sm:$0xff]  ;;  %v6517_v43 = vpack.c.bf16 %v4820_v36, %v4819_v35  ;;  %v86_v48 = vld [vmem:[%s9047_s0 + $0x68] sm:$0xff] }
  0x53   :  { %6488 = vmatpush3.bf16.msra.mxu0 %v6485_v32  ;;  %6446 = vmatprep.subr.bf16.mxu1 %v6445_v14  ;;  %v83_v32 = vld [vmem:[%s9047_s0 + $0x50] sm:$0xff]  ;;  %v6457_v44 = vpack.c.bf16 %v4806_v39, %v4805_v38  ;;  %v4822_v46 = vld [vmem:[%s9048_s1 + $0x178] sm:$0xff]  ;;  %v1359_v52 = vld [vmem:[%s9052_s5 + $0xe0] sm:$0xff] }
  0x54   :  { %6490 = vmatprep.subr.bf16.mxu0 %v6489_v37  ;;  %1446 = vperm.xlu1 %7080, %v1344_v41   ;;  %v1356_v41 = vld [vmem:[%s9052_s5 + $0xc8] sm:$0xff]  ;;  %v87_v50 = vld [vmem:[%s9047_s0 + $0x70] sm:$0xff]  ;;  %v88_v54 = vld [vmem:[%s9047_s0 + $0x78] sm:$0xff] }
  0x55   :  { %v1360_v55 = vld [vmem:[%s9052_s5 + $0xe8] sm:$0xff]  ;;  %v1361_v58 = vld [vmem:[%s9052_s5 + $0xf0] sm:$0xff]  ;;  %v140_v63 = vld [vmem:[%s9047_s0 + $0x19] sm:$0xff] }
  0x56   :  { %1451 = vperm.xlu0 %7079, %v1345_v49   ;;  %6448 = vmatpush3.bf16.msra.mxu1 %v6445_v14  ;;  %v1358_v49 = vld [vmem:[%s9052_s5 + $0xd8] sm:$0xff]  ;;  %v90_v60 = vld [vmem:[%s9047_s0 + $0x88] sm:$0xff]  ;;  %v91_v62 = vld [vmem:[%s9047_s0 + $0x90] sm:$0xff] }
  0x57   :  { %6492 = vmatpush3.bf16.msra.mxu0 %v6489_v37  ;;  %6450 = vmatprep.subr.bf16.mxu1 %v6449_v24  ;;  %v1355_v37 = vld [vmem:[%s9052_s5 + $0xc0] sm:$0xff]  ;;  %v139_v59 = vld [vmem:[%s9047_s0 + $0x11] sm:$0xff]  ;;  %v142_v5 = vld [vmem:[%s9047_s0 + $0x29] sm:$0xff] }
  0x58   :  { %6494 = vmatprep.subr.bf16.mxu0 %v6493_v45  ;;  %1456 = vperm.xlu1 %7080, %v1346_v53   ;;  %v137_v53 = vld [vmem:[%s9047_s0 + $0x1] sm:$0xff]  ;;  %v1365_v6 = vld [vmem:[%s9052_s5 + $0x110] sm:$0xff]  ;;  %v1366_v9 = vld [vmem:[%s9052_s5 + $0x118] sm:$0xff] }
  0x59   :  { %5490 = vmatprep.mubr.f32.mxu1 %v137_v53  ;;  %v93_v4 = vld [vmem:[%s9047_s0 + $0xa0] sm:$0xff]  ;;  %v94_v8 = vld [vmem:[%s9047_s0 + $0xa8] sm:$0xff]  ;;  %v96_v14 = vld [vmem:[%s9047_s0 + $0xb8] sm:$0xff] }
  0x5a   :  { %5595 = vmatmul.mubr.f32.vlgmr.msra.gmra.mrb[0].mxu0 %v74_v47  ;;  %1461 = vperm.xlu0 %7079, %v1347_v61   ;;  %v1357_v47 = vld [vmem:[%s9052_s5 + $0xd0] sm:$0xff]  ;;  %v1362_v61 = vld [vmem:[%s9052_s5 + $0xf8] sm:$0xff]  ;;  %v1368_v15 = vld [vmem:[%s9052_s5 + $0x128] sm:$0xff] }
  0x5b   :  { %5597 = vmatprep.mubr.f32.mxu0 %v75_v56  ;;  %6496 = vmatpush3.bf16.msra.mxu0 %v6493_v45  ;;  %v4821_v45 = vld [vmem:[%s9048_s1 + $0x170] sm:$0xff]  ;;  %v89_v56 = vld [vmem:[%s9047_s0 + $0x80] sm:$0xff]  ;;  %v100_v26 = vld [vmem:[%s9047_s0 + $0xd8] sm:$0xff] }
  0x5c   :  { %6498 = vmatprep.subr.bf16.mxu0 %v6497_v57  ;;  %1466 = vperm.xlu1 %7080, %v1348_v1   ;;  %v6521_v51 = vpack.c.bf16 %v4822_v46, %v4821_v45  ;;  %v141_v1 = vld [vmem:[%s9047_s0 + $0x21] sm:$0xff]  ;;  %v1369_v18 = vld [vmem:[%s9052_s5 + $0x130] sm:$0xff]  ;;  %v152_v35 = vld [vmem:[%s9047_s0 + $0x79] sm:$0xff] }
  0x5d   :  { %6452 = vmatpush3.bf16.msra.mxu1 %v6449_v24  ;;  %v97_v16 = vld [vmem:[%s9047_s0 + $0xc0] sm:$0xff]  ;;  %v147_v19 = vld [vmem:[%s9047_s0 + $0x51] sm:$0xff]  ;;  %v150_v29 = vld [vmem:[%s9047_s0 + $0x69] sm:$0xff] }
  0x5e   :  { %5598 = vmatmul.mubr.f32.gmra.mrb[2].mxu0 %v76_v0  ;;  %1471 = vperm.xlu0 %7079, %v1349_v7   ;;  %v1363_v0 = vld [vmem:[%s9052_s5 + $0x100] sm:$0xff]  ;;  %v143_v7 = vld [vmem:[%s9047_s0 + $0x31] sm:$0xff]  ;;  %v1376_v39 = vld [vmem:[%s9052_s5 + $0x168] sm:$0xff] }
  0x5f   :  { %5600 = vmatprep.mubr.f32.mxu0 %v77_v2  ;;  %6500 = vmatpush3.bf16.msra.mxu0 %v6497_v57  ;;  %v138_v57 = vld [vmem:[%s9047_s0 + $0x9] sm:$0xff]  ;;  %v92_v2 = vld [vmem:[%s9047_s0 + $0x98] sm:$0xff]  ;;  %v1371_v24 = vld [vmem:[%s9052_s5 + $0x140] sm:$0xff] }
  0x60   :  { %6502 = vmatprep.subr.bf16.mxu0 %v6501_v3  ;;  %1476 = vperm.xlu1 %7080, %v1350_v11   ;;  %v144_v11 = vld [vmem:[%s9047_s0 + $0x39] sm:$0xff]  ;;  %v149_v25 = vld [vmem:[%s9047_s0 + $0x61] sm:$0xff]  ;;  %v107_v46 = vld [vmem:[%s9047_s0 + $0x110] sm:$0xff] }
  0x61   :  { %6454 = vmatprep.subr.bf16.mxu1 %v6453_v34  ;;  %v101_v28 = vld [vmem:[%s9047_s0 + $0xe0] sm:$0xff]  ;;  %v104_v38 = vld [vmem:[%s9047_s0 + $0xf8] sm:$0xff]  ;;  %v158_v53 = vld [vmem:[%s9047_s0 + $0xa9] sm:$0xff] }
  0x62   :  { %5601 = vmatmul.mubr.f32.gmra.mrb[4].mxu0 %v78_v10  ;;  %1481 = vperm.xlu0 %7079, %v1351_v17   ;;  %v95_v10 = vld [vmem:[%s9047_s0 + $0xb0] sm:$0xff]  ;;  %v1375_v36 = vld [vmem:[%s9052_s5 + $0x160] sm:$0xff]  ;;  %v1378_v45 = vld [vmem:[%s9052_s5 + $0x178] sm:$0xff] }
  0x63   :  { %5603 = vmatprep.mubr.f32.mxu0 %v79_v12  ;;  %6504 = vmatpush3.bf16.msra.mxu0 %v6501_v3  ;;  %v1364_v3 = vld [vmem:[%s9052_s5 + $0x108] sm:$0xff]  ;;  %v1367_v12 = vld [vmem:[%s9052_s5 + $0x120] sm:$0xff] }
  0x64   :  { %6506 = vmatprep.subr.bf16.mxu0 %v6505_v13  ;;  %1486 = vperm.xlu1 %7080, %v1352_v21   ;;  %v146_v17 = vld [vmem:[%s9047_s0 + $0x49] sm:$0xff]  ;;  %v1370_v21 = vld [vmem:[%s9052_s5 + $0x138] sm:$0xff] }
  0x65   :  { %6456 = vmatpush3.bf16.msra.mxu1 %v6453_v34  ;;  %v103_v34 = vld [vmem:[%s9047_s0 + $0xf0] sm:$0xff] }
  0x66   :  { %5604 = vmatmul.mubr.f32.gmra.mrb[6].mxu0 %v80_v20  ;;  %1491 = vperm.xlu0 %7079, %v1353_v27   ;;  %v98_v20 = vld [vmem:[%s9047_s0 + $0xc8] sm:$0xff] }
  0x67   :  { %5606 = vmatprep.mubr.f32.mxu0 %v81_v22  ;;  %6508 = vmatpush3.bf16.msra.mxu0 %v6505_v13  ;;  %v145_v13 = vld [vmem:[%s9047_s0 + $0x41] sm:$0xff]  ;;  %v99_v22 = vld [vmem:[%s9047_s0 + $0xd0] sm:$0xff] }
  0x68   :  { %6510 = vmatprep.subr.bf16.mxu0 %v6509_v23  ;;  %1496 = vperm.xlu1 %7080, %v1354_v31   ;;  %v1372_v27 = vld [vmem:[%s9052_s5 + $0x148] sm:$0xff]  ;;  %v151_v31 = vld [vmem:[%s9047_s0 + $0x71] sm:$0xff] }
  0x69   :  { %6458 = vmatprep.subr.bf16.mxu1 %v6457_v44 }
  0x6a   :  { %5607 = vmatmul.mubr.f32.gmra.mrb[8].mxu0 %v82_v30  ;;  %1501 = vperm.xlu0 %7079, %v1355_v37   ;;  %v1373_v30 = vld [vmem:[%s9052_s5 + $0x150] sm:$0xff]  ;;  %v153_v37 = vld [vmem:[%s9047_s0 + $0x81] sm:$0xff] }
  0x6b   :  { %5609 = vmatprep.mubr.f32.mxu0 %v83_v32  ;;  %6512 = vmatpush3.bf16.msra.mxu0 %v6509_v23  ;;  %v148_v23 = vld [vmem:[%s9047_s0 + $0x59] sm:$0xff]  ;;  %v102_v32 = vld [vmem:[%s9047_s0 + $0xe8] sm:$0xff] }
  0x6c   :  { %6514 = vmatprep.subr.bf16.mxu0 %v6513_v33  ;;  %1506 = vperm.xlu1 %7080, %v1356_v41   ;;  %v154_v41 = vld [vmem:[%s9047_s0 + $0x89] sm:$0xff] }
  0x6d   :  { %6460 = vmatpush3.bf16.msra.mxu1 %v6457_v44  ;;  %v106_v44 = vld [vmem:[%s9047_s0 + $0x108] sm:$0xff] }
  0x6e   :  { %5610 = vmatmul.mubr.f32.gmra.mrb[10].mxu0 %v84_v40  ;;  %1511 = vperm.xlu0 %7079, %v1357_v47   ;;  %v105_v40 = vld [vmem:[%s9047_s0 + $0x100] sm:$0xff] }
  0x6f   :  { %5612 = vmatprep.mubr.f32.mxu0 %v85_v42  ;;  %6516 = vmatpush3.bf16.msra.mxu0 %v6513_v33  ;;  %v1374_v33 = vld [vmem:[%s9052_s5 + $0x158] sm:$0xff]  ;;  %v1377_v42 = vld [vmem:[%s9052_s5 + $0x170] sm:$0xff] }
  0x70   :  { %6518 = vmatprep.subr.bf16.mxu0 %v6517_v43  ;;  %1516 = vperm.xlu1 %7080, %v1358_v49   ;;  %v156_v47 = vld [vmem:[%s9047_s0 + $0x99] sm:$0xff]  ;;  %v157_v49 = vld [vmem:[%s9047_s0 + $0xa1] sm:$0xff] }
  0x71   :  { %5491 = vmatmul.mubr.f32.vlgmr.msra.gmra.mrb[0].mxu1 %v138_v57  ;;  %v2976_v57 = vld [vmem:[%s9053_s6 + $0x18] sm:$0xff] }
  0x72   :  { %5613 = vmatmul.mubr.f32.gmra.mrb[12].mxu0 %v86_v48  ;;  %1521 = vperm.xlu0 %7079, %v1359_v52   ;;  %v2973_v48 = vld [vmem:[%s9053_s6] sm:$0xff] }
  0x73   :  { %5615 = vmatprep.mubr.f32.mxu0 %v87_v50  ;;  %6520 = vmatpush3.bf16.msra.mxu0 %v6517_v43  ;;  %v155_v43 = vld [vmem:[%s9047_s0 + $0x91] sm:$0xff]  ;;  %v109_v52 = vld [vmem:[%s9047_s0 + $0x120] sm:$0xff] }
  0x74   :  { %6522 = vmatprep.subr.bf16.mxu0 %v6521_v51  ;;  %1526 = vperm.xlu1 %7080, %v1360_v55   ;;  %v108_v50 = vld [vmem:[%s9047_s0 + $0x118] sm:$0xff] }
  0x75   :  { %5493 = vmatprep.mubr.f32.mxu1 %v139_v59  ;;  %v159_v55 = vld [vmem:[%s9047_s0 + $0xb1] sm:$0xff]  ;;  %v160_v59 = vld [vmem:[%s9047_s0 + $0xb9] sm:$0xff] }
  0x76   :  { %5616 = vmatmul.mubr.f32.gmra.mrb[14].mxu0 %v88_v54  ;;  %1531 = vperm.xlu0 %7079, %v1361_v58   ;;  %v2975_v54 = vld [vmem:[%s9053_s6 + $0x10] sm:$0xff] }
  0x77   :  { %5618 = vmatprep.mubr.f32.mxu0 %v89_v56  ;;  %6524 = vmatpush3.bf16.msra.mxu0 %v6521_v51  ;;  %v2974_v51 = vld [vmem:[%s9053_s6 + $0x8] sm:$0xff]  ;;  %v111_v58 = vld [vmem:[%s9047_s0 + $0x130] sm:$0xff] }
  0x78   :  { %1536 = vperm.xlu1 %7080, %v1362_v61   ;;  %5494 = vmatmul.mubr.f32.gmra.mrb[2].mxu1 %v140_v63  ;;  %v110_v56 = vld [vmem:[%s9047_s0 + $0x128] sm:$0xff] }
  0x79   :  { %5496 = vmatprep.mubr.f32.mxu1 %v141_v1  ;;  %v161_v61 = vld [vmem:[%s9047_s0 + $0xc1] sm:$0xff]  ;;  %v162_v1 = vld [vmem:[%s9047_s0 + $0xc9] sm:$0xff] }
  0x7a   :  { %5619 = vmatmul.mubr.f32.gmra.mrb[16].mxu0 %v90_v60  ;;  %1541 = vperm.xlu0 %7079, %v1363_v0   ;;  %v2977_v60 = vld [vmem:[%s9053_s6 + $0x20] sm:$0xff]  ;;  %v2978_v63 = vld [vmem:[%s9053_s6 + $0x28] sm:$0xff] }
  0x7b   :  { %5621 = vmatprep.mubr.f32.mxu0 %v91_v62  ;;  %v112_v62 = vld [vmem:[%s9047_s0 + $0x138] sm:$0xff]  ;;  %v113_v0 = vld [vmem:[%s9047_s0 + $0x140] sm:$0xff] }
  0x7c   :  { %1546 = vperm.xlu1 %7080, %v1364_v3   ;;  %5497 = vmatmul.mubr.f32.gmra.mrb[4].mxu1 %v142_v5  ;;  %v163_v3 = vld [vmem:[%s9047_s0 + $0xd1] sm:$0xff] }
  0x7d   :  { %5499 = vmatprep.mubr.f32.mxu1 %v143_v7  ;;  %v2980_v5 = vld [vmem:[%s9053_s6 + $0x38] sm:$0xff] }
  0x7e   :  { %5622 = vmatmul.mubr.f32.gmra.mrb[18].mxu0 %v92_v2  ;;  %1551 = vperm.xlu0 %7079, %v1365_v6   ;;  %v2979_v2 = vld [vmem:[%s9053_s6 + $0x30] sm:$0xff]  ;;  %v164_v7 = vld [vmem:[%s9047_s0 + $0xd9] sm:$0xff] }
  0x7f   :  { %5624 = vmatprep.mubr.f32.mxu0 %v93_v4  ;;  %v114_v4 = vld [vmem:[%s9047_s0 + $0x148] sm:$0xff]  ;;  %v115_v6 = vld [vmem:[%s9047_s0 + $0x150] sm:$0xff] }
  0x80   :  { %1556 = vperm.xlu1 %7080, %v1366_v9   ;;  %5500 = vmatmul.mubr.f32.gmra.mrb[6].mxu1 %v144_v11  ;;  %v165_v9 = vld [vmem:[%s9047_s0 + $0xe1] sm:$0xff] }
  0x81   :  { %5502 = vmatprep.mubr.f32.mxu1 %v145_v13  ;;  %v2982_v11 = vld [vmem:[%s9053_s6 + $0x48] sm:$0xff] }
  0x82   :  { %5625 = vmatmul.mubr.f32.gmra.mrb[20].mxu0 %v94_v8  ;;  %1561 = vperm.xlu0 %7079, %v1367_v12   ;;  %v2981_v8 = vld [vmem:[%s9053_s6 + $0x40] sm:$0xff]  ;;  %v166_v13 = vld [vmem:[%s9047_s0 + $0xe9] sm:$0xff] }
  0x83   :  { %5627 = vmatprep.mubr.f32.mxu0 %v95_v10  ;;  %v116_v10 = vld [vmem:[%s9047_s0 + $0x158] sm:$0xff]  ;;  %v117_v12 = vld [vmem:[%s9047_s0 + $0x160] sm:$0xff] }
  0x84   :  { %1566 = vperm.xlu1 %7080, %v1368_v15   ;;  %5503 = vmatmul.mubr.f32.gmra.mrb[8].mxu1 %v146_v17  ;;  %v167_v15 = vld [vmem:[%s9047_s0 + $0xf1] sm:$0xff] }
  0x85   :  { %5505 = vmatprep.mubr.f32.mxu1 %v147_v19  ;;  %v2984_v17 = vld [vmem:[%s9053_s6 + $0x58] sm:$0xff] }
  0x86   :  { %5628 = vmatmul.mubr.f32.gmra.mrb[22].mxu0 %v96_v14  ;;  %1571 = vperm.xlu0 %7079, %v1369_v18   ;;  %v2983_v14 = vld [vmem:[%s9053_s6 + $0x50] sm:$0xff]  ;;  %v168_v19 = vld [vmem:[%s9047_s0 + $0xf9] sm:$0xff] }
  0x87   :  { %5630 = vmatprep.mubr.f32.mxu0 %v97_v16  ;;  %v118_v16 = vld [vmem:[%s9047_s0 + $0x168] sm:$0xff]  ;;  %v119_v18 = vld [vmem:[%s9047_s0 + $0x170] sm:$0xff] }
  0x88   :  { %1576 = vperm.xlu1 %7080, %v1370_v21   ;;  %5506 = vmatmul.mubr.f32.gmra.mrb[10].mxu1 %v148_v23  ;;  %v169_v21 = vld [vmem:[%s9047_s0 + $0x101] sm:$0xff] }
  0x89   :  { %5508 = vmatprep.mubr.f32.mxu1 %v149_v25  ;;  %v2986_v23 = vld [vmem:[%s9053_s6 + $0x68] sm:$0xff] }
  0x8a   :  { %5631 = vmatmul.mubr.f32.gmra.mrb[24].mxu0 %v98_v20  ;;  %1581 = vperm.xlu0 %7079, %v1371_v24   ;;  %v2985_v20 = vld [vmem:[%s9053_s6 + $0x60] sm:$0xff]  ;;  %v170_v25 = vld [vmem:[%s9047_s0 + $0x109] sm:$0xff] }
  0x8b   :  { %5633 = vmatprep.mubr.f32.mxu0 %v99_v22  ;;  %v120_v22 = vld [vmem:[%s9047_s0 + $0x178] sm:$0xff]  ;;  %v812_v24 = vld [vmem:[%s9047_s0 + $0x2] sm:$0xff] }
  0x8c   :  { %1586 = vperm.xlu1 %7080, %v1372_v27   ;;  %5509 = vmatmul.mubr.f32.gmra.mrb[12].mxu1 %v150_v29  ;;  %v171_v27 = vld [vmem:[%s9047_s0 + $0x111] sm:$0xff] }
  0x8d   :  { %5511 = vmatprep.mubr.f32.mxu1 %v151_v31  ;;  %v2988_v29 = vld [vmem:[%s9053_s6 + $0x78] sm:$0xff] }
  0x8e   :  { %5634 = vmatmul.mubr.f32.gmra.mrb[26].mxu0 %v100_v26  ;;  %1591 = vperm.xlu0 %7079, %v1373_v30   ;;  %v2987_v26 = vld [vmem:[%s9053_s6 + $0x70] sm:$0xff]  ;;  %v172_v31 = vld [vmem:[%s9047_s0 + $0x119] sm:$0xff] }
  0x8f   :  { %5636 = vmatprep.mubr.f32.mxu0 %v101_v28  ;;  %v813_v28 = vld [vmem:[%s9047_s0 + $0xa] sm:$0xff]  ;;  %v814_v30 = vld [vmem:[%s9047_s0 + $0x12] sm:$0xff] }
  0x90   :  { %1596 = vperm.xlu1 %7080, %v1374_v33   ;;  %5512 = vmatmul.mubr.f32.gmra.mrb[14].mxu1 %v152_v35  ;;  %v173_v33 = vld [vmem:[%s9047_s0 + $0x121] sm:$0xff] }
  0x91   :  { %5514 = vmatprep.mubr.f32.mxu1 %v153_v37  ;;  %v2990_v35 = vld [vmem:[%s9053_s6 + $0x88] sm:$0xff] }
  0x92   :  { %5637 = vmatmul.mubr.f32.gmra.mrb[28].mxu0 %v102_v32  ;;  %1601 = vperm.xlu0 %7079, %v1375_v36   ;;  %v2989_v32 = vld [vmem:[%s9053_s6 + $0x80] sm:$0xff]  ;;  %v174_v37 = vld [vmem:[%s9047_s0 + $0x129] sm:$0xff] }
  0x93   :  { %5639 = vmatprep.mubr.f32.mxu0 %v103_v34  ;;  %v815_v34 = vld [vmem:[%s9047_s0 + $0x1a] sm:$0xff]  ;;  %v816_v36 = vld [vmem:[%s9047_s0 + $0x22] sm:$0xff] }
  0x94   :  { %1606 = vperm.xlu1 %7080, %v1376_v39   ;;  %5515 = vmatmul.mubr.f32.gmra.mrb[16].mxu1 %v154_v41  ;;  %v175_v39 = vld [vmem:[%s9047_s0 + $0x131] sm:$0xff] }
  0x95   :  { %5517 = vmatprep.mubr.f32.mxu1 %v155_v43  ;;  %v2992_v41 = vld [vmem:[%s9053_s6 + $0x98] sm:$0xff] }
  0x96   :  { %5640 = vmatmul.mubr.f32.gmra.mrb[30].mxu0 %v104_v38  ;;  %1611 = vperm.xlu0 %7079, %v1377_v42   ;;  %v2991_v38 = vld [vmem:[%s9053_s6 + $0x90] sm:$0xff]  ;;  %v176_v43 = vld [vmem:[%s9047_s0 + $0x139] sm:$0xff] }
  0x97   :  { %5642 = vmatprep.mubr.f32.mxu0 %v105_v40  ;;  %v817_v40 = vld [vmem:[%s9047_s0 + $0x2a] sm:$0xff]  ;;  %v818_v42 = vld [vmem:[%s9047_s0 + $0x32] sm:$0xff] }
  0x98   :  { %1616 = vperm.xlu1 %7080, %v1378_v45   ;;  %5518 = vmatmul.mubr.f32.gmra.mrb[18].mxu1 %v156_v47  ;;  %v177_v45 = vld [vmem:[%s9047_s0 + $0x141] sm:$0xff] }
  0x99   :  { %5520 = vmatprep.mubr.f32.mxu1 %v157_v49  ;;  %v2994_v47 = vld [vmem:[%s9053_s6 + $0xa8] sm:$0xff] }
  0x9a   :  { %5643 = vmatmul.mubr.f32.gmra.mrb[32].mxu0 %v106_v44  ;;  %3023 = vperm.xlu0 %7079, %v2973_v48   ;;  %v2993_v44 = vld [vmem:[%s9053_s6 + $0xa0] sm:$0xff]  ;;  %v178_v49 = vld [vmem:[%s9047_s0 + $0x149] sm:$0xff] }
  0x9b   :  { %5645 = vmatprep.mubr.f32.mxu0 %v107_v46  ;;  %v819_v46 = vld [vmem:[%s9047_s0 + $0x3a] sm:$0xff]  ;;  %v820_v48 = vld [vmem:[%s9047_s0 + $0x42] sm:$0xff] }
  0x9c   :  { %3028 = vperm.xlu1 %7080, %v2974_v51   ;;  %5521 = vmatmul.mubr.f32.gmra.mrb[20].mxu1 %v158_v53  ;;  %v179_v51 = vld [vmem:[%s9047_s0 + $0x151] sm:$0xff] }
  0x9d   :  { %5523 = vmatprep.mubr.f32.mxu1 %v159_v55  ;;  %v2996_v53 = vld [vmem:[%s9053_s6 + $0xb8] sm:$0xff] }
  0x9e   :  { %5646 = vmatmul.mubr.f32.gmra.mrb[34].mxu0 %v108_v50  ;;  %3033 = vperm.xlu0 %7079, %v2975_v54   ;;  %v2995_v50 = vld [vmem:[%s9053_s6 + $0xb0] sm:$0xff]  ;;  %v180_v55 = vld [vmem:[%s9047_s0 + $0x159] sm:$0xff] }
  0x9f   :  { %5648 = vmatprep.mubr.f32.mxu0 %v109_v52  ;;  %v821_v52 = vld [vmem:[%s9047_s0 + $0x4a] sm:$0xff]  ;;  %v822_v54 = vld [vmem:[%s9047_s0 + $0x52] sm:$0xff] }
  0xa0   :  { %3038 = vperm.xlu1 %7080, %v2976_v57   ;;  %5524 = vmatmul.mubr.f32.gmra.mrb[22].mxu1 %v160_v59  ;;  %v181_v57 = vld [vmem:[%s9047_s0 + $0x161] sm:$0xff] }
  0xa1   :  { %5526 = vmatprep.mubr.f32.mxu1 %v161_v61  ;;  %v2998_v59 = vld [vmem:[%s9053_s6 + $0xc8] sm:$0xff] }
  0xa2   :  { %5649 = vmatmul.mubr.f32.gmra.mrb[36].mxu0 %v110_v56  ;;  %3043 = vperm.xlu0 %7079, %v2977_v60   ;;  %v2997_v56 = vld [vmem:[%s9053_s6 + $0xc0] sm:$0xff]  ;;  %v182_v61 = vld [vmem:[%s9047_s0 + $0x169] sm:$0xff] }
  0xa3   :  { %5651 = vmatprep.mubr.f32.mxu0 %v111_v58  ;;  %v823_v58 = vld [vmem:[%s9047_s0 + $0x5a] sm:$0xff]  ;;  %v824_v60 = vld [vmem:[%s9047_s0 + $0x62] sm:$0xff] }
  0xa4   :  { %3048 = vperm.xlu1 %7080, %v2978_v63   ;;  %5527 = vmatmul.mubr.f32.gmra.mrb[24].mxu1 %v162_v1  ;;  %v183_v63 = vld [vmem:[%s9047_s0 + $0x171] sm:$0xff] }
  0xa5   :  { %5529 = vmatprep.mubr.f32.mxu1 %v163_v3  ;;  %v3000_v1 = vld [vmem:[%s9053_s6 + $0xd8] sm:$0xff] }
  0xa6   :  { %5652 = vmatmul.mubr.f32.gmra.mrb[38].mxu0 %v112_v62  ;;  %3053 = vperm.xlu0 %7079, %v2979_v2   ;;  %v2999_v62 = vld [vmem:[%s9053_s6 + $0xd0] sm:$0xff]  ;;  %v184_v3 = vld [vmem:[%s9047_s0 + $0x179] sm:$0xff] }
  0xa7   :  { %5654 = vmatprep.mubr.f32.mxu0 %v113_v0  ;;  %v825_v0 = vld [vmem:[%s9047_s0 + $0x6a] sm:$0xff]  ;;  %v826_v2 = vld [vmem:[%s9047_s0 + $0x72] sm:$0xff] }
  0xa8   :  { %3058 = vperm.xlu1 %7080, %v2980_v5   ;;  %5530 = vmatmul.mubr.f32.gmra.mrb[26].mxu1 %v164_v7  ;;  %v827_v5 = vld [vmem:[%s9047_s0 + $0x7a] sm:$0xff]  ;;  %v828_v7 = vld [vmem:[%s9047_s0 + $0x82] sm:$0xff] }
  0xa9   :  { %5532 = vmatprep.mubr.f32.mxu1 %v165_v9  ;;  %v829_v9 = vld [vmem:[%s9047_s0 + $0x8a] sm:$0xff] }
  0xaa   :  { %5655 = vmatmul.mubr.f32.gmra.mrb[40].mxu0 %v114_v4  ;;  %3063 = vperm.xlu0 %7079, %v2981_v8   ;;  %v3001_v4 = vld [vmem:[%s9053_s6 + $0xe0] sm:$0xff]  ;;  %v3003_v8 = vld [vmem:[%s9053_s6 + $0xf0] sm:$0xff] }
  0xab   :  { %5657 = vmatprep.mubr.f32.mxu0 %v115_v6  ;;  %v3002_v6 = vld [vmem:[%s9053_s6 + $0xe8] sm:$0xff] }
  0xac   :  { %3068 = vperm.xlu1 %7080, %v2982_v11   ;;  %5533 = vmatmul.mubr.f32.gmra.mrb[28].mxu1 %v166_v13  ;;  %v830_v11 = vld [vmem:[%s9047_s0 + $0x92] sm:$0xff]  ;;  %v831_v13 = vld [vmem:[%s9047_s0 + $0x9a] sm:$0xff] }
  0xad   :  { %5535 = vmatprep.mubr.f32.mxu1 %v167_v15  ;;  %v832_v15 = vld [vmem:[%s9047_s0 + $0xa2] sm:$0xff] }
  0xae   :  { %5658 = vmatmul.mubr.f32.gmra.mrb[42].mxu0 %v116_v10  ;;  %3073 = vperm.xlu0 %7079, %v2983_v14   ;;  %v3004_v10 = vld [vmem:[%s9053_s6 + $0xf8] sm:$0xff]  ;;  %v3006_v14 = vld [vmem:[%s9053_s6 + $0x108] sm:$0xff] }
  0xaf   :  { %5660 = vmatprep.mubr.f32.mxu0 %v117_v12  ;;  %v3005_v12 = vld [vmem:[%s9053_s6 + $0x100] sm:$0xff] }
  0xb0   :  { %3078 = vperm.xlu1 %7080, %v2984_v17   ;;  %5536 = vmatmul.mubr.f32.gmra.mrb[30].mxu1 %v168_v19  ;;  %v833_v17 = vld [vmem:[%s9047_s0 + $0xaa] sm:$0xff]  ;;  %v834_v19 = vld [vmem:[%s9047_s0 + $0xb2] sm:$0xff] }
  0xb1   :  { %5538 = vmatprep.mubr.f32.mxu1 %v169_v21  ;;  %v835_v21 = vld [vmem:[%s9047_s0 + $0xba] sm:$0xff] }
  0xb2   :  { %5661 = vmatmul.mubr.f32.gmra.mrb[44].mxu0 %v118_v16  ;;  %3083 = vperm.xlu0 %7079, %v2985_v20   ;;  %v3007_v16 = vld [vmem:[%s9053_s6 + $0x110] sm:$0xff]  ;;  %v3009_v20 = vld [vmem:[%s9053_s6 + $0x120] sm:$0xff] }
  0xb3   :  { %5663 = vmatprep.mubr.f32.mxu0 %v119_v18  ;;  %v3008_v18 = vld [vmem:[%s9053_s6 + $0x118] sm:$0xff] }
  0xb4   :  { %3088 = vperm.xlu1 %7080, %v2986_v23   ;;  %5539 = vmatmul.mubr.f32.gmra.mrb[32].mxu1 %v170_v25  ;;  %v836_v23 = vld [vmem:[%s9047_s0 + $0xc2] sm:$0xff]  ;;  %v1829_v25 = vld [vmem:[#allocation4 + $0x88] sm:$0xff] }
  0xb5   :  { %5541 = vmatprep.mubr.f32.mxu1 %v171_v27  ;;  %v3011_v27 = vld [vmem:[%s9053_s6 + $0x130] sm:$0xff] }
  0xb6   :  { %5664 = vmatmul.mubr.f32.gmra.mrb[46].mxu0 %v120_v22  ;;  %3093 = vperm.xlu0 %7079, %v2987_v26   ;;  %v3010_v22 = vld [vmem:[%s9053_s6 + $0x128] sm:$0xff] }
  0xb7   :  { %5698 = vmatprep.mubr.f32.mxu0 %v812_v24  ;;  %v1828_v24 = vld [vmem:[#allocation4 + $0x80] sm:$0xff] }
  0xb8   :  { %3098 = vperm.xlu1 %7080, %v2988_v29   ;;  %5542 = vmatmul.mubr.f32.gmra.mrb[34].mxu1 %v172_v31  ;;  %v6525_v26 = vpack.c.bf16 %v1829_v25, %v1828_v24  ;;  %v3012_v29 = vld [vmem:[%s9053_s6 + $0x138] sm:$0xff]  ;;  %v3013_v31 = vld [vmem:[%s9053_s6 + $0x140] sm:$0xff] }
  0xb9   :  { %5544 = vmatprep.mubr.f32.mxu1 %v173_v33  ;;  %v3014_v33 = vld [vmem:[%s9053_s6 + $0x148] sm:$0xff] }
  0xba   :  { %5699 = vmatmul.mubr.f32.vlgmr.msra.gmra.mrb[0].mxu0 %v813_v28  ;;  %3103 = vperm.xlu0 %7079, %v2989_v32   ;;  %v837_v28 = vld [vmem:[%s9047_s0 + $0xca] sm:$0xff]  ;;  %v839_v32 = vld [vmem:[%s9047_s0 + $0xda] sm:$0xff] }
  0xbb   :  { %5701 = vmatprep.mubr.f32.mxu0 %v814_v30  ;;  %6526 = vmatprep.subr.bf16.mxu1 %v6525_v26  ;;  %v838_v30 = vld [vmem:[%s9047_s0 + $0xd2] sm:$0xff] }
  0xbc   :  { %3108 = vperm.xlu1 %7080, %v2990_v35   ;;  %5545 = vmatmul.mubr.f32.gmra.mrb[36].mxu1 %v174_v37  ;;  %v1830_v35 = vld [vmem:[#allocation4 + $0x90] sm:$0xff] }
  0xbd   :  { %5547 = vmatprep.mubr.f32.mxu1 %v175_v39  ;;  %6528 = vmatpush3.bf16.msra.mxu1 %v6525_v26  ;;  %v841_v39 = vld [vmem:[%s9047_s0 + $0xea] sm:$0xff] }
  0xbe   :  { %5702 = vmatmul.mubr.f32.gmra.mrb[2].mxu0 %v815_v34  ;;  %3113 = vperm.xlu0 %7079, %v2991_v38   ;;  %v840_v34 = vld [vmem:[%s9047_s0 + $0xe2] sm:$0xff]  ;;  %v3015_v38 = vld [vmem:[%s9053_s6 + $0x150] sm:$0xff] }
  0xbf   :  { %5704 = vmatprep.mubr.f32.mxu0 %v816_v36  ;;  %v1831_v36 = vld [vmem:[#allocation4 + $0x98] sm:$0xff] }
  0xc0   :  { %3118 = vperm.xlu1 %7080, %v2992_v41   ;;  %5548 = vmatmul.mubr.f32.gmra.mrb[38].mxu1 %v176_v43  ;;  %v6529_v37 = vpack.c.bf16 %v1831_v36, %v1830_v35  ;;  %v842_v41 = vld [vmem:[%s9047_s0 + $0xf2] sm:$0xff]  ;;  %v1382_v35 = vpop.permute.xlu0 %1381 }
  0xc1   :  { %5550 = vmatprep.mubr.f32.mxu1 %v177_v45  ;;  %v1833_v43 = vld [vmem:[#allocation4 + $0xa8] sm:$0xff]  ;;  %v3017_v45 = vld [vmem:[%s9053_s6 + $0x160] sm:$0xff] }
  0xc2   :  { %5705 = vmatmul.mubr.f32.gmra.mrb[4].mxu0 %v817_v40  ;;  %3123 = vperm.xlu0 %7079, %v2993_v44   ;;  %v3016_v40 = vld [vmem:[%s9053_s6 + $0x158] sm:$0xff] }
  0xc3   :  { %5707 = vmatprep.mubr.f32.mxu0 %v818_v42  ;;  %6530 = vmatprep.subr.bf16.mxu1 %v6529_v37  ;;  %v1832_v42 = vld [vmem:[#allocation4 + $0xa0] sm:$0xff] }
  0xc4   :  { %3128 = vperm.xlu1 %7080, %v2994_v47   ;;  %5551 = vmatmul.mubr.f32.gmra.mrb[40].mxu1 %v178_v49  ;;  %v6533_v44 = vpack.c.bf16 %v1833_v43, %v1832_v42  ;;  %v3018_v47 = vld [vmem:[%s9053_s6 + $0x168] sm:$0xff]  ;;  %v3019_v49 = vld [vmem:[%s9053_s6 + $0x170] sm:$0xff] }
  0xc5   :  { %5553 = vmatprep.mubr.f32.mxu1 %v179_v51  ;;  %6532 = vmatpush3.bf16.msra.mxu1 %v6529_v37  ;;  %v3020_v51 = vld [vmem:[%s9053_s6 + $0x178] sm:$0xff] }
  0xc6   :  { %5708 = vmatmul.mubr.f32.gmra.mrb[6].mxu0 %v819_v46  ;;  %3133 = vperm.xlu0 %7079, %v2995_v50   ;;  %v843_v46 = vld [vmem:[%s9047_s0 + $0xfa] sm:$0xff]  ;;  %v845_v50 = vld [vmem:[%s9047_s0 + $0x10a] sm:$0xff] }
  0xc7   :  { %5710 = vmatprep.mubr.f32.mxu0 %v820_v48  ;;  %6534 = vmatprep.subr.bf16.mxu1 %v6533_v44  ;;  %v844_v48 = vld [vmem:[%s9047_s0 + $0x102] sm:$0xff] }
  0xc8   :  { %3138 = vperm.xlu1 %7080, %v2996_v53   ;;  %5554 = vmatmul.mubr.f32.gmra.mrb[42].mxu1 %v180_v55  ;;  %v847_v53 = vld [vmem:[%s9047_s0 + $0x11a] sm:$0xff]  ;;  %v849_v55 = vld [vmem:[%s9047_s0 + $0x12a] sm:$0xff] }
  0xc9   :  { %5556 = vmatprep.mubr.f32.mxu1 %v181_v57  ;;  %6536 = vmatpush3.bf16.msra.mxu1 %v6533_v44  ;;  %v851_v57 = vld [vmem:[%s9047_s0 + $0x13a] sm:$0xff] }
  0xca   :  { %5711 = vmatmul.mubr.f32.gmra.mrb[8].mxu0 %v821_v52  ;;  %3143 = vperm.xlu0 %7079, %v2997_v56   ;;  %v846_v52 = vld [vmem:[%s9047_s0 + $0x112] sm:$0xff] }
  0xcb   :  { %5713 = vmatprep.mubr.f32.mxu0 %v822_v54  ;;  %v848_v54 = vld [vmem:[%s9047_s0 + $0x122] sm:$0xff]  ;;  %v850_v56 = vld [vmem:[%s9047_s0 + $0x132] sm:$0xff] }
  0xcc   :  { %3148 = vperm.xlu1 %7080, %v2998_v59   ;;  %5557 = vmatmul.mubr.f32.gmra.mrb[44].mxu1 %v182_v61  ;;  %v853_v59 = vld [vmem:[%s9047_s0 + $0x14a] sm:$0xff]  ;;  %v855_v61 = vld [vmem:[%s9047_s0 + $0x15a] sm:$0xff] }
  0xcd   :  { %5559 = vmatprep.mubr.f32.mxu1 %v183_v63  ;;  %v1834_v63 = vld [vmem:[#allocation4 + $0xb0] sm:$0xff] }
  0xce   :  { %5714 = vmatmul.mubr.f32.gmra.mrb[10].mxu0 %v823_v58  ;;  %3153 = vperm.xlu0 %7079, %v2999_v62   ;;  %v852_v58 = vld [vmem:[%s9047_s0 + $0x142] sm:$0xff] }
  0xcf   :  { %5716 = vmatprep.mubr.f32.mxu0 %v824_v60  ;;  %v854_v60 = vld [vmem:[%s9047_s0 + $0x152] sm:$0xff]  ;;  %v856_v62 = vld [vmem:[%s9047_s0 + $0x162] sm:$0xff] }
  0xd0   :  { %3158 = vperm.xlu1 %7080, %v3000_v1   ;;  %5560 = vmatmul.mubr.f32.gmra.mrb[46].mxu1 %v184_v3  ;;  %v858_v3 = vld [vmem:[%s9047_s0 + $0x172] sm:$0xff] }
  0xd2   :  { %5717 = vmatmul.mubr.f32.gmra.mrb[12].mxu0 %v825_v0  ;;  %3163 = vperm.xlu0 %7079, %v3001_v4   ;;  %v1835_v0 = vld [vmem:[#allocation4 + $0xb8] sm:$0xff]  ;;  %v1836_v4 = vld [vmem:[#allocation4 + $0xc0] sm:$0xff] }
  0xd3   :  { %5719 = vmatprep.mubr.f32.mxu0 %v826_v2  ;;  %v6537_v1 = vpack.c.bf16 %v1835_v0, %v1834_v63  ;;  %v857_v2 = vld [vmem:[%s9047_s0 + $0x16a] sm:$0xff] }
  0xd4   :  { %3168 = vperm.xlu1 %7080, %v3002_v6  }
  0xd5   :  { %6538 = vmatprep.subr.bf16.mxu1 %v6537_v1 }
  0xd6   :  { %5720 = vmatmul.mubr.f32.gmra.mrb[14].mxu0 %v827_v5  ;;  %3173 = vperm.xlu0 %7079, %v3003_v8   ;;  %v1837_v5 = vld [vmem:[#allocation4 + $0xc8] sm:$0xff]  ;;  %v1838_v8 = vld [vmem:[#allocation4 + $0xd0] sm:$0xff] }
  0xd7   :  { %5722 = vmatprep.mubr.f32.mxu0 %v828_v7  ;;  %6540 = vmatpush3.bf16.msra.mxu1 %v6537_v1  ;;  %v6541_v6 = vpack.c.bf16 %v1837_v5, %v1836_v4  ;;  %v859_v7 = vld [vmem:[%s9047_s0 + $0x17a] sm:$0xff] }
  0xd8   :  { %3178 = vperm.xlu1 %7080, %v3004_v10  }
  0xd9   :  { %6542 = vmatprep.subr.bf16.mxu1 %v6541_v6 }
  0xda   :  { %5723 = vmatmul.mubr.f32.gmra.mrb[16].mxu0 %v829_v9  ;;  %3183 = vperm.xlu0 %7079, %v3005_v12   ;;  %v1839_v9 = vld [vmem:[#allocation4 + $0xd8] sm:$0xff]  ;;  %v1841_v12 = vld [vmem:[#allocation4 + $0xe8] sm:$0xff] }
  0xdb   :  { %5725 = vmatprep.mubr.f32.mxu0 %v830_v11  ;;  %6544 = vmatpush3.bf16.msra.mxu1 %v6541_v6  ;;  %v6545_v10 = vpack.c.bf16 %v1839_v9, %v1838_v8  ;;  %v1840_v11 = vld [vmem:[#allocation4 + $0xe0] sm:$0xff]  ;;  %v8237_v6 = vld [vmem:[%s9051_s4] ss:$0 sm:$0xff] }
  0xdc   :  { %3188 = vperm.xlu1 %7080, %v3006_v14   ;;  %v1842_v14 = vld [vmem:[#allocation4 + $0xf0] sm:$0xff] }
  0xdd   :  { %6546 = vmatprep.subr.bf16.mxu1 %v6545_v10 }
  0xde   :  { %5726 = vmatmul.mubr.f32.gmra.mrb[18].mxu0 %v831_v13  ;;  %3193 = vperm.xlu0 %7079, %v3007_v16   ;;  %v6549_v13 = vpack.c.bf16 %v1841_v12, %v1840_v11 }
  0xdf   :  { %5728 = vmatprep.mubr.f32.mxu0 %v832_v15  ;;  %6548 = vmatpush3.bf16.msra.mxu1 %v6545_v10  ;;  %v1843_v15 = vld [vmem:[#allocation4 + $0xf8] sm:$0xff] }
  0xe0   :  { %3198 = vperm.xlu1 %7080, %v3008_v18   ;;  %6550 = vmatprep.subr.bf16.mxu1 %v6549_v13  ;;  %v6553_v16 = vpack.c.bf16 %v1843_v15, %v1842_v14 }
  0xe2   :  { %5729 = vmatmul.mubr.f32.gmra.mrb[20].mxu0 %v833_v17  ;;  %3203 = vperm.xlu0 %7079, %v3009_v20  }
  0xe3   :  { %5731 = vmatprep.mubr.f32.mxu0 %v834_v19  ;;  %6552 = vmatpush3.bf16.msra.mxu1 %v6549_v13 }
  0xe4   :  { %3208 = vperm.xlu1 %7080, %v3010_v22   ;;  %6554 = vmatprep.subr.bf16.mxu1 %v6553_v16 }
  0xe6   :  { %5732 = vmatmul.mubr.f32.gmra.mrb[22].mxu0 %v835_v21  ;;  %3213 = vperm.xlu0 %7079, %v3011_v27  }
  0xe7   :  { %5734 = vmatprep.mubr.f32.mxu0 %v836_v23  ;;  %6556 = vmatpush3.bf16.msra.mxu1 %v6553_v16 }
  0xe8   :  { %3218 = vperm.xlu1 %7080, %v3012_v29   ;;  %v1763_v29 = vld [vmem:[#allocation4] sm:$0xff] }
  0xea   :  { %5735 = vmatmul.mubr.f32.gmra.mrb[24].mxu0 %v837_v28  ;;  %3223 = vperm.xlu0 %7079, %v3013_v31  }
  0xeb   :  { %5737 = vmatprep.mubr.f32.mxu0 %v838_v30  ;;  %v1764_v30 = vld [vmem:[#allocation4 + $0x8] sm:$0xff] }
  0xec   :  { %3228 = vperm.xlu1 %7080, %v3014_v33   ;;  %v8163_v31 = vpack.c.bf16 %v1764_v30, %v1763_v29 }
  0xee   :  { %5738 = vmatmul.mubr.f32.gmra.mrb[26].mxu0 %v839_v32  ;;  %3233 = vperm.xlu0 %7079, %v3015_v38  }
  0xef   :  { %5740 = vmatprep.mubr.f32.mxu0 %v840_v34  ;;  %6558 = vmatprep.subr.bf16.mxu1 %v8163_v31  ;;  %v8170_v34 = vpop.permute.xlu1 %1391 }
  0xf0   :  { %3238 = vperm.xlu1 %7080, %v3016_v40   ;;  %v1387_v40 = vpop.permute.xlu0 %1386 }
  0xf2   :  { %5741 = vmatmul.mubr.f32.gmra.mrb[28].mxu0 %v841_v39  ;;  %3243 = vperm.xlu0 %7079, %v3017_v45  }
  0xf3   :  { %5743 = vmatprep.mubr.f32.mxu0 %v842_v41  ;;  %v8176_v38 = vpop.permute.xlu1 %1396 }
  0xf4   :  { %3248 = vperm.xlu1 %7080, %v3018_v47   ;;  %v8188_v45 = vpop.permute.xlu0 %1401 }
  0xf6   :  { %5744 = vmatmul.mubr.f32.gmra.mrb[30].mxu0 %v843_v46  ;;  %3253 = vperm.xlu0 %7079, %v3019_v49   ;;  %v7183_v46 = vmov 0.0  }
  0xf7   :  { %5746 = vmatprep.mubr.f32.mxu0 %v844_v48  ;;  %v8186_v44 = vpop.permute.xlu1 %1406  ;;  %71 = vst [vmem:[#allocation2 + $0x180] sm:$0xff] %v7183_v46  ;;  %72 = vst [vmem:[#allocation3 + $0x180] sm:$0xff] %v7183_v46 }
  0xf8   :  { %3258 = vperm.xlu1 %7080, %v3020_v51   ;;  %v8198_v51 = vpop.permute.xlu0 %1411 }
  0xfa   :  { %5747 = vmatmul.mubr.f32.gmra.mrb[32].mxu0 %v845_v50 }
  0xfb   :  { %5749 = vmatprep.mubr.f32.mxu0 %v846_v52  ;;  %v8194_v49 = vpop.permute.xlu1 %1416 }
  0xfe   :  { %5750 = vmatmul.mubr.f32.gmra.mrb[34].mxu0 %v847_v53 }
  0xff   :  { %5752 = vmatprep.mubr.f32.mxu0 %v848_v54 }
 0x102   :  { %5753 = vmatmul.mubr.f32.gmra.mrb[36].mxu0 %v849_v55  ;;  %v8206_v55 = vpop.permute.xlu1 %1426 }
 0x103   :  { %5755 = vmatprep.mubr.f32.mxu0 %v850_v56  ;;  %v8208_v56 = vpop.permute.xlu0 %1421 }
 0x106   :  { %5756 = vmatmul.mubr.f32.gmra.mrb[38].mxu0 %v851_v57 }
 0x107   :  { %5758 = vmatprep.mubr.f32.mxu0 %v852_v58 }
 0x10a   :  { %5759 = vmatmul.mubr.f32.gmra.mrb[40].mxu0 %v853_v59  ;;  %v8214_v59 = vpop.permute.xlu1 %1436 }
 0x10b   :  { %5761 = vmatprep.mubr.f32.mxu0 %v854_v60 }
 0x10e   :  { %5762 = vmatmul.mubr.f32.gmra.mrb[42].mxu0 %v855_v61  ;;  %v8218_v61 = vpop.permute.xlu0 %1431  ;;  %v8226_v1 = vpop.permute.xlu1 %1446 }
 0x10f   :  { %5764 = vmatprep.mubr.f32.mxu0 %v856_v62 }
 0x112   :  { %5765 = vmatmul.mubr.f32.gmra.mrb[44].mxu0 %v857_v2  ;;  %v8228_v2 = vpop.permute.xlu0 %1441  ;;  %v8239_v9 = vpop.permute.xlu1 %1456 }
 0x113   :  { %5767 = vmatprep.mubr.f32.mxu0 %v858_v3 }
 0x116   :  { %5768 = vmatmul.mubr.f32.gmra.mrb[46].mxu0 %v859_v7  ;;  %v8243_v12 = vpop.permute.xlu0 %1451 }
 0x144   :  { %v5492_v17 = vpop.f32.mrb[0].mxu1 }
 0x145   :  { %v268_v18 = vpop.f32.mrb[1].mxu1 }
 0x14b   :  { %v8143_v19 = vpop.f32.mrb[2].mxu1 }
 0x14c   :  { %v8145_v20 = vpop.f32.mrb[3].mxu1 }
 0x14f   :  { %v8147_v21 = vpop.f32.mrb[4].mxu1 }
 0x150   :  { %v8149_v22 = vpop.f32.mrb[5].mxu1 }
 0x153   :  { %v8151_v23 = vpop.f32.mrb[6].mxu1 }
 0x154   :  { %v8153_v24 = vpop.f32.mrb[7].mxu1 }
 0x157   :  { %v8155_v25 = vpop.f32.mrb[8].mxu1 }
 0x158   :  { %v8157_v26 = vpop.f32.mrb[9].mxu1 }
 0x15b   :  { %v8159_v27 = vpop.f32.mrb[10].mxu1 }
 0x15c   :  { %v8161_v28 = vpop.f32.mrb[11].mxu1 }
 0x15f   :  { %v8165_v32 = vpop.f32.mrb[12].mxu1 }
 0x160   :  { %v8168_v33 = vpop.f32.mrb[13].mxu1 }
 0x163   :  { %v8172_v36 = vpop.f32.mrb[14].mxu1 }
 0x164   :  { %v8174_v37 = vpop.f32.mrb[15].mxu1 }
 0x167   :  { %v8178_v39 = vpop.f32.mrb[16].mxu1 }
 0x168   :  { %v8180_v41 = vpop.f32.mrb[17].mxu1 }
 0x16b   :  { %v8182_v42 = vpop.f32.mrb[18].mxu1 }
 0x16c   :  { %v8184_v43 = vpop.f32.mrb[19].mxu1 }
 0x16f   :  { %v8190_v47 = vpop.f32.mrb[20].mxu1 }
 0x170   :  { %v8192_v48 = vpop.f32.mrb[21].mxu1 }
 0x173   :  { %v8196_v50 = vpop.f32.mrb[22].mxu1 }
 0x174   :  { %v8200_v52 = vpop.f32.mrb[23].mxu1 }
 0x177   :  { %v8202_v53 = vpop.f32.mrb[24].mxu1 }
 0x178   :  { %v8204_v54 = vpop.f32.mrb[25].mxu1 }
 0x17b   :  { %v8210_v57 = vpop.f32.mrb[26].mxu1 }
 0x17c   :  { %v8212_v58 = vpop.f32.mrb[27].mxu1 }
 0x17f   :  { %v8216_v60 = vpop.f32.mrb[28].mxu1 }
 0x180   :  { %v8220_v62 = vpop.f32.mrb[29].mxu1 }
 0x183   :  { %v8222_v63 = vpop.f32.mrb[30].mxu1 }
 0x184   :  { %v8224_v0 = vpop.f32.mrb[31].mxu1 }
 0x187   :  { %v8230_v3 = vpop.f32.mrb[32].mxu1 }
 0x188   :  { %v8232_v4 = vpop.f32.mrb[33].mxu1 }
 0x189   :  { %9065 = vst [vmem:[#allocation14_spill] sm:$0xff] %v8232_v4 }
 0x18b   :  { %v8241_v11 = vpop.f32.mrb[34].mxu1 }
 0x18c   :  { %9066 = vst [vmem:[#allocation15_spill] sm:$0xff] %v8241_v11  ;;  %v8246_v14 = vpop.f32.mrb[35].mxu1 }
 0x18d   :  { %v5700_v5 = vpop.f32.mrb[0].mxu0  ;;  %9067 = vst [vmem:[#allocation16_spill] sm:$0xff] %v8246_v14 }
 0x18e   :  { %v6781_v7 = vadd.f32 %v5700_v5, %v5492_v17  ;;  %v943_v8 = vpop.f32.mrb[1].mxu0 }
 0x18f   :  { %v6782_v10 = vadd.f32 %v943_v8, %v268_v18  ;;  %v8251_v4 = vpop.f32.mrb[36].mxu1 }
 0x190   :  { %v1236_v13 = vadd.f32 %v6781_v7, %v8237_v6  ;;  %v8256_v11 = vpop.f32.mrb[37].mxu1  ;;  %v8258_v7 = vpop.permute.xlu1 %1466 }
 0x191   :  { %v1235_v15 = vadd.f32 %v6782_v10, %v8237_v6  ;;  %v5703_v16 = vpop.f32.mrb[2].mxu0 }
 0x192   :  { %v1284_v29 = vmax.f32 %v1236_v13, 0.0  ;;  %v6783_v30 = vadd.f32 %v5703_v16, %v8143_v19  ;;  %v953_v46 = vpop.f32.mrb[3].mxu0  ;;  %v8263_v19 = vpop.permute.xlu0 %1461 }
 0x193   :  { %v1283_v17 = vmax.f32 %v1235_v15, 0.0  ;;  %v6784_v5 = vadd.f32 %v953_v46, %v8145_v20 }
 0x194   :  { %v8253_v18 = vmul.f32 %v1387_v40, %v1284_v29  ;;  %v1238_v8 = vadd.f32 %v6783_v30, %v8237_v6  ;;  %v8269_v30 = vpop.f32.mrb[38].mxu1 }
 0x195   :  { %v8260_v14 = vmul.f32 %v1382_v35, %v1283_v17  ;;  %v1237_v10 = vadd.f32 %v6784_v5, %v8237_v6  ;;  %v5706_v13 = vpop.f32.mrb[4].mxu0  ;;  %v8275_v17 = vpop.f32.mrb[39].mxu1 }
 0x196   :  { %9068 = vst [vmem:[#allocation17_spill] sm:$0xff] %v8253_v18  ;;  %1668 = vst [vmem:[#allocation2 + $0x8] sm:$0xff] %v8253_v18  ;;  %v1286_v20 = vmax.f32 %v1238_v8, 0.0  ;;  %v6785_v15 = vadd.f32 %v5706_v13, %v8147_v21  ;;  %v963_v40 = vpop.f32.mrb[5].mxu0  ;;  %v1765_v18 = vld [vmem:[#allocation4 + $0x10] sm:$0xff] }
 0x197   :  { %9069 = vst [vmem:[#allocation18_spill] sm:$0xff] %v8260_v14  ;;  %1667 = vst [vmem:[#allocation2] sm:$0xff] %v8260_v14  ;;  %v1285_v16 = vmax.f32 %v1237_v10, 0.0  ;;  %v6786_v29 = vadd.f32 %v963_v40, %v8149_v22  ;;  %v8283_v40 = vpop.permute.xlu1 %1476 }
 0x198   :  { %v8272_v35 = vmul.f32 %v8176_v38, %v1286_v20  ;;  %v1240_v46 = vadd.f32 %v6785_v15, %v8237_v6  ;;  %v8287_v15 = vpop.f32.mrb[40].mxu1 }
 0x199   :  { %v8278_v5 = vmul.f32 %v8170_v34, %v1285_v16  ;;  %v1239_v21 = vadd.f32 %v6786_v29, %v8237_v6  ;;  %v5709_v8 = vpop.f32.mrb[6].mxu0  ;;  %v8289_v34 = vpop.permute.xlu0 %1471 }
 0x19a   :  { %9070 = vst [vmem:[#allocation19_spill] sm:$0xff] %v8272_v35  ;;  %1670 = vst [vmem:[#allocation2 + $0x18] sm:$0xff] %v8272_v35  ;;  %v1288_v10 = vmax.f32 %v1240_v46, 0.0  ;;  %v6787_v22 = vadd.f32 %v5709_v8, %v8151_v23  ;;  %v973_v13 = vpop.f32.mrb[7].mxu0  ;;  %v8295_v46 = vpop.f32.mrb[41].mxu1 }
 0x19b   :  { %9071 = vst [vmem:[#allocation20_spill] sm:$0xff] %v8278_v5  ;;  %1669 = vst [vmem:[#allocation2 + $0x10] sm:$0xff] %v8278_v5  ;;  %v1287_v38 = vmax.f32 %v1239_v21, 0.0  ;;  %v6788_v20 = vadd.f32 %v973_v13, %v8153_v24 }
 0x19c   :  { %v8292_v16 = vmul.f32 %v8186_v44, %v1288_v10  ;;  %v1242_v29 = vadd.f32 %v6787_v22, %v8237_v6  ;;  %v1766_v44 = vld [vmem:[#allocation4 + $0x18] sm:$0xff] }
 0x19d   :  { %v8298_v23 = vmul.f32 %v8188_v45, %v1287_v38  ;;  %v1241_v8 = vadd.f32 %v6788_v20, %v8237_v6  ;;  %v5712_v35 = vpop.f32.mrb[8].mxu0  ;;  %v8305_v45 = vpop.f32.mrb[42].mxu1 }
 0x19e   :  { %9072 = vst [vmem:[#allocation21_spill] sm:$0xff] %v8292_v16  ;;  %1672 = vst [vmem:[#allocation2 + $0x28] sm:$0xff] %v8292_v16  ;;  %v1290_v24 = vmax.f32 %v1242_v29, 0.0  ;;  %v6789_v21 = vadd.f32 %v5712_v35, %v8155_v25  ;;  %v983_v13 = vpop.f32.mrb[9].mxu0  ;;  %v1779_v5 = vld [vmem:[#allocation2 + $0x1] sm:$0xff]  ;;  %v8311_v29 = vpop.f32.mrb[43].mxu1 }
 0x19f   :  { %9073 = vst [vmem:[#allocation22_spill] sm:$0xff] %v8298_v23  ;;  %1671 = vst [vmem:[#allocation2 + $0x20] sm:$0xff] %v8298_v23  ;;  %v1289_v10 = vmax.f32 %v1241_v8, 0.0  ;;  %v6790_v22 = vadd.f32 %v983_v13, %v8157_v26  ;;  %5802 = vmatprep.mubr.f32.mxu1 %v1779_v5  ;;  %v8313_v25 = vpop.permute.xlu1 %1486  ;;  %v6561_v23 = vpack.c.bf16 %v1766_v44, %v1765_v18  ;;  %v1767_v26 = vld [vmem:[#allocation4 + $0x20] sm:$0xff]  ;;  %v8319_v5 = vpop.permute.xlu0 %1481 }
 0x1a0   :  { %v8308_v38 = vmul.f32 %v8194_v49, %v1290_v24  ;;  %v1244_v20 = vadd.f32 %v6789_v21, %v8237_v6  ;;  %9075 = vst [vmem:[#allocation24_spill] sm:$0xff] %v8311_v29  ;;  %v1768_v29 = vld [vmem:[#allocation4 + $0x28] sm:$0xff] }
 0x1a1   :  { %v8316_v35 = vmul.f32 %v8198_v51, %v1289_v10  ;;  %v1243_v16 = vadd.f32 %v6790_v22, %v8237_v6  ;;  %v5715_v8 = vpop.f32.mrb[10].mxu0  ;;  %v8325_v22 = vpop.f32.mrb[44].mxu1 }
 0x1a2   :  { %9074 = vst [vmem:[#allocation23_spill] sm:$0xff] %v8308_v38  ;;  %1674 = vst [vmem:[#allocation2 + $0x38] sm:$0xff] %v8308_v38  ;;  %v1292_v49 = vmax.f32 %v1244_v20, 0.0  ;;  %v6791_v24 = vadd.f32 %v5715_v8, %v8159_v27  ;;  %v993_v21 = vpop.f32.mrb[11].mxu0  ;;  %v1780_v13 = vld [vmem:[#allocation2 + $0x9] sm:$0xff]  ;;  %v1781_v14 = vld [vmem:[#allocation2 + $0x11] sm:$0xff] }
 0x1a3   :  { %1673 = vst [vmem:[#allocation2 + $0x30] sm:$0xff] %v8316_v35  ;;  %v1291_v51 = vmax.f32 %v1243_v16, 0.0  ;;  %v6792_v10 = vadd.f32 %v993_v21, %v8161_v28  ;;  %5803 = vmatmul.mubr.f32.vlgmr.msra.gmra.mrb[48].mxu1 %v1780_v13  ;;  %v8332_v27 = vpop.f32.mrb[45].mxu1  ;;  %v6565_v28 = vpack.c.bf16 %v1768_v29, %v1767_v26  ;;  %v1769_v21 = vld [vmem:[#allocation4 + $0x30] sm:$0xff]  ;;  %v8340_v38 = vpop.permute.xlu1 %1496 }
 0x1a4   :  { %v8328_v18 = vmul.f32 %v8206_v55, %v1292_v49  ;;  %v1246_v44 = vadd.f32 %v6791_v24, %v8237_v6  ;;  %5805 = vmatprep.mubr.f32.mxu1 %v1781_v14  ;;  %6560 = vmatpush3.bf16.msra.mxu1 %v8163_v31  ;;  %v1770_v31 = vld [vmem:[#allocation4 + $0x38] sm:$0xff]  ;;  %v8346_v29 = vpop.permute.xlu0 %1491 }
 0x1a5   :  { %v8335_v20 = vmul.f32 %v8208_v56, %v1291_v51  ;;  %v1245_v16 = vadd.f32 %v6792_v10, %v8237_v6  ;;  %v5718_v8 = vpop.f32.mrb[12].mxu0  ;;  %6562 = vmatprep.subr.bf16.mxu1 %v6561_v23  ;;  %v8344_v10 = vpop.f32.mrb[46].mxu1 }
 0x1a6   :  { %9076 = vst [vmem:[#allocation25_spill] sm:$0xff] %v8328_v18  ;;  %1676 = vst [vmem:[#allocation2 + $0x48] sm:$0xff] %v8328_v18  ;;  %v1294_v55 = vmax.f32 %v1246_v44, 0.0  ;;  %v6793_v49 = vadd.f32 %v5718_v8, %v8165_v32  ;;  %v1003_v24 = vpop.f32.mrb[13].mxu0  ;;  %v1782_v14 = vld [vmem:[#allocation2 + $0x19] sm:$0xff]  ;;  %v1783_v13 = vld [vmem:[#allocation2 + $0x21] sm:$0xff] }
 0x1a7   :  { %9077 = vst [vmem:[#allocation26_spill] sm:$0xff] %v8335_v20  ;;  %1675 = vst [vmem:[#allocation2 + $0x40] sm:$0xff] %v8335_v20  ;;  %v1293_v56 = vmax.f32 %v1245_v16, 0.0  ;;  %v6794_v51 = vadd.f32 %v1003_v24, %v8168_v33  ;;  %5806 = vmatmul.mubr.f32.gmra.mrb[50].mxu1 %v1782_v14  ;;  %v8352_v44 = vpop.f32.mrb[47].mxu1  ;;  %v6569_v24 = vpack.c.bf16 %v1770_v31, %v1769_v21  ;;  %v1771_v14 = vld [vmem:[#allocation4 + $0x40] sm:$0xff]  ;;  %v8366_v31 = vpop.permute.xlu1 %1506 }
 0x1a8   :  { %v8349_v26 = vmul.f32 %v8214_v59, %v1294_v55  ;;  %v1248_v32 = vadd.f32 %v6793_v49, %v8237_v6  ;;  %5808 = vmatprep.mubr.f32.mxu1 %v1783_v13  ;;  %6564 = vmatpush3.bf16.msra.mxu1 %v6561_v23  ;;  %v1772_v23 = vld [vmem:[#allocation4 + $0x48] sm:$0xff] }
 0x1a9   :  { %v8355_v8 = vmul.f32 %v8218_v61, %v1293_v56  ;;  %v1247_v16 = vadd.f32 %v6794_v51, %v8237_v6  ;;  %v5721_v33 = vpop.f32.mrb[14].mxu0  ;;  %6566 = vmatprep.subr.bf16.mxu1 %v6565_v28 }
 0x1aa   :  { %1678 = vst [vmem:[#allocation2 + $0x58] sm:$0xff] %v8349_v26  ;;  %v1296_v18 = vmax.f32 %v1248_v32, 0.0  ;;  %v6795_v59 = vadd.f32 %v5721_v33, %v8172_v36  ;;  %v1013_v55 = vpop.f32.mrb[15].mxu0  ;;  %v1784_v49 = vld [vmem:[#allocation2 + $0x29] sm:$0xff]  ;;  %v1785_v13 = vld [vmem:[#allocation2 + $0x31] sm:$0xff]  ;;  %v1773_v33 = vld [vmem:[#allocation4 + $0x50] sm:$0xff] }
 0x1ab   :  { %1677 = vst [vmem:[#allocation2 + $0x50] sm:$0xff] %v8355_v8  ;;  %v1295_v20 = vmax.f32 %v1247_v16, 0.0  ;;  %v6796_v61 = vadd.f32 %v1013_v55, %v8174_v37  ;;  %5809 = vmatmul.mubr.f32.gmra.mrb[52].mxu1 %v1784_v49  ;;  %v6573_v16 = vpack.c.bf16 %v1772_v23, %v1771_v14  ;;  %v8372_v37 = vpop.permute.xlu0 %1501  ;;  %v1774_v49 = vld [vmem:[#allocation4 + $0x58] sm:$0xff] }
 0x1ac   :  { %v8363_v56 = vmul.f32 %v8226_v1, %v1296_v18  ;;  %v1250_v21 = vadd.f32 %v6795_v59, %v8237_v6  ;;  %5811 = vmatprep.mubr.f32.mxu1 %v1785_v13  ;;  %6568 = vmatpush3.bf16.msra.mxu1 %v6565_v28 }
 0x1ad   :  { %v8369_v36 = vmul.f32 %v8228_v2, %v1295_v20  ;;  %v1249_v51 = vadd.f32 %v6796_v61, %v8237_v6  ;;  %v5724_v32 = vpop.f32.mrb[16].mxu0  ;;  %6570 = vmatprep.subr.bf16.mxu1 %v6569_v24 }
 0x1ae   :  { %1680 = vst [vmem:[#allocation2 + $0x68] sm:$0xff] %v8363_v56  ;;  %v1298_v1 = vmax.f32 %v1250_v21, 0.0  ;;  %v6797_v18 = vadd.f32 %v5724_v32, %v8178_v39  ;;  %v1023_v59 = vpop.f32.mrb[17].mxu0  ;;  %v1786_v28 = vld [vmem:[#allocation2 + $0x39] sm:$0xff]  ;;  %v1787_v55 = vld [vmem:[#allocation2 + $0x41] sm:$0xff]  ;;  %v6577_v21 = vpack.c.bf16 %v1774_v49, %v1773_v33  ;;  %v1775_v32 = vld [vmem:[#allocation4 + $0x60] sm:$0xff] }
 0x1af   :  { %1679 = vst [vmem:[#allocation2 + $0x60] sm:$0xff] %v8369_v36  ;;  %v1297_v2 = vmax.f32 %v1249_v51, 0.0  ;;  %v6798_v20 = vadd.f32 %v1023_v59, %v8180_v41  ;;  %5812 = vmatmul.mubr.f32.gmra.mrb[54].mxu1 %v1786_v28  ;;  %v8388_v28 = vpop.permute.xlu1 %1516 }
 0x1b0   :  { %v8379_v14 = vmul.f32 %v8239_v9, %v1298_v1  ;;  %v1252_v13 = vadd.f32 %v6797_v18, %v8237_v6  ;;  %5814 = vmatprep.mubr.f32.mxu1 %v1787_v55  ;;  %6572 = vmatpush3.bf16.msra.mxu1 %v6569_v24  ;;  %v1776_v18 = vld [vmem:[#allocation4 + $0x68] sm:$0xff]  ;;  %v8392_v55 = vpop.permute.xlu0 %1511 }
 0x1b1   :  { %v8383_v23 = vmul.f32 %v8243_v12, %v1297_v2  ;;  %v1251_v39 = vadd.f32 %v6798_v20, %v8237_v6  ;;  %v5727_v61 = vpop.f32.mrb[18].mxu0  ;;  %6574 = vmatprep.subr.bf16.mxu1 %v6573_v16 }
 0x1b2   :  { %1682 = vst [vmem:[#allocation2 + $0x78] sm:$0xff] %v8379_v14  ;;  %v1300_v41 = vmax.f32 %v1252_v13, 0.0  ;;  %v6799_v51 = vadd.f32 %v5727_v61, %v8182_v42  ;;  %v1033_v9 = vpop.f32.mrb[19].mxu0  ;;  %v1788_v1 = vld [vmem:[#allocation2 + $0x49] sm:$0xff]  ;;  %v1789_v59 = vld [vmem:[#allocation2 + $0x51] sm:$0xff]  ;;  %v6581_v13 = vpack.c.bf16 %v1776_v18, %v1775_v32 }
 0x1b3   :  { %1681 = vst [vmem:[#allocation2 + $0x70] sm:$0xff] %v8383_v23  ;;  %v1299_v12 = vmax.f32 %v1251_v39, 0.0  ;;  %v6800_v24 = vadd.f32 %v1033_v9, %v8184_v43  ;;  %5815 = vmatmul.mubr.f32.gmra.mrb[56].mxu1 %v1788_v1  ;;  %v1777_v39 = vld [vmem:[#allocation4 + $0x70] sm:$0xff] }
 0x1b4   :  { %v8395_v33 = vmul.f32 %v8258_v7, %v1300_v41  ;;  %v1254_v49 = vadd.f32 %v6799_v51, %v8237_v6  ;;  %5817 = vmatprep.mubr.f32.mxu1 %v1789_v59  ;;  %6576 = vmatpush3.bf16.msra.mxu1 %v6573_v16  ;;  %v1778_v51 = vld [vmem:[#allocation4 + $0x78] sm:$0xff]  ;;  %v8410_v59 = vpop.permute.xlu1 %1526 }
 0x1b5   :  { %v8399_v42 = vmul.f32 %v8263_v19, %v1299_v12  ;;  %v1253_v2 = vadd.f32 %v6800_v24, %v8237_v6  ;;  %v5730_v20 = vpop.f32.mrb[20].mxu0  ;;  %6578 = vmatprep.subr.bf16.mxu1 %v6577_v21  ;;  %v6585_v24 = vpack.c.bf16 %v1778_v51, %v1777_v39 }
 0x1b6   :  { %1684 = vst [vmem:[#allocation2 + $0x88] sm:$0xff] %v8395_v33  ;;  %v1302_v43 = vmax.f32 %v1254_v49, 0.0  ;;  %v6801_v61 = vadd.f32 %v5730_v20, %v8190_v47  ;;  %v1043_v7 = vpop.f32.mrb[21].mxu0  ;;  %v1790_v41 = vld [vmem:[#allocation2 + $0x59] sm:$0xff]  ;;  %v1791_v9 = vld [vmem:[#allocation2 + $0x61] sm:$0xff]  ;;  %v8416_v49 = vpop.permute.xlu0 %1521 }
 0x1b7   :  { %1683 = vst [vmem:[#allocation2 + $0x80] sm:$0xff] %v8399_v42  ;;  %v1301_v16 = vmax.f32 %v1253_v2, 0.0  ;;  %v6802_v19 = vadd.f32 %v1043_v7, %v8192_v48  ;;  %5818 = vmatmul.mubr.f32.gmra.mrb[58].mxu1 %v1790_v41 }
 0x1b8   :  { %v8407_v1 = vmul.f32 %v8283_v40, %v1302_v43  ;;  %v1256_v32 = vadd.f32 %v6801_v61, %v8237_v6  ;;  %5820 = vmatprep.mubr.f32.mxu1 %v1791_v9  ;;  %6580 = vmatpush3.bf16.msra.mxu1 %v6577_v21 }
 0x1b9   :  { %v8413_v47 = vmul.f32 %v8289_v34, %v1301_v16  ;;  %v1255_v18 = vadd.f32 %v6802_v19, %v8237_v6  ;;  %v5733_v12 = vpop.f32.mrb[22].mxu0  ;;  %6582 = vmatprep.subr.bf16.mxu1 %v6581_v13  ;;  %v8432_v19 = vpop.permute.xlu1 %1536 }
 0x1ba   :  { %1686 = vst [vmem:[#allocation2 + $0x98] sm:$0xff] %v8407_v1  ;;  %v1304_v48 = vmax.f32 %v1256_v32, 0.0  ;;  %v6803_v40 = vadd.f32 %v5733_v12, %v8196_v50  ;;  %v1053_v2 = vpop.f32.mrb[23].mxu0  ;;  %v1792_v20 = vld [vmem:[#allocation2 + $0x69] sm:$0xff]  ;;  %v1793_v21 = vld [vmem:[#allocation2 + $0x71] sm:$0xff]  ;;  %v8436_v32 = vpop.permute.xlu0 %1531 }
 0x1bb   :  { %1685 = vst [vmem:[#allocation2 + $0x90] sm:$0xff] %v8413_v47  ;;  %v1303_v43 = vmax.f32 %v1255_v18, 0.0  ;;  %v6804_v34 = vadd.f32 %v1053_v2, %v8200_v52  ;;  %5821 = vmatmul.mubr.f32.gmra.mrb[60].mxu1 %v1792_v20 }
 0x1bc   :  { %v8423_v61 = vmul.f32 %v8313_v25, %v1304_v48  ;;  %v1258_v39 = vadd.f32 %v6803_v40, %v8237_v6  ;;  %5823 = vmatprep.mubr.f32.mxu1 %v1793_v21  ;;  %6584 = vmatpush3.bf16.msra.mxu1 %v6581_v13  ;;  %v2504_v48 = vld [vmem:[#allocation4 + $0x108] sm:$0xff] }
 0x1bd   :  { %v8427_v7 = vmul.f32 %v8319_v5, %v1303_v43  ;;  %v1257_v50 = vadd.f32 %v6804_v34, %v8237_v6  ;;  %v5736_v41 = vpop.f32.mrb[24].mxu0  ;;  %6586 = vmatprep.subr.bf16.mxu1 %v6585_v24 }
 0x1be   :  { %1688 = vst [vmem:[#allocation2 + $0xa8] sm:$0xff] %v8423_v61  ;;  %v1306_v9 = vmax.f32 %v1258_v39, 0.0  ;;  %v6805_v52 = vadd.f32 %v5736_v41, %v8202_v53  ;;  %v1063_v51 = vpop.f32.mrb[25].mxu0  ;;  %v1794_v16 = vld [vmem:[#allocation2 + $0x79] sm:$0xff]  ;;  %v1795_v25 = vld [vmem:[#allocation2 + $0x81] sm:$0xff]  ;;  %v2503_v53 = vld [vmem:[#allocation4 + $0x100] sm:$0xff] }
 0x1bf   :  { %1687 = vst [vmem:[#allocation2 + $0xa0] sm:$0xff] %v8427_v7  ;;  %v1305_v13 = vmax.f32 %v1257_v50, 0.0  ;;  %v6806_v5 = vadd.f32 %v1063_v51, %v8204_v54  ;;  %5824 = vmatmul.mubr.f32.gmra.mrb[62].mxu1 %v1794_v16  ;;  %v8446_v21 = vpack.c.bf16 %v2504_v48, %v2503_v53  ;;  %v8463_v16 = vpop.permute.xlu0 %1541 }
 0x1c0   :  { %v8439_v18 = vmul.f32 %v8340_v38, %v1306_v9  ;;  %v1260_v12 = vadd.f32 %v6805_v52, %v8237_v6  ;;  %5826 = vmatprep.mubr.f32.mxu1 %v1795_v25  ;;  %6588 = vmatpush3.bf16.msra.mxu1 %v6585_v24  ;;  %v8457_v9 = vpop.permute.xlu1 %1546 }
 0x1c1   :  { %v8443_v40 = vmul.f32 %v8346_v29, %v1305_v13  ;;  %v1259_v2 = vadd.f32 %v6806_v5, %v8237_v6  ;;  %v5739_v20 = vpop.f32.mrb[26].mxu0  ;;  %6590 = vmatprep.subr.bf16.mxu1 %v8446_v21 }
 0x1c2   :  { %1690 = vst [vmem:[#allocation2 + $0xb8] sm:$0xff] %v8439_v18  ;;  %v1308_v54 = vmax.f32 %v1260_v12, 0.0  ;;  %v6807_v38 = vadd.f32 %v5739_v20, %v8210_v57  ;;  %v1073_v43 = vpop.f32.mrb[27].mxu0  ;;  %v1796_v34 = vld [vmem:[#allocation2 + $0x89] sm:$0xff]  ;;  %v1797_v39 = vld [vmem:[#allocation2 + $0x91] sm:$0xff] }
 0x1c3   :  { %1689 = vst [vmem:[#allocation2 + $0xb0] sm:$0xff] %v8443_v40  ;;  %v1307_v24 = vmax.f32 %v1259_v2, 0.0  ;;  %v6808_v50 = vadd.f32 %v1073_v43, %v8212_v58  ;;  %5827 = vmatmul.mubr.f32.gmra.mrb[64].mxu1 %v1796_v34 }
 0x1c4   :  { %v8454_v29 = vmul.f32 %v8366_v31, %v1308_v54  ;;  %v1262_v41 = vadd.f32 %v6807_v38, %v8237_v6  ;;  %5829 = vmatprep.mubr.f32.mxu1 %v1797_v39  ;;  %v1557_v39 = vpop.permute.xlu1 %1556 }
 0x1c5   :  { %v8460_v57 = vmul.f32 %v8372_v37, %v1307_v24  ;;  %v1261_v52 = vadd.f32 %v6808_v50, %v8237_v6  ;;  %v5742_v51 = vpop.f32.mrb[28].mxu0 }
 0x1c6   :  { %1692 = vst [vmem:[#allocation2 + $0xc8] sm:$0xff] %v8454_v29  ;;  %v1310_v58 = vmax.f32 %v1262_v41, 0.0  ;;  %v6809_v25 = vadd.f32 %v5742_v51, %v8216_v60  ;;  %v1083_v31 = vpop.f32.mrb[29].mxu0  ;;  %v1798_v13 = vld [vmem:[#allocation2 + $0x99] sm:$0xff]  ;;  %v1799_v5 = vld [vmem:[#allocation2 + $0xa1] sm:$0xff] }
 0x1c7   :  { %1691 = vst [vmem:[#allocation2 + $0xc0] sm:$0xff] %v8460_v57  ;;  %v1309_v12 = vmax.f32 %v1261_v52, 0.0  ;;  %v6810_v53 = vadd.f32 %v1083_v31, %v8220_v62  ;;  %5830 = vmatmul.mubr.f32.gmra.mrb[66].mxu1 %v1798_v13 }
 0x1c8   :  { %v8470_v37 = vmul.f32 %v8388_v28, %v1310_v58  ;;  %v1264_v48 = vadd.f32 %v6809_v25, %v8237_v6  ;;  %5832 = vmatprep.mubr.f32.mxu1 %v1799_v5  ;;  %v9078_v5 = vld [vmem:[#allocation14_spill] sm:$0xff] }
 0x1c9   :  { %v8474_v2 = vmul.f32 %v8392_v55, %v1309_v12  ;;  %v1263_v60 = vadd.f32 %v6810_v53, %v8237_v6  ;;  %v5745_v20 = vpop.f32.mrb[30].mxu0  ;;  %v1552_v55 = vpop.permute.xlu0 %1551 }
 0x1ca   :  { %1694 = vst [vmem:[#allocation2 + $0xd8] sm:$0xff] %v8470_v37  ;;  %v1312_v54 = vmax.f32 %v1264_v48, 0.0  ;;  %v6811_v38 = vadd.f32 %v5745_v20, %v8222_v63  ;;  %v1093_v43 = vpop.f32.mrb[31].mxu0  ;;  %v1800_v62 = vld [vmem:[#allocation2 + $0xa9] sm:$0xff]  ;;  %v1801_v34 = vld [vmem:[#allocation2 + $0xb1] sm:$0xff]  ;;  %v1567_v48 = vpop.permute.xlu1 %1566 }
 0x1cb   :  { %1693 = vst [vmem:[#allocation2 + $0xd0] sm:$0xff] %v8474_v2  ;;  %v1311_v28 = vmax.f32 %v1263_v60, 0.0  ;;  %v6812_v24 = vadd.f32 %v1093_v43, %v8224_v0  ;;  %5833 = vmatmul.mubr.f32.gmra.mrb[68].mxu1 %v1800_v62  ;;  %v9079_v43 = vld [vmem:[#allocation15_spill] sm:$0xff] }
 0x1cc   :  { %v8482_v50 = vmul.f32 %v8410_v59, %v1312_v54  ;;  %v1266_v41 = vadd.f32 %v6811_v38, %v8237_v6  ;;  %5835 = vmatprep.mubr.f32.mxu1 %v1801_v34 }
 0x1cd   :  { %v8486_v52 = vmul.f32 %v8416_v49, %v1311_v28  ;;  %v1265_v63 = vadd.f32 %v6812_v24, %v8237_v6  ;;  %v5748_v51 = vpop.f32.mrb[32].mxu0  ;;  %v1562_v54 = vpop.permute.xlu0 %1561 }
 0x1ce   :  { %1696 = vst [vmem:[#allocation2 + $0xe8] sm:$0xff] %v8482_v50  ;;  %v1314_v58 = vmax.f32 %v1266_v41, 0.0  ;;  %v6813_v25 = vadd.f32 %v5748_v51, %v8230_v3  ;;  %v1103_v0 = vpop.f32.mrb[33].mxu0  ;;  %v1802_v31 = vld [vmem:[#allocation2 + $0xb9] sm:$0xff]  ;;  %v1803_v13 = vld [vmem:[#allocation2 + $0xc1] sm:$0xff] }
 0x1cf   :  { %1695 = vst [vmem:[#allocation2 + $0xe0] sm:$0xff] %v8486_v52  ;;  %v1313_v59 = vmax.f32 %v1265_v63, 0.0  ;;  %v6814_v12 = vadd.f32 %v1103_v0, %v9078_v5  ;;  %5836 = vmatmul.mubr.f32.gmra.mrb[70].mxu1 %v1802_v31  ;;  %v9080_v41 = vld [vmem:[#allocation16_spill] sm:$0xff] }
 0x1d0   :  { %v8494_v49 = vmul.f32 %v8432_v19, %v1314_v58  ;;  %v1268_v53 = vadd.f32 %v6813_v25, %v8237_v6  ;;  %5838 = vmatprep.mubr.f32.mxu1 %v1803_v13 }
 0x1d1   :  { %v8498_v60 = vmul.f32 %v8436_v32, %v1313_v59  ;;  %v1267_v3 = vadd.f32 %v6814_v12, %v8237_v6  ;;  %v5751_v20 = vpop.f32.mrb[34].mxu0 }
 0x1d2   :  { %1698 = vst [vmem:[#allocation2 + $0xf8] sm:$0xff] %v8494_v49  ;;  %v1316_v38 = vmax.f32 %v1268_v53, 0.0  ;;  %v6815_v62 = vadd.f32 %v5751_v20, %v9079_v43  ;;  %v1113_v34 = vpop.f32.mrb[35].mxu0  ;;  %v1804_v28 = vld [vmem:[#allocation2 + $0xc9] sm:$0xff]  ;;  %v1805_v19 = vld [vmem:[#allocation2 + $0xd1] sm:$0xff]  ;;  %v1577_v53 = vpop.permute.xlu1 %1576 }
 0x1d3   :  { %1697 = vst [vmem:[#allocation2 + $0xf0] sm:$0xff] %v8498_v60  ;;  %v1315_v24 = vmax.f32 %v1267_v3, 0.0  ;;  %v6816_v63 = vadd.f32 %v1113_v34, %v9080_v41  ;;  %5839 = vmatmul.mubr.f32.gmra.mrb[72].mxu1 %v1804_v28 }
 0x1d4   :  { %v8506_v32 = vmul.f32 %v8457_v9, %v1316_v38  ;;  %v1270_v51 = vadd.f32 %v6815_v62, %v8237_v6  ;;  %5841 = vmatprep.mubr.f32.mxu1 %v1805_v19 }
 0x1d5   :  { %v8510_v58 = vmul.f32 %v8463_v16, %v1315_v24  ;;  %v1269_v25 = vadd.f32 %v6816_v63, %v8237_v6  ;;  %v5754_v0 = vpop.f32.mrb[36].mxu0  ;;  %v1572_v16 = vpop.permute.xlu0 %1571 }
 0x1d6   :  { %1700 = vst [vmem:[#allocation2 + $0x108] sm:$0xff] %v8506_v32  ;;  %v1318_v31 = vmax.f32 %v1270_v51, 0.0  ;;  %v6817_v13 = vadd.f32 %v5754_v0, %v8251_v4  ;;  %v1123_v59 = vpop.f32.mrb[37].mxu0  ;;  %v1806_v5 = vld [vmem:[#allocation2 + $0xd9] sm:$0xff]  ;;  %v1807_v12 = vld [vmem:[#allocation2 + $0xe1] sm:$0xff]  ;;  %v1587_v51 = vpop.permute.xlu1 %1586 }
 0x1d7   :  { %1699 = vst [vmem:[#allocation2 + $0x100] sm:$0xff] %v8510_v58  ;;  %v1317_v9 = vmax.f32 %v1269_v25, 0.0  ;;  %v6818_v3 = vadd.f32 %v1123_v59, %v8256_v11  ;;  %5842 = vmatmul.mubr.f32.gmra.mrb[74].mxu1 %v1806_v5 }
 0x1d8   :  { %v8517_v20 = vmul.f32 %v1557_v39, %v1318_v31  ;;  %v1272_v38 = vadd.f32 %v6817_v13, %v8237_v6  ;;  %5844 = vmatprep.mubr.f32.mxu1 %v1807_v12 }
 0x1d9   :  { %v8520_v43 = vmul.f32 %v1552_v55, %v1317_v9  ;;  %v1271_v4 = vadd.f32 %v6818_v3, %v8237_v6  ;;  %v5757_v62 = vpop.f32.mrb[38].mxu0  ;;  %v1582_v31 = vpop.permute.xlu0 %1581 }
 0x1da   :  { %1702 = vst [vmem:[#allocation2 + $0x118] sm:$0xff] %v8517_v20  ;;  %v1320_v34 = vmax.f32 %v1272_v38, 0.0  ;;  %v6819_v28 = vadd.f32 %v5757_v62, %v8269_v30  ;;  %v1133_v19 = vpop.f32.mrb[39].mxu0  ;;  %v1808_v24 = vld [vmem:[#allocation2 + $0xe9] sm:$0xff]  ;;  %v1809_v11 = vld [vmem:[#allocation2 + $0xf1] sm:$0xff] }
 0x1db   :  { %1701 = vst [vmem:[#allocation2 + $0x110] sm:$0xff] %v8520_v43  ;;  %v1319_v39 = vmax.f32 %v1271_v4, 0.0  ;;  %v6820_v41 = vadd.f32 %v1133_v19, %v8275_v17  ;;  %5845 = vmatmul.mubr.f32.gmra.mrb[76].mxu1 %v1808_v24 }
 0x1dc   :  { %v8527_v63 = vmul.f32 %v1567_v48, %v1320_v34  ;;  %v1274_v55 = vadd.f32 %v6819_v28, %v8237_v6  ;;  %5847 = vmatprep.mubr.f32.mxu1 %v1809_v11  ;;  %v9081_v11 = vld [vmem:[#allocation24_spill] sm:$0xff] }
 0x1dd   :  { %v8530_v25 = vmul.f32 %v1562_v54, %v1319_v39  ;;  %v1273_v0 = vadd.f32 %v6820_v41, %v8237_v6  ;;  %v5760_v30 = vpop.f32.mrb[40].mxu0 }
 0x1de   :  { %1704 = vst [vmem:[#allocation2 + $0x128] sm:$0xff] %v8527_v63  ;;  %v1322_v13 = vmax.f32 %v1274_v55, 0.0  ;;  %v6821_v59 = vadd.f32 %v5760_v30, %v8287_v15  ;;  %v1143_v5 = vpop.f32.mrb[41].mxu0  ;;  %v1810_v17 = vld [vmem:[#allocation2 + $0xf9] sm:$0xff]  ;;  %v1811_v12 = vld [vmem:[#allocation2 + $0x101] sm:$0xff] }
 0x1df   :  { %1703 = vst [vmem:[#allocation2 + $0x120] sm:$0xff] %v8530_v25  ;;  %v1321_v48 = vmax.f32 %v1273_v0, 0.0  ;;  %v6822_v9 = vadd.f32 %v1143_v5, %v8295_v46  ;;  %5848 = vmatmul.mubr.f32.gmra.mrb[78].mxu1 %v1810_v17  ;;  %v1597_v46 = vpop.permute.xlu1 %1596 }
 0x1e0   :  { %v8537_v54 = vmul.f32 %v1577_v53, %v1322_v13  ;;  %v1276_v3 = vadd.f32 %v6821_v59, %v8237_v6  ;;  %5850 = vmatprep.mubr.f32.mxu1 %v1811_v12 }
 0x1e1   :  { %v8540_v38 = vmul.f32 %v1572_v16, %v1321_v48  ;;  %v1275_v4 = vadd.f32 %v6822_v9, %v8237_v6  ;;  %v5763_v62 = vpop.f32.mrb[42].mxu0  ;;  %v1592_v16 = vpop.permute.xlu0 %1591 }
 0x1e2   :  { %1706 = vst [vmem:[#allocation2 + $0x138] sm:$0xff] %v8537_v54  ;;  %v1324_v15 = vmax.f32 %v1276_v3, 0.0  ;;  %v6823_v34 = vadd.f32 %v5763_v62, %v8305_v45  ;;  %v1153_v28 = vpop.f32.mrb[43].mxu0  ;;  %v1812_v19 = vld [vmem:[#allocation2 + $0x109] sm:$0xff]  ;;  %v1813_v24 = vld [vmem:[#allocation2 + $0x111] sm:$0xff] }
 0x1e3   :  { %1705 = vst [vmem:[#allocation2 + $0x130] sm:$0xff] %v8540_v38  ;;  %v1323_v53 = vmax.f32 %v1275_v4, 0.0  ;;  %v6824_v39 = vadd.f32 %v1153_v28, %v9081_v11  ;;  %5851 = vmatmul.mubr.f32.gmra.mrb[80].mxu1 %v1812_v19  ;;  %v1607_v3 = vpop.permute.xlu1 %1606 }
 0x1e4   :  { %v8547_v41 = vmul.f32 %v1587_v51, %v1324_v15  ;;  %v1278_v55 = vadd.f32 %v6823_v34, %v8237_v6  ;;  %5853 = vmatprep.mubr.f32.mxu1 %v1813_v24 }
 0x1e5   :  { %v8550_v0 = vmul.f32 %v1582_v31, %v1323_v53  ;;  %v1277_v45 = vadd.f32 %v6824_v39, %v8237_v6  ;;  %v5766_v30 = vpop.f32.mrb[44].mxu0  ;;  %v1602_v15 = vpop.permute.xlu0 %1601 }
 0x1e6   :  { %1708 = vst [vmem:[#allocation2 + $0x148] sm:$0xff] %v8547_v41  ;;  %v1326_v13 = vmax.f32 %v1278_v55, 0.0  ;;  %v6825_v59 = vadd.f32 %v5766_v30, %v8325_v22  ;;  %v1163_v5 = vpop.f32.mrb[45].mxu0  ;;  %v1814_v17 = vld [vmem:[#allocation2 + $0x119] sm:$0xff]  ;;  %v1815_v12 = vld [vmem:[#allocation2 + $0x121] sm:$0xff] }
 0x1e7   :  { %1707 = vst [vmem:[#allocation2 + $0x140] sm:$0xff] %v8550_v0  ;;  %v1325_v51 = vmax.f32 %v1277_v45, 0.0  ;;  %v6826_v48 = vadd.f32 %v1163_v5, %v8332_v27  ;;  %5854 = vmatmul.mubr.f32.gmra.mrb[82].mxu1 %v1814_v17 }
 0x1e8   :  { %v8557_v9 = vmul.f32 %v1597_v46, %v1326_v13  ;;  %v1280_v31 = vadd.f32 %v6825_v59, %v8237_v6  ;;  %5856 = vmatprep.mubr.f32.mxu1 %v1815_v12  ;;  %v1617_v13 = vpop.permute.xlu1 %1616 }
 0x1e9   :  { %v8560_v4 = vmul.f32 %v1592_v16, %v1325_v51  ;;  %v1279_v62 = vadd.f32 %v6826_v48, %v8237_v6  ;;  %v5769_v22 = vpop.f32.mrb[46].mxu0 }
 0x1ea   :  { %1710 = vst [vmem:[#allocation2 + $0x158] sm:$0xff] %v8557_v9  ;;  %v1328_v34 = vmax.f32 %v1280_v31, 0.0  ;;  %v6827_v28 = vadd.f32 %v5769_v22, %v8344_v10  ;;  %v1173_v19 = vpop.f32.mrb[47].mxu0  ;;  %v1816_v27 = vld [vmem:[#allocation2 + $0x129] sm:$0xff]  ;;  %v1817_v24 = vld [vmem:[#allocation2 + $0x131] sm:$0xff]  ;;  %v2505_v22 = vld [vmem:[#allocation4 + $0x110] sm:$0xff] }
 0x1eb   :  { %1709 = vst [vmem:[#allocation2 + $0x150] sm:$0xff] %v8560_v4  ;;  %v1327_v46 = vmax.f32 %v1279_v62, 0.0  ;;  %v6828_v53 = vadd.f32 %v1173_v19, %v8352_v44  ;;  %5857 = vmatmul.mubr.f32.gmra.mrb[84].mxu1 %v1816_v27  ;;  %v1612_v44 = vpop.permute.xlu0 %1611  ;;  %v2507_v19 = vld [vmem:[#allocation4 + $0x120] sm:$0xff]  ;;  %v2508_v27 = vld [vmem:[#allocation4 + $0x128] sm:$0xff] }
 0x1ec   :  { %v8567_v11 = vmul.f32 %v1607_v3, %v1328_v34  ;;  %v1282_v39 = vadd.f32 %v6827_v28, %v8237_v6  ;;  %5859 = vmatprep.mubr.f32.mxu1 %v1817_v24  ;;  %v9082_v34 = vld [vmem:[#allocation18_spill] sm:$0xff]  ;;  %v9083_v24 = vld [vmem:[#allocation17_spill] sm:$0xff] }
 0x1ed   :  { %v8570_v16 = vmul.f32 %v1602_v15, %v1327_v46  ;;  %v1281_v55 = vadd.f32 %v6828_v53, %v8237_v6  ;;  %v2506_v15 = vld [vmem:[#allocation4 + $0x118] sm:$0xff]  ;;  %v9084_v46 = vld [vmem:[#allocation20_spill] sm:$0xff]  ;;  %v6597_v53 = vpack.c.bf16 %v2508_v27, %v2507_v19  ;;  %v2484_v27 = vld [vmem:[#allocation2 + $0xf2] sm:$0xff] }
 0x1ee   :  { %1712 = vst [vmem:[#allocation2 + $0x168] sm:$0xff] %v8567_v11  ;;  %v1330_v10 = vmax.f32 %v1282_v39, 0.0  ;;  %v1818_v45 = vld [vmem:[#allocation2 + $0x139] sm:$0xff]  ;;  %v1819_v30 = vld [vmem:[#allocation2 + $0x141] sm:$0xff]  ;;  %v6593_v28 = vpack.c.bf16 %v2506_v15, %v2505_v22  ;;  %v2483_v19 = vld [vmem:[#allocation2 + $0xea] sm:$0xff] }
 0x1ef   :  { %1711 = vst [vmem:[#allocation2 + $0x160] sm:$0xff] %v8570_v16  ;;  %v1329_v59 = vmax.f32 %v1281_v55, 0.0  ;;  %5860 = vmatmul.mubr.f32.gmra.mrb[86].mxu1 %v1818_v45  ;;  %v2509_v39 = vld [vmem:[#allocation4 + $0x130] sm:$0xff]  ;;  %v2510_v55 = vld [vmem:[#allocation4 + $0x138] sm:$0xff]  ;;  %v9086_v45 = vld [vmem:[#allocation22_spill] sm:$0xff] }
 0x1f0   :  { %v8575_v5 = vmul.f32 %v1617_v13, %v1330_v10  ;;  %5862 = vmatprep.mubr.f32.mxu1 %v1819_v30  ;;  %v9085_v10 = vld [vmem:[#allocation19_spill] sm:$0xff]  ;;  %v6601_v30 = vpack.c.bf16 %v2510_v55, %v2509_v39  ;;  %v2511_v13 = vld [vmem:[#allocation4 + $0x140] sm:$0xff]  ;;  %v9090_v22 = vld [vmem:[#allocation25_spill] sm:$0xff] }
 0x1f1   :  { %v8577_v17 = vmul.f32 %v1612_v44, %v1329_v59  ;;  %v2512_v59 = vld [vmem:[#allocation4 + $0x148] sm:$0xff]  ;;  %v9087_v44 = vld [vmem:[#allocation21_spill] sm:$0xff]  ;;  %v2517_v15 = vld [vmem:[#allocation4 + $0x170] sm:$0xff] }
 0x1f2   :  { %1714 = vst [vmem:[#allocation2 + $0x178] sm:$0xff] %v8575_v5  ;;  %v1820_v12 = vld [vmem:[#allocation2 + $0x149] sm:$0xff]  ;;  %v1821_v6 = vld [vmem:[#allocation2 + $0x151] sm:$0xff]  ;;  %v2489_v55 = vld [vmem:[#allocation2 + $0x11a] sm:$0xff] }
 0x1f3   :  { %1713 = vst [vmem:[#allocation2 + $0x170] sm:$0xff] %v8577_v17  ;;  %5863 = vmatmul.mubr.f32.gmra.mrb[88].mxu1 %v1820_v12  ;;  %v2513_v12 = vld [vmem:[#allocation4 + $0x150] sm:$0xff]  ;;  %v2488_v39 = vld [vmem:[#allocation2 + $0x112] sm:$0xff] }
 0x1f4   :  { %5865 = vmatprep.mubr.f32.mxu1 %v1821_v6  ;;  %v2514_v6 = vld [vmem:[#allocation4 + $0x158] sm:$0xff] }
 0x1f6   :  { %v1822_v51 = vld [vmem:[#allocation2 + $0x159] sm:$0xff]  ;;  %v1823_v48 = vld [vmem:[#allocation2 + $0x161] sm:$0xff] }
 0x1f7   :  { %5866 = vmatmul.mubr.f32.gmra.mrb[90].mxu1 %v1822_v51  ;;  %v9088_v51 = vld [vmem:[#allocation23_spill] sm:$0xff] }
 0x1f8   :  { %5868 = vmatprep.mubr.f32.mxu1 %v1823_v48  ;;  %v9089_v48 = vld [vmem:[#allocation26_spill] sm:$0xff] }
 0x1f9   :  { %v1826_v62 = vld [vmem:[#allocation2 + $0x179] sm:$0xff] }
 0x1fa   :  { %v1824_v31 = vld [vmem:[#allocation2 + $0x169] sm:$0xff]  ;;  %v1825_v3 = vld [vmem:[#allocation2 + $0x171] sm:$0xff] }
 0x1fb   :  { %5869 = vmatmul.mubr.f32.gmra.mrb[92].mxu1 %v1824_v31  ;;  %v6609_v31 = vpack.c.bf16 %v2514_v6, %v2513_v12  ;;  %v3476_v12 = vld [vmem:[#allocation7 + $0xb0] sm:$0xff]  ;;  %v3477_v6 = vld [vmem:[#allocation7 + $0xb8] sm:$0xff] }
 0x1fc   :  { %5871 = vmatprep.mubr.f32.mxu1 %v1825_v3  ;;  %v2515_v3 = vld [vmem:[#allocation4 + $0x160] sm:$0xff] }
 0x1ff   :  { %5872 = vmatmul.mubr.f32.gmra.mrb[94].mxu1 %v1826_v62  ;;  %v2516_v62 = vld [vmem:[#allocation4 + $0x168] sm:$0xff] }
 0x200   :  { %5906 = vmatprep.mubr.f32.mxu1 %v9082_v34  ;;  %v2518_v34 = vld [vmem:[#allocation4 + $0x178] sm:$0xff] }
 0x203   :  { %5907 = vmatmul.mubr.f32.vlgmr.msra.gmra.mrb[48].mxu1 %v9083_v24  ;;  %v2485_v24 = vld [vmem:[#allocation2 + $0xfa] sm:$0xff] }
 0x204   :  { %5909 = vmatprep.mubr.f32.mxu1 %v9084_v46  ;;  %6592 = vmatpush3.bf16.msra.mxu1 %v8446_v21  ;;  %v6605_v21 = vpack.c.bf16 %v2512_v59, %v2511_v13  ;;  %v2486_v46 = vld [vmem:[#allocation2 + $0x102] sm:$0xff]  ;;  %v2493_v13 = vld [vmem:[#allocation2 + $0x13a] sm:$0xff] }
 0x205   :  { %6594 = vmatprep.subr.bf16.mxu1 %v6593_v28  ;;  %v2494_v59 = vld [vmem:[#allocation2 + $0x142] sm:$0xff] }
 0x207   :  { %5910 = vmatmul.mubr.f32.gmra.mrb[50].mxu1 %v9085_v10  ;;  %v2490_v10 = vld [vmem:[#allocation2 + $0x122] sm:$0xff] }
 0x208   :  { %5912 = vmatprep.mubr.f32.mxu1 %v9086_v45  ;;  %6596 = vmatpush3.bf16.msra.mxu1 %v6593_v28  ;;  %v6617_v28 = vpack.c.bf16 %v2518_v34, %v2517_v15  ;;  %v2491_v45 = vld [vmem:[#allocation2 + $0x12a] sm:$0xff]  ;;  %v2500_v15 = vld [vmem:[#allocation2 + $0x172] sm:$0xff]  ;;  %v3480_v34 = vld [vmem:[#allocation7 + $0xd0] sm:$0xff] }
 0x209   :  { %6598 = vmatprep.subr.bf16.mxu1 %v6597_v53 }
 0x20b   :  { %5913 = vmatmul.mubr.f32.gmra.mrb[52].mxu1 %v9087_v44  ;;  %v2495_v44 = vld [vmem:[#allocation2 + $0x14a] sm:$0xff] }
 0x20c   :  { %5915 = vmatprep.mubr.f32.mxu1 %v8316_v35  ;;  %6600 = vmatpush3.bf16.msra.mxu1 %v6597_v53  ;;  %v6613_v35 = vpack.c.bf16 %v2516_v62, %v2515_v3  ;;  %v2487_v53 = vld [vmem:[#allocation2 + $0x10a] sm:$0xff]  ;;  %v3479_v62 = vld [vmem:[#allocation7 + $0xc8] sm:$0xff] }
 0x20d   :  { %6602 = vmatprep.subr.bf16.mxu1 %v6601_v30  ;;  %v3478_v3 = vld [vmem:[#allocation7 + $0xc0] sm:$0xff] }
 0x20f   :  { %5916 = vmatmul.mubr.f32.gmra.mrb[54].mxu1 %v9088_v51  ;;  %v6633_v51 = vpack.c.bf16 %v3477_v6, %v3476_v12 }
 0x210   :  { %5918 = vmatprep.mubr.f32.mxu1 %v9089_v48  ;;  %6604 = vmatpush3.bf16.msra.mxu1 %v6601_v30  ;;  %v2492_v30 = vld [vmem:[#allocation2 + $0x132] sm:$0xff]  ;;  %v2497_v48 = vld [vmem:[#allocation2 + $0x15a] sm:$0xff] }
 0x211   :  { %6606 = vmatprep.subr.bf16.mxu1 %v6605_v21 }
 0x213   :  { %5919 = vmatmul.mubr.f32.gmra.mrb[56].mxu1 %v9090_v22  ;;  %v6637_v22 = vpack.c.bf16 %v3479_v62, %v3478_v3 }
 0x214   :  { %5921 = vmatprep.mubr.f32.mxu1 %v8355_v8  ;;  %6608 = vmatpush3.bf16.msra.mxu1 %v6605_v21  ;;  %v3471_v8 = vld [vmem:[#allocation7 + $0x88] sm:$0xff] }
 0x215   :  { %6610 = vmatprep.subr.bf16.mxu1 %v6609_v31  ;;  %v2496_v21 = vld [vmem:[#allocation2 + $0x152] sm:$0xff] }
 0x217   :  { %5922 = vmatmul.mubr.f32.gmra.mrb[58].mxu1 %v8349_v26  ;;  %v3470_v26 = vld [vmem:[#allocation7 + $0x80] sm:$0xff] }
 0x218   :  { %5924 = vmatprep.mubr.f32.mxu1 %v8369_v36  ;;  %6612 = vmatpush3.bf16.msra.mxu1 %v6609_v31  ;;  %v6621_v36 = vpack.c.bf16 %v3471_v8, %v3470_v26  ;;  %v2498_v31 = vld [vmem:[#allocation2 + $0x162] sm:$0xff]  ;;  %v2501_v8 = vld [vmem:[#allocation2 + $0x17a] sm:$0xff] }
 0x219   :  { %6614 = vmatprep.subr.bf16.mxu1 %v6613_v35 }
 0x21a   :  { %6622 = vmatprep.subr.bf16.mxu0 %v6621_v36 }
 0x21b   :  { %5925 = vmatmul.mubr.f32.gmra.mrb[60].mxu1 %v8363_v56  ;;  %v3472_v56 = vld [vmem:[#allocation7 + $0x90] sm:$0xff]  ;;  %6624 = vmatpush3.bf16.msra.mxu0 %v6621_v36  ;;  %v3483_v36 = vld [vmem:[#allocation7 + $0xe8] sm:$0xff] }
 0x21c   :  { %5927 = vmatprep.mubr.f32.mxu1 %v8383_v23  ;;  %6616 = vmatpush3.bf16.msra.mxu1 %v6613_v35  ;;  %v2499_v35 = vld [vmem:[#allocation2 + $0x16a] sm:$0xff] }
 0x21d   :  { %6618 = vmatprep.subr.bf16.mxu1 %v6617_v28 }
 0x21f   :  { %5928 = vmatmul.mubr.f32.gmra.mrb[62].mxu1 %v8379_v14  ;;  %v3473_v14 = vld [vmem:[#allocation7 + $0x98] sm:$0xff] }
 0x220   :  { %5930 = vmatprep.mubr.f32.mxu1 %v8399_v42  ;;  %6620 = vmatpush3.bf16.msra.mxu1 %v6617_v28  ;;  %v6625_v23 = vpack.c.bf16 %v3473_v14, %v3472_v56  ;;  %v3475_v42 = vld [vmem:[#allocation7 + $0xa8] sm:$0xff]  ;;  %v3481_v28 = vld [vmem:[#allocation7 + $0xd8] sm:$0xff]  ;;  %v3482_v56 = vld [vmem:[#allocation7 + $0xe0] sm:$0xff] }
 0x221   :  { %v6641_v26 = vpack.c.bf16 %v3481_v28, %v3480_v34  ;;  %v6645_v14 = vpack.c.bf16 %v3483_v36, %v3482_v56  ;;  %v3407_v34 = vld [vmem:[#allocation7 + $0x10] sm:$0xff]  ;;  %v3408_v28 = vld [vmem:[#allocation7 + $0x18] sm:$0xff] }
 0x222   :  { %6626 = vmatprep.subr.bf16.mxu0 %v6625_v23 }
 0x223   :  { %5931 = vmatmul.mubr.f32.gmra.mrb[64].mxu1 %v8395_v33  ;;  %v3474_v33 = vld [vmem:[#allocation7 + $0xa0] sm:$0xff]  ;;  %6628 = vmatpush3.bf16.msra.mxu0 %v6625_v23  ;;  %v3484_v23 = vld [vmem:[#allocation7 + $0xf0] sm:$0xff] }
 0x224   :  { %5933 = vmatprep.mubr.f32.mxu1 %v8413_v47  ;;  %v2454_v47 = vld [vmem:[#allocation2 + $0x2] sm:$0xff] }
 0x227   :  { %5934 = vmatmul.mubr.f32.gmra.mrb[66].mxu1 %v8407_v1  ;;  %v6629_v1 = vpack.c.bf16 %v3475_v42, %v3474_v33  ;;  %v3485_v33 = vld [vmem:[#allocation7 + $0xf8] sm:$0xff] }
 0x228   :  { %5936 = vmatprep.mubr.f32.mxu1 %v8427_v7  ;;  %v2456_v7 = vld [vmem:[#allocation2 + $0x12] sm:$0xff]  ;;  %v6649_v42 = vpack.c.bf16 %v3485_v33, %v3484_v23 }
 0x229   :  { %6630 = vmatprep.subr.bf16.mxu0 %v6629_v1 }
 0x22a   :  { %6632 = vmatpush3.bf16.msra.mxu0 %v6629_v1  ;;  %v3405_v1 = vld [vmem:[#allocation7] sm:$0xff] }
 0x22b   :  { %5937 = vmatmul.mubr.f32.gmra.mrb[68].mxu1 %v8423_v61  ;;  %v2455_v61 = vld [vmem:[#allocation2 + $0xa] sm:$0xff]  ;;  %6634 = vmatprep.subr.bf16.mxu0 %v6633_v51 }
 0x22c   :  { %5939 = vmatprep.mubr.f32.mxu1 %v8443_v40  ;;  %v2458_v40 = vld [vmem:[#allocation2 + $0x22] sm:$0xff] }
 0x22e   :  { %6636 = vmatpush3.bf16.msra.mxu0 %v6633_v51 }
 0x22f   :  { %5940 = vmatmul.mubr.f32.gmra.mrb[70].mxu1 %v8439_v18  ;;  %v2457_v18 = vld [vmem:[#allocation2 + $0x1a] sm:$0xff]  ;;  %6638 = vmatprep.subr.bf16.mxu0 %v6637_v22 }
 0x230   :  { %5942 = vmatprep.mubr.f32.mxu1 %v8460_v57  ;;  %v2460_v57 = vld [vmem:[#allocation2 + $0x32] sm:$0xff] }
 0x232   :  { %6640 = vmatpush3.bf16.msra.mxu0 %v6637_v22 }
 0x233   :  { %5943 = vmatmul.mubr.f32.gmra.mrb[72].mxu1 %v8454_v29  ;;  %v2459_v29 = vld [vmem:[#allocation2 + $0x2a] sm:$0xff]  ;;  %6642 = vmatprep.subr.bf16.mxu0 %v6641_v26 }
 0x234   :  { %5945 = vmatprep.mubr.f32.mxu1 %v8474_v2  ;;  %v2462_v2 = vld [vmem:[#allocation2 + $0x42] sm:$0xff] }
 0x236   :  { %6644 = vmatpush3.bf16.msra.mxu0 %v6641_v26 }
 0x237   :  { %5946 = vmatmul.mubr.f32.gmra.mrb[74].mxu1 %v8470_v37  ;;  %v2461_v37 = vld [vmem:[#allocation2 + $0x3a] sm:$0xff]  ;;  %6646 = vmatprep.subr.bf16.mxu0 %v6645_v14 }
 0x238   :  { %5948 = vmatprep.mubr.f32.mxu1 %v8486_v52  ;;  %v2464_v52 = vld [vmem:[#allocation2 + $0x52] sm:$0xff] }
 0x23a   :  { %6648 = vmatpush3.bf16.msra.mxu0 %v6645_v14 }
 0x23b   :  { %5949 = vmatmul.mubr.f32.gmra.mrb[76].mxu1 %v8482_v50  ;;  %v2463_v50 = vld [vmem:[#allocation2 + $0x4a] sm:$0xff]  ;;  %6650 = vmatprep.subr.bf16.mxu0 %v6649_v42 }
 0x23c   :  { %5951 = vmatprep.mubr.f32.mxu1 %v8498_v60  ;;  %v2466_v60 = vld [vmem:[#allocation2 + $0x62] sm:$0xff] }
 0x23e   :  { %6652 = vmatpush3.bf16.msra.mxu0 %v6649_v42 }
 0x23f   :  { %5952 = vmatmul.mubr.f32.gmra.mrb[78].mxu1 %v8494_v49  ;;  %v2465_v49 = vld [vmem:[#allocation2 + $0x5a] sm:$0xff] }
 0x240   :  { %5954 = vmatprep.mubr.f32.mxu1 %v8510_v58  ;;  %v2468_v58 = vld [vmem:[#allocation2 + $0x72] sm:$0xff] }
 0x243   :  { %5955 = vmatmul.mubr.f32.gmra.mrb[80].mxu1 %v8506_v32  ;;  %v2467_v32 = vld [vmem:[#allocation2 + $0x6a] sm:$0xff] }
 0x244   :  { %5957 = vmatprep.mubr.f32.mxu1 %v8520_v43  ;;  %v2470_v43 = vld [vmem:[#allocation2 + $0x82] sm:$0xff] }
 0x247   :  { %5958 = vmatmul.mubr.f32.gmra.mrb[82].mxu1 %v8517_v20  ;;  %v2469_v20 = vld [vmem:[#allocation2 + $0x7a] sm:$0xff] }
 0x248   :  { %5960 = vmatprep.mubr.f32.mxu1 %v8530_v25  ;;  %v2472_v25 = vld [vmem:[#allocation2 + $0x92] sm:$0xff] }
 0x24b   :  { %5961 = vmatmul.mubr.f32.gmra.mrb[84].mxu1 %v8527_v63  ;;  %v2471_v63 = vld [vmem:[#allocation2 + $0x8a] sm:$0xff] }
 0x24c   :  { %5963 = vmatprep.mubr.f32.mxu1 %v8540_v38  ;;  %v2474_v38 = vld [vmem:[#allocation2 + $0xa2] sm:$0xff] }
 0x24f   :  { %5964 = vmatmul.mubr.f32.gmra.mrb[86].mxu1 %v8537_v54  ;;  %v2473_v54 = vld [vmem:[#allocation2 + $0x9a] sm:$0xff] }
 0x250   :  { %5966 = vmatprep.mubr.f32.mxu1 %v8550_v0  ;;  %v2476_v0 = vld [vmem:[#allocation2 + $0xb2] sm:$0xff] }
 0x253   :  { %5967 = vmatmul.mubr.f32.gmra.mrb[88].mxu1 %v8547_v41  ;;  %v2475_v41 = vld [vmem:[#allocation2 + $0xaa] sm:$0xff] }
 0x254   :  { %5969 = vmatprep.mubr.f32.mxu1 %v8560_v4  ;;  %v2478_v4 = vld [vmem:[#allocation2 + $0xc2] sm:$0xff] }
 0x257   :  { %5970 = vmatmul.mubr.f32.gmra.mrb[90].mxu1 %v8557_v9  ;;  %v2477_v9 = vld [vmem:[#allocation2 + $0xba] sm:$0xff] }
 0x258   :  { %5972 = vmatprep.mubr.f32.mxu1 %v8570_v16  ;;  %v2480_v16 = vld [vmem:[#allocation2 + $0xd2] sm:$0xff] }
 0x25b   :  { %5973 = vmatmul.mubr.f32.gmra.mrb[92].mxu1 %v8567_v11  ;;  %v2479_v11 = vld [vmem:[#allocation2 + $0xca] sm:$0xff] }
 0x25c   :  { %5975 = vmatprep.mubr.f32.mxu1 %v8577_v17  ;;  %v2482_v17 = vld [vmem:[#allocation2 + $0xe2] sm:$0xff] }
 0x25f   :  { %5976 = vmatmul.mubr.f32.gmra.mrb[94].mxu1 %v8575_v5  ;;  %v2481_v5 = vld [vmem:[#allocation2 + $0xda] sm:$0xff] }
 0x260   :  { %6010 = vmatprep.mubr.f32.mxu1 %v2454_v47  ;;  %v3406_v47 = vld [vmem:[#allocation7 + $0x8] sm:$0xff] }
 0x263   :  { %6011 = vmatmul.mubr.f32.vlgmr.msra.gmra.mrb[48].mxu1 %v2455_v61  ;;  %v8630_v61 = vpack.c.bf16 %v3406_v47, %v3405_v1  ;;  %v6657_v1 = vpack.c.bf16 %v3408_v28, %v3407_v34  ;;  %v3409_v47 = vld [vmem:[#allocation7 + $0x20] sm:$0xff] }
 0x264   :  { %6013 = vmatprep.mubr.f32.mxu1 %v2456_v7  ;;  %v3029_v7 = vpop.permute.xlu1 %3028 }
 0x265   :  { %6654 = vmatprep.subr.bf16.mxu0 %v8630_v61 }
 0x267   :  { %6014 = vmatmul.mubr.f32.gmra.mrb[50].mxu1 %v2457_v18  ;;  %v3024_v18 = vpop.permute.xlu0 %3023 }
 0x268   :  { %6016 = vmatprep.mubr.f32.mxu1 %v2458_v40  ;;  %v3039_v40 = vpop.permute.xlu1 %3038 }
 0x26b   :  { %6017 = vmatmul.mubr.f32.gmra.mrb[52].mxu1 %v2459_v29  ;;  %v3034_v29 = vpop.permute.xlu0 %3033 }
 0x26c   :  { %6019 = vmatprep.mubr.f32.mxu1 %v2460_v57  ;;  %v3049_v57 = vpop.permute.xlu1 %3048 }
 0x26f   :  { %6020 = vmatmul.mubr.f32.gmra.mrb[54].mxu1 %v2461_v37  ;;  %v3044_v37 = vpop.permute.xlu0 %3043 }
 0x270   :  { %6022 = vmatprep.mubr.f32.mxu1 %v2462_v2  ;;  %v3059_v2 = vpop.permute.xlu1 %3058 }
 0x273   :  { %6023 = vmatmul.mubr.f32.gmra.mrb[56].mxu1 %v2463_v50  ;;  %v3054_v50 = vpop.permute.xlu0 %3053 }
 0x274   :  { %6025 = vmatprep.mubr.f32.mxu1 %v2464_v52  ;;  %v8633_v52 = vpop.permute.xlu1 %3068 }
 0x277   :  { %6026 = vmatmul.mubr.f32.gmra.mrb[58].mxu1 %v2465_v49  ;;  %v8635_v49 = vpop.permute.xlu0 %3063 }
 0x278   :  { %6028 = vmatprep.mubr.f32.mxu1 %v2466_v60  ;;  %v8637_v60 = vpop.permute.xlu1 %3078 }
 0x27b   :  { %6029 = vmatmul.mubr.f32.gmra.mrb[60].mxu1 %v2467_v32  ;;  %v8639_v32 = vpop.permute.xlu0 %3073 }
 0x27c   :  { %6031 = vmatprep.mubr.f32.mxu1 %v2468_v58  ;;  %v8641_v58 = vpop.permute.xlu1 %3088 }
 0x27f   :  { %6032 = vmatmul.mubr.f32.gmra.mrb[62].mxu1 %v2469_v20  ;;  %v8643_v20 = vpop.permute.xlu0 %3083 }
 0x280   :  { %6034 = vmatprep.mubr.f32.mxu1 %v2470_v43  ;;  %v8648_v43 = vld [vmem:[%s9051_s4 + $0x1] ss:$0 sm:$0xff] }
 0x283   :  { %6035 = vmatmul.mubr.f32.gmra.mrb[64].mxu1 %v2471_v63  ;;  %v8650_v63 = vpop.permute.xlu1 %3098 }
 0x284   :  { %6037 = vmatprep.mubr.f32.mxu1 %v2472_v25 }
 0x287   :  { %6038 = vmatmul.mubr.f32.gmra.mrb[66].mxu1 %v2473_v54  ;;  %v8652_v54 = vpop.permute.xlu0 %3093 }
 0x288   :  { %6040 = vmatprep.mubr.f32.mxu1 %v2474_v38 }
 0x28b   :  { %6041 = vmatmul.mubr.f32.gmra.mrb[68].mxu1 %v2475_v41 }
 0x28c   :  { %6043 = vmatprep.mubr.f32.mxu1 %v2476_v0 }
 0x28f   :  { %6044 = vmatmul.mubr.f32.gmra.mrb[70].mxu1 %v2477_v9 }
 0x290   :  { %6046 = vmatprep.mubr.f32.mxu1 %v2478_v4 }
 0x293   :  { %6047 = vmatmul.mubr.f32.gmra.mrb[72].mxu1 %v2479_v11 }
 0x294   :  { %6049 = vmatprep.mubr.f32.mxu1 %v2480_v16 }
 0x297   :  { %6050 = vmatmul.mubr.f32.gmra.mrb[74].mxu1 %v2481_v5 }
 0x298   :  { %6052 = vmatprep.mubr.f32.mxu1 %v2482_v17 }
 0x29b   :  { %6053 = vmatmul.mubr.f32.gmra.mrb[76].mxu1 %v2483_v19  ;;  %v8659_v19 = vpop.permute.xlu1 %3108 }
 0x29c   :  { %6055 = vmatprep.mubr.f32.mxu1 %v2484_v27 }
 0x29f   :  { %6056 = vmatmul.mubr.f32.gmra.mrb[78].mxu1 %v2485_v24 }
 0x2a0   :  { %6058 = vmatprep.mubr.f32.mxu1 %v2486_v46  ;;  %v8664_v46 = vpop.permute.xlu0 %3103 }
 0x2a3   :  { %6059 = vmatmul.mubr.f32.gmra.mrb[80].mxu1 %v2487_v53 }
 0x2a4   :  { %6061 = vmatprep.mubr.f32.mxu1 %v2488_v39  ;;  %v8678_v51 = vpop.permute.xlu0 %3113 }
 0x2a7   :  { %6062 = vmatmul.mubr.f32.gmra.mrb[82].mxu1 %v2489_v55 }
 0x2a8   :  { %6064 = vmatprep.mubr.f32.mxu1 %v2490_v10 }
 0x2ab   :  { %6065 = vmatmul.mubr.f32.gmra.mrb[84].mxu1 %v2491_v45 }
 0x2ac   :  { %6067 = vmatprep.mubr.f32.mxu1 %v2492_v30 }
 0x2af   :  { %6068 = vmatmul.mubr.f32.gmra.mrb[86].mxu1 %v2493_v13 }
 0x2b0   :  { %6070 = vmatprep.mubr.f32.mxu1 %v2494_v59 }
 0x2b3   :  { %6071 = vmatmul.mubr.f32.gmra.mrb[88].mxu1 %v2495_v44 }
 0x2b4   :  { %6073 = vmatprep.mubr.f32.mxu1 %v2496_v21  ;;  %v8675_v21 = vpop.permute.xlu1 %3118 }
 0x2b7   :  { %6074 = vmatmul.mubr.f32.gmra.mrb[90].mxu1 %v2497_v48 }
 0x2b8   :  { %6076 = vmatprep.mubr.f32.mxu1 %v2498_v31  ;;  %v8691_v23 = vpop.permute.xlu1 %3128 }
 0x2bb   :  { %6077 = vmatmul.mubr.f32.gmra.mrb[92].mxu1 %v2499_v35 }
 0x2bc   :  { %6079 = vmatprep.mubr.f32.mxu1 %v2500_v15 }
 0x2bf   :  { %6080 = vmatmul.mubr.f32.gmra.mrb[94].mxu1 %v2501_v8 }
 0x336   :  { %v6012_v25 = vpop.f32.mrb[48].mxu1 }
 0x337   :  { %v2878_v38 = vadd.f32 %v6012_v25, %v8648_v43  ;;  %v2585_v41 = vpop.f32.mrb[49].mxu1 }
 0x338   :  { %v2877_v0 = vadd.f32 %v8648_v43, %v2585_v41 }
 0x339   :  { %v2926_v9 = vmax.f32 %v2878_v38, 0.0 }
 0x33a   :  { %v2925_v4 = vmax.f32 %v2877_v0, 0.0  ;;  %v6015_v11 = vpop.f32.mrb[50].mxu1 }
 0x33b   :  { %v8656_v16 = vmul.f32 %v3029_v7, %v2926_v9  ;;  %v2880_v5 = vadd.f32 %v6015_v11, %v8648_v43  ;;  %v2595_v17 = vpop.f32.mrb[51].mxu1  ;;  %v8696_v7 = vpop.permute.xlu0 %3123 }
 0x33c   :  { %v8661_v27 = vmul.f32 %v3024_v18, %v2925_v4  ;;  %v2879_v24 = vadd.f32 %v8648_v43, %v2595_v17  ;;  %v3411_v4 = vld [vmem:[#allocation7 + $0x30] sm:$0xff]  ;;  %v3412_v17 = vld [vmem:[#allocation7 + $0x38] sm:$0xff] }
 0x33d   :  { %3310 = vst [vmem:[#allocation3 + $0x8] sm:$0xff] %v8656_v16  ;;  %v2928_v53 = vmax.f32 %v2880_v5, 0.0 }
 0x33e   :  { %3309 = vst [vmem:[#allocation3] sm:$0xff] %v8661_v27  ;;  %v2927_v39 = vmax.f32 %v2879_v24, 0.0  ;;  %v6018_v55 = vpop.f32.mrb[52].mxu1  ;;  %v8710_v24 = vpop.permute.xlu1 %3138 }
 0x33f   :  { %v8668_v10 = vmul.f32 %v3039_v40, %v2928_v53  ;;  %v2882_v45 = vadd.f32 %v6018_v55, %v8648_v43  ;;  %v2605_v30 = vpop.f32.mrb[53].mxu1 }
 0x340   :  { %v8671_v13 = vmul.f32 %v3034_v29, %v2927_v39  ;;  %v2881_v59 = vadd.f32 %v8648_v43, %v2605_v30 }
 0x341   :  { %3312 = vst [vmem:[#allocation3 + $0x18] sm:$0xff] %v8668_v10  ;;  %v2930_v44 = vmax.f32 %v2882_v45, 0.0 }
 0x342   :  { %3311 = vst [vmem:[#allocation3 + $0x10] sm:$0xff] %v8671_v13  ;;  %v2929_v12 = vmax.f32 %v2881_v59, 0.0  ;;  %v6021_v6 = vpop.f32.mrb[54].mxu1  ;;  %v8729_v28 = vpop.permute.xlu1 %3148 }
 0x343   :  { %v8680_v48 = vmul.f32 %v3049_v57, %v2930_v44  ;;  %v2884_v31 = vadd.f32 %v6021_v6, %v8648_v43  ;;  %v2615_v3 = vpop.f32.mrb[55].mxu1  ;;  %v3410_v57 = vld [vmem:[#allocation7 + $0x28] sm:$0xff]  ;;  %v6665_v44 = vpack.c.bf16 %v3412_v17, %v3411_v4 }
 0x344   :  { %v8683_v62 = vmul.f32 %v3044_v37, %v2929_v12  ;;  %v2883_v22 = vadd.f32 %v8648_v43, %v2615_v3  ;;  %v6661_v9 = vpack.c.bf16 %v3410_v57, %v3409_v47  ;;  %v3413_v12 = vld [vmem:[#allocation7 + $0x40] sm:$0xff] }
 0x345   :  { %3314 = vst [vmem:[#allocation3 + $0x28] sm:$0xff] %v8680_v48  ;;  %v2932_v35 = vmax.f32 %v2884_v31, 0.0  ;;  %v3421_v15 = vld [vmem:[#allocation3 + $0x1] sm:$0xff] }
 0x346   :  { %3313 = vst [vmem:[#allocation3 + $0x20] sm:$0xff] %v8683_v62  ;;  %v2931_v26 = vmax.f32 %v2883_v22, 0.0  ;;  %v6024_v8 = vpop.f32.mrb[56].mxu1  ;;  %6114 = vmatprep.mubr.f32.mxu0 %v3421_v15 }
 0x347   :  { %v8688_v56 = vmul.f32 %v3059_v2, %v2932_v35  ;;  %v2886_v36 = vadd.f32 %v6024_v8, %v8648_v43  ;;  %v2625_v14 = vpop.f32.mrb[57].mxu1 }
 0x348   :  { %v8693_v33 = vmul.f32 %v3054_v50, %v2931_v26  ;;  %v2885_v42 = vadd.f32 %v8648_v43, %v2625_v14  ;;  %v3415_v14 = vld [vmem:[#allocation7 + $0x50] sm:$0xff] }
 0x349   :  { %3316 = vst [vmem:[#allocation3 + $0x38] sm:$0xff] %v8688_v56  ;;  %v2934_v18 = vmax.f32 %v2886_v36, 0.0  ;;  %v3422_v40 = vld [vmem:[#allocation3 + $0x9] sm:$0xff]  ;;  %v3423_v29 = vld [vmem:[#allocation3 + $0x11] sm:$0xff] }
 0x34a   :  { %3315 = vst [vmem:[#allocation3 + $0x30] sm:$0xff] %v8693_v33  ;;  %v2933_v37 = vmax.f32 %v2885_v42, 0.0  ;;  %v6027_v2 = vpop.f32.mrb[58].mxu1  ;;  %6115 = vmatmul.mubr.f32.vlgmr.msra.gmra.mrb[48].mxu0 %v3422_v40 }
 0x34b   :  { %v8701_v50 = vmul.f32 %v8633_v52, %v2934_v18  ;;  %v2888_v25 = vadd.f32 %v6027_v2, %v8648_v43  ;;  %v2635_v38 = vpop.f32.mrb[59].mxu1  ;;  %6117 = vmatprep.mubr.f32.mxu0 %v3423_v29  ;;  %6656 = vmatpush3.bf16.msra.mxu0 %v8630_v61  ;;  %v3416_v18 = vld [vmem:[#allocation7 + $0x58] sm:$0xff] }
 0x34c   :  { %v8706_v41 = vmul.f32 %v8635_v49, %v2933_v37  ;;  %v2887_v0 = vadd.f32 %v8648_v43, %v2635_v38  ;;  %6658 = vmatprep.subr.bf16.mxu0 %v6657_v1  ;;  %v8713_v49 = vpop.permute.xlu0 %3133  ;;  %v6673_v38 = vpack.c.bf16 %v3416_v18, %v3415_v14 }
 0x34d   :  { %3318 = vst [vmem:[#allocation3 + $0x48] sm:$0xff] %v8701_v50  ;;  %v2936_v11 = vmax.f32 %v2888_v25, 0.0  ;;  %v3424_v5 = vld [vmem:[#allocation3 + $0x19] sm:$0xff]  ;;  %v3425_v52 = vld [vmem:[#allocation3 + $0x21] sm:$0xff] }
 0x34e   :  { %3317 = vst [vmem:[#allocation3 + $0x40] sm:$0xff] %v8706_v41  ;;  %v2935_v53 = vmax.f32 %v2887_v0, 0.0  ;;  %v6030_v61 = vpop.f32.mrb[60].mxu1  ;;  %6118 = vmatmul.mubr.f32.gmra.mrb[50].mxu0 %v3424_v5  ;;  %v3417_v0 = vld [vmem:[#allocation7 + $0x60] sm:$0xff]  ;;  %v8748_v5 = vpop.permute.xlu1 %3158 }
 0x34f   :  { %v8716_v39 = vmul.f32 %v8637_v60, %v2936_v11  ;;  %v2890_v55 = vadd.f32 %v6030_v61, %v8648_v43  ;;  %v2645_v45 = vpop.f32.mrb[61].mxu1  ;;  %6120 = vmatprep.mubr.f32.mxu0 %v3425_v52  ;;  %6660 = vmatpush3.bf16.msra.mxu0 %v6657_v1  ;;  %v3414_v60 = vld [vmem:[#allocation7 + $0x48] sm:$0xff] }
 0x350   :  { %v8720_v30 = vmul.f32 %v8639_v32, %v2935_v53  ;;  %v2889_v59 = vadd.f32 %v8648_v43, %v2645_v45  ;;  %6662 = vmatprep.subr.bf16.mxu0 %v6661_v9  ;;  %v6669_v36 = vpack.c.bf16 %v3414_v60, %v3413_v12  ;;  %v8735_v42 = vpop.permute.xlu0 %3143  ;;  %v3419_v12 = vld [vmem:[#allocation7 + $0x70] sm:$0xff] }
 0x351   :  { %3320 = vst [vmem:[#allocation3 + $0x58] sm:$0xff] %v8716_v39  ;;  %v2938_v6 = vmax.f32 %v2890_v55, 0.0  ;;  %v3426_v31 = vld [vmem:[#allocation3 + $0x29] sm:$0xff]  ;;  %v3427_v3 = vld [vmem:[#allocation3 + $0x31] sm:$0xff] }
 0x352   :  { %3319 = vst [vmem:[#allocation3 + $0x50] sm:$0xff] %v8720_v30  ;;  %v2937_v22 = vmax.f32 %v2889_v59, 0.0  ;;  %v6033_v35 = vpop.f32.mrb[62].mxu1  ;;  %6121 = vmatmul.mubr.f32.gmra.mrb[52].mxu0 %v3426_v31 }
 0x353   :  { %v8726_v15 = vmul.f32 %v8641_v58, %v2938_v6  ;;  %v2892_v32 = vadd.f32 %v6033_v35, %v8648_v43  ;;  %v2655_v34 = vpop.f32.mrb[63].mxu1  ;;  %6123 = vmatprep.mubr.f32.mxu0 %v3427_v3  ;;  %6664 = vmatpush3.bf16.msra.mxu0 %v6661_v9 }
 0x354   :  { %v8732_v26 = vmul.f32 %v8643_v20, %v2937_v22  ;;  %v2891_v8 = vadd.f32 %v8648_v43, %v2655_v34  ;;  %6666 = vmatprep.subr.bf16.mxu0 %v6665_v44  ;;  %v8767_v34 = vpop.permute.xlu1 %3168 }
 0x355   :  { %3322 = vst [vmem:[#allocation3 + $0x68] sm:$0xff] %v8726_v15  ;;  %v2940_v58 = vmax.f32 %v2892_v32, 0.0  ;;  %v3428_v1 = vld [vmem:[#allocation3 + $0x39] sm:$0xff]  ;;  %v3429_v47 = vld [vmem:[#allocation3 + $0x41] sm:$0xff] }
 0x356   :  { %3321 = vst [vmem:[#allocation3 + $0x60] sm:$0xff] %v8732_v26  ;;  %v2939_v40 = vmax.f32 %v2891_v8, 0.0  ;;  %v6036_v29 = vpop.f32.mrb[64].mxu1  ;;  %6124 = vmatmul.mubr.f32.gmra.mrb[54].mxu0 %v3428_v1 }
 0x357   :  { %v8740_v20 = vmul.f32 %v8650_v63, %v2940_v58  ;;  %v2894_v57 = vadd.f32 %v6036_v29, %v8648_v43  ;;  %v2665_v37 = vpop.f32.mrb[65].mxu1  ;;  %6126 = vmatprep.mubr.f32.mxu0 %v3429_v47  ;;  %6668 = vmatpush3.bf16.msra.mxu0 %v6665_v44  ;;  %v3418_v63 = vld [vmem:[#allocation7 + $0x68] sm:$0xff] }
 0x358   :  { %v8744_v2 = vmul.f32 %v8652_v54, %v2939_v40  ;;  %v2893_v25 = vadd.f32 %v8648_v43, %v2665_v37  ;;  %6670 = vmatprep.subr.bf16.mxu0 %v6669_v36  ;;  %v8751_v54 = vpop.permute.xlu0 %3153  ;;  %v6677_v44 = vpack.c.bf16 %v3418_v63, %v3417_v0 }
 0x359   :  { %3324 = vst [vmem:[#allocation3 + $0x78] sm:$0xff] %v8740_v20  ;;  %v2942_v9 = vmax.f32 %v2894_v57, 0.0  ;;  %v3430_v4 = vld [vmem:[#allocation3 + $0x49] sm:$0xff]  ;;  %v3431_v11 = vld [vmem:[#allocation3 + $0x51] sm:$0xff] }
 0x35a   :  { %3323 = vst [vmem:[#allocation3 + $0x70] sm:$0xff] %v8744_v2  ;;  %v2941_v52 = vmax.f32 %v2893_v25, 0.0  ;;  %v6039_v17 = vpop.f32.mrb[66].mxu1  ;;  %6127 = vmatmul.mubr.f32.gmra.mrb[56].mxu0 %v3430_v4  ;;  %v8786_v4 = vpop.permute.xlu1 %3178 }
 0x35b   :  { %v8754_v53 = vmul.f32 %v8659_v19, %v2942_v9  ;;  %v2896_v61 = vadd.f32 %v6039_v17, %v8648_v43  ;;  %v2675_v55 = vpop.f32.mrb[67].mxu1  ;;  %6129 = vmatprep.mubr.f32.mxu0 %v3431_v11  ;;  %6672 = vmatpush3.bf16.msra.mxu0 %v6669_v36  ;;  %v3420_v19 = vld [vmem:[#allocation7 + $0x78] sm:$0xff] }
 0x35c   :  { %v8758_v45 = vmul.f32 %v8664_v46, %v2941_v52  ;;  %v2895_v59 = vadd.f32 %v8648_v43, %v2675_v55  ;;  %6674 = vmatprep.subr.bf16.mxu0 %v6673_v38  ;;  %v6681_v14 = vpack.c.bf16 %v3420_v19, %v3419_v12  ;;  %v8773_v58 = vpop.permute.xlu0 %3163  ;;  %v4146_v55 = vld [vmem:[#allocation7 + $0x108] sm:$0xff] }
 0x35d   :  { %3326 = vst [vmem:[#allocation3 + $0x88] sm:$0xff] %v8754_v53  ;;  %v2944_v6 = vmax.f32 %v2896_v61, 0.0  ;;  %v3432_v31 = vld [vmem:[#allocation3 + $0x59] sm:$0xff]  ;;  %v3433_v3 = vld [vmem:[#allocation3 + $0x61] sm:$0xff] }
 0x35e   :  { %3325 = vst [vmem:[#allocation3 + $0x80] sm:$0xff] %v8758_v45  ;;  %v2943_v60 = vmax.f32 %v2895_v59, 0.0  ;;  %v6042_v22 = vpop.f32.mrb[68].mxu1  ;;  %6130 = vmatmul.mubr.f32.gmra.mrb[58].mxu0 %v3432_v31  ;;  %v4145_v61 = vld [vmem:[#allocation7 + $0x100] sm:$0xff] }
 0x35f   :  { %v8764_v35 = vmul.f32 %v8675_v21, %v2944_v6  ;;  %v2898_v46 = vadd.f32 %v6042_v22, %v8648_v43  ;;  %v2685_v32 = vpop.f32.mrb[69].mxu1  ;;  %6132 = vmatprep.mubr.f32.mxu0 %v3433_v3  ;;  %6676 = vmatpush3.bf16.msra.mxu0 %v6673_v38  ;;  %v8799_v12 = vpack.c.bf16 %v4146_v55, %v4145_v61 }
 0x360   :  { %v8770_v8 = vmul.f32 %v8678_v51, %v2943_v60  ;;  %v2897_v36 = vadd.f32 %v8648_v43, %v2685_v32  ;;  %6678 = vmatprep.subr.bf16.mxu0 %v6677_v44  ;;  %v8789_v63 = vpop.permute.xlu0 %3173 }
 0x361   :  { %3328 = vst [vmem:[#allocation3 + $0x98] sm:$0xff] %v8764_v35  ;;  %v2946_v21 = vmax.f32 %v2898_v46, 0.0  ;;  %v3434_v1 = vld [vmem:[#allocation3 + $0x69] sm:$0xff]  ;;  %v3435_v47 = vld [vmem:[#allocation3 + $0x71] sm:$0xff]  ;;  %v3189_v46 = vpop.permute.xlu1 %3188 }
 0x362   :  { %3327 = vst [vmem:[#allocation3 + $0x90] sm:$0xff] %v8770_v8  ;;  %v2945_v18 = vmax.f32 %v2897_v36, 0.0  ;;  %v6045_v40 = vpop.f32.mrb[70].mxu1  ;;  %6133 = vmatmul.mubr.f32.gmra.mrb[60].mxu0 %v3434_v1 }
 0x363   :  { %v8778_v29 = vmul.f32 %v8691_v23, %v2946_v21  ;;  %v2900_v51 = vadd.f32 %v6045_v40, %v8648_v43  ;;  %v2695_v57 = vpop.f32.mrb[71].mxu1  ;;  %6135 = vmatprep.mubr.f32.mxu0 %v3435_v47  ;;  %6680 = vmatpush3.bf16.msra.mxu0 %v6677_v44 }
 0x364   :  { %v8782_v37 = vmul.f32 %v8696_v7, %v2945_v18  ;;  %v2899_v25 = vadd.f32 %v8648_v43, %v2695_v57  ;;  %6682 = vmatprep.subr.bf16.mxu0 %v6681_v14 }
 0x365   :  { %3330 = vst [vmem:[#allocation3 + $0xa8] sm:$0xff] %v8778_v29  ;;  %v2948_v38 = vmax.f32 %v2900_v51, 0.0  ;;  %v3436_v0 = vld [vmem:[#allocation3 + $0x79] sm:$0xff]  ;;  %v3437_v9 = vld [vmem:[#allocation3 + $0x81] sm:$0xff] }
 0x366   :  { %3329 = vst [vmem:[#allocation3 + $0xa0] sm:$0xff] %v8782_v37  ;;  %v2947_v23 = vmax.f32 %v2899_v25, 0.0  ;;  %v6048_v11 = vpop.f32.mrb[72].mxu1  ;;  %6136 = vmatmul.mubr.f32.gmra.mrb[62].mxu0 %v3436_v0 }
 0x367   :  { %v8792_v7 = vmul.f32 %v8710_v24, %v2948_v38  ;;  %v2902_v52 = vadd.f32 %v6048_v11, %v8648_v43  ;;  %v2705_v17 = vpop.f32.mrb[73].mxu1  ;;  %6138 = vmatprep.mubr.f32.mxu0 %v3437_v9  ;;  %6684 = vmatpush3.bf16.msra.mxu0 %v6681_v14  ;;  %v3184_v14 = vpop.permute.xlu0 %3183 }
 0x368   :  { %v8796_v59 = vmul.f32 %v8713_v49, %v2947_v23  ;;  %v2901_v44 = vadd.f32 %v8648_v43, %v2705_v17  ;;  %6686 = vmatprep.subr.bf16.mxu0 %v8799_v12  ;;  %v3199_v23 = vpop.permute.xlu1 %3198 }
 0x369   :  { %3332 = vst [vmem:[#allocation3 + $0xb8] sm:$0xff] %v8792_v7  ;;  %v2950_v6 = vmax.f32 %v2902_v52, 0.0  ;;  %v3438_v31 = vld [vmem:[#allocation3 + $0x89] sm:$0xff]  ;;  %v3439_v24 = vld [vmem:[#allocation3 + $0x91] sm:$0xff] }
 0x36a   :  { %3331 = vst [vmem:[#allocation3 + $0xb0] sm:$0xff] %v8796_v59  ;;  %v2949_v3 = vmax.f32 %v2901_v44, 0.0  ;;  %v6051_v19 = vpop.f32.mrb[74].mxu1  ;;  %6139 = vmatmul.mubr.f32.gmra.mrb[64].mxu0 %v3438_v31 }
 0x36b   :  { %v8805_v60 = vmul.f32 %v8729_v28, %v2950_v6  ;;  %v2904_v49 = vadd.f32 %v6051_v19, %v8648_v43  ;;  %v2715_v22 = vpop.f32.mrb[75].mxu1  ;;  %6141 = vmatprep.mubr.f32.mxu0 %v3439_v24  ;;  %v3194_v52 = vpop.permute.xlu0 %3193 }
 0x36c   :  { %v8809_v32 = vmul.f32 %v8735_v42, %v2949_v3  ;;  %v2903_v36 = vadd.f32 %v8648_v43, %v2715_v22 }
 0x36d   :  { %3334 = vst [vmem:[#allocation3 + $0xc8] sm:$0xff] %v8805_v60  ;;  %v2952_v21 = vmax.f32 %v2904_v49, 0.0  ;;  %v3440_v1 = vld [vmem:[#allocation3 + $0x99] sm:$0xff]  ;;  %v3441_v47 = vld [vmem:[#allocation3 + $0xa1] sm:$0xff] }
 0x36e   :  { %3333 = vst [vmem:[#allocation3 + $0xc0] sm:$0xff] %v8809_v32  ;;  %v2951_v28 = vmax.f32 %v2903_v36, 0.0  ;;  %v6054_v18 = vpop.f32.mrb[76].mxu1  ;;  %6142 = vmatmul.mubr.f32.gmra.mrb[66].mxu0 %v3440_v1 }
 0x36f   :  { %v8815_v40 = vmul.f32 %v8748_v5, %v2952_v21  ;;  %v2906_v51 = vadd.f32 %v6054_v18, %v8648_v43  ;;  %v2725_v42 = vpop.f32.mrb[77].mxu1  ;;  %6144 = vmatprep.mubr.f32.mxu0 %v3441_v47  ;;  %v3204_v1 = vpop.permute.xlu0 %3203 }
 0x370   :  { %v8819_v57 = vmul.f32 %v8751_v54, %v2951_v28  ;;  %v2905_v25 = vadd.f32 %v8648_v43, %v2725_v42 }
 0x371   :  { %3336 = vst [vmem:[#allocation3 + $0xd8] sm:$0xff] %v8815_v40  ;;  %v2954_v38 = vmax.f32 %v2906_v51, 0.0  ;;  %v3442_v0 = vld [vmem:[#allocation3 + $0xa9] sm:$0xff]  ;;  %v3443_v9 = vld [vmem:[#allocation3 + $0xb1] sm:$0xff] }
 0x372   :  { %3335 = vst [vmem:[#allocation3 + $0xd0] sm:$0xff] %v8819_v57  ;;  %v2953_v11 = vmax.f32 %v2905_v25, 0.0  ;;  %v6057_v5 = vpop.f32.mrb[78].mxu1  ;;  %6145 = vmatmul.mubr.f32.gmra.mrb[68].mxu0 %v3442_v0 }
 0x373   :  { %v8825_v17 = vmul.f32 %v8767_v34, %v2954_v38  ;;  %v2908_v54 = vadd.f32 %v6057_v5, %v8648_v43  ;;  %v2735_v61 = vpop.f32.mrb[79].mxu1  ;;  %6147 = vmatprep.mubr.f32.mxu0 %v3443_v9 }
 0x374   :  { %v8829_v55 = vmul.f32 %v8773_v58, %v2953_v11  ;;  %v2907_v44 = vadd.f32 %v8648_v43, %v2735_v61  ;;  %v3209_v58 = vpop.permute.xlu1 %3208 }
 0x375   :  { %3338 = vst [vmem:[#allocation3 + $0xe8] sm:$0xff] %v8825_v17  ;;  %v2956_v6 = vmax.f32 %v2908_v54, 0.0  ;;  %v3444_v31 = vld [vmem:[#allocation3 + $0xb9] sm:$0xff]  ;;  %v3445_v24 = vld [vmem:[#allocation3 + $0xc1] sm:$0xff] }
 0x376   :  { %3337 = vst [vmem:[#allocation3 + $0xe0] sm:$0xff] %v8829_v55  ;;  %v2955_v3 = vmax.f32 %v2907_v44, 0.0  ;;  %v6060_v19 = vpop.f32.mrb[80].mxu1  ;;  %6148 = vmatmul.mubr.f32.gmra.mrb[70].mxu0 %v3444_v31 }
 0x377   :  { %v8835_v34 = vmul.f32 %v8786_v4, %v2956_v6  ;;  %v2910_v49 = vadd.f32 %v6060_v19, %v8648_v43  ;;  %v2745_v22 = vpop.f32.mrb[81].mxu1  ;;  %6150 = vmatprep.mubr.f32.mxu0 %v3445_v24 }
 0x378   :  { %v8839_v36 = vmul.f32 %v8789_v63, %v2955_v3  ;;  %v2909_v21 = vadd.f32 %v8648_v43, %v2745_v22  ;;  %v3219_v54 = vpop.permute.xlu1 %3218 }
 0x379   :  { %3340 = vst [vmem:[#allocation3 + $0xf8] sm:$0xff] %v8835_v34  ;;  %v2958_v47 = vmax.f32 %v2910_v49, 0.0  ;;  %v3446_v28 = vld [vmem:[#allocation3 + $0xc9] sm:$0xff]  ;;  %v3447_v18 = vld [vmem:[#allocation3 + $0xd1] sm:$0xff] }
 0x37a   :  { %3339 = vst [vmem:[#allocation3 + $0xf0] sm:$0xff] %v8839_v36  ;;  %v2957_v4 = vmax.f32 %v2909_v21, 0.0  ;;  %v6063_v51 = vpop.f32.mrb[82].mxu1  ;;  %6151 = vmatmul.mubr.f32.gmra.mrb[72].mxu0 %v3446_v28 }
 0x37b   :  { %v8844_v42 = vmul.f32 %v3189_v46, %v2958_v47  ;;  %v2912_v25 = vadd.f32 %v6063_v51, %v8648_v43  ;;  %v2755_v38 = vpop.f32.mrb[83].mxu1  ;;  %6153 = vmatprep.mubr.f32.mxu0 %v3447_v18  ;;  %v3214_v46 = vpop.permute.xlu0 %3213 }
 0x37c   :  { %v8847_v63 = vmul.f32 %v3184_v14, %v2957_v4  ;;  %v2911_v0 = vadd.f32 %v8648_v43, %v2755_v38 }
 0x37d   :  { %3342 = vst [vmem:[#allocation3 + $0x108] sm:$0xff] %v8844_v42  ;;  %v2960_v9 = vmax.f32 %v2912_v25, 0.0  ;;  %v3448_v11 = vld [vmem:[#allocation3 + $0xd9] sm:$0xff]  ;;  %v3449_v5 = vld [vmem:[#allocation3 + $0xe1] sm:$0xff] }
 0x37e   :  { %3341 = vst [vmem:[#allocation3 + $0x100] sm:$0xff] %v8847_v63  ;;  %v2959_v61 = vmax.f32 %v2911_v0, 0.0  ;;  %v6066_v44 = vpop.f32.mrb[84].mxu1  ;;  %6154 = vmatmul.mubr.f32.gmra.mrb[74].mxu0 %v3448_v11 }
 0x37f   :  { %v8852_v6 = vmul.f32 %v3199_v23, %v2960_v9  ;;  %v2914_v31 = vadd.f32 %v6066_v44, %v8648_v43  ;;  %v2765_v14 = vpop.f32.mrb[85].mxu1  ;;  %6156 = vmatprep.mubr.f32.mxu0 %v3449_v5  ;;  %v3224_v25 = vpop.permute.xlu0 %3223 }
 0x380   :  { %v8855_v24 = vmul.f32 %v3194_v52, %v2959_v61  ;;  %v2913_v3 = vadd.f32 %v8648_v43, %v2765_v14  ;;  %v3229_v52 = vpop.permute.xlu1 %3228 }
 0x381   :  { %3344 = vst [vmem:[#allocation3 + $0x118] sm:$0xff] %v8852_v6  ;;  %v2962_v19 = vmax.f32 %v2914_v31, 0.0  ;;  %v3450_v49 = vld [vmem:[#allocation3 + $0xe9] sm:$0xff]  ;;  %v3451_v22 = vld [vmem:[#allocation3 + $0xf1] sm:$0xff] }
 0x382   :  { %3343 = vst [vmem:[#allocation3 + $0x110] sm:$0xff] %v8855_v24  ;;  %v2961_v21 = vmax.f32 %v2913_v3, 0.0  ;;  %v6069_v47 = vpop.f32.mrb[86].mxu1  ;;  %6157 = vmatmul.mubr.f32.gmra.mrb[76].mxu0 %v3450_v49 }
 0x383   :  { %v8860_v23 = vmul.f32 %v3209_v58, %v2962_v19  ;;  %v2916_v28 = vadd.f32 %v6069_v47, %v8648_v43  ;;  %v2775_v18 = vpop.f32.mrb[87].mxu1  ;;  %6159 = vmatprep.mubr.f32.mxu0 %v3451_v22 }
 0x384   :  { %v8863_v4 = vmul.f32 %v3204_v1, %v2961_v21  ;;  %v2915_v51 = vadd.f32 %v8648_v43, %v2775_v18  ;;  %v3239_v49 = vpop.permute.xlu1 %3238 }
 0x385   :  { %3346 = vst [vmem:[#allocation3 + $0x128] sm:$0xff] %v8860_v23  ;;  %v2964_v38 = vmax.f32 %v2916_v28, 0.0  ;;  %v3452_v0 = vld [vmem:[#allocation3 + $0xf9] sm:$0xff]  ;;  %v3453_v9 = vld [vmem:[#allocation3 + $0x101] sm:$0xff] }
 0x386   :  { %3345 = vst [vmem:[#allocation3 + $0x120] sm:$0xff] %v8863_v4  ;;  %v2963_v11 = vmax.f32 %v2915_v51, 0.0  ;;  %v6072_v58 = vpop.f32.mrb[88].mxu1  ;;  %6160 = vmatmul.mubr.f32.gmra.mrb[78].mxu0 %v3452_v0 }
 0x387   :  { %v8868_v5 = vmul.f32 %v3219_v54, %v2964_v38  ;;  %v2918_v61 = vadd.f32 %v6072_v58, %v8648_v43  ;;  %v2785_v44 = vpop.f32.mrb[89].mxu1  ;;  %6162 = vmatprep.mubr.f32.mxu0 %v3453_v9  ;;  %v3234_v54 = vpop.permute.xlu0 %3233 }
 0x388   :  { %v8871_v1 = vmul.f32 %v3214_v46, %v2963_v11  ;;  %v2917_v31 = vadd.f32 %v8648_v43, %v2785_v44 }
 0x389   :  { %3348 = vst [vmem:[#allocation3 + $0x138] sm:$0xff] %v8868_v5  ;;  %v2966_v14 = vmax.f32 %v2918_v61, 0.0  ;;  %v3454_v3 = vld [vmem:[#allocation3 + $0x109] sm:$0xff]  ;;  %v3455_v19 = vld [vmem:[#allocation3 + $0x111] sm:$0xff] }
 0x38a   :  { %3347 = vst [vmem:[#allocation3 + $0x130] sm:$0xff] %v8871_v1  ;;  %v2965_v22 = vmax.f32 %v2917_v31, 0.0  ;;  %v6075_v21 = vpop.f32.mrb[90].mxu1  ;;  %6163 = vmatmul.mubr.f32.gmra.mrb[80].mxu0 %v3454_v3 }
 0x38b   :  { %v8876_v47 = vmul.f32 %v3229_v52, %v2966_v14  ;;  %v2920_v28 = vadd.f32 %v6075_v21, %v8648_v43  ;;  %v2795_v46 = vpop.f32.mrb[91].mxu1  ;;  %6165 = vmatprep.mubr.f32.mxu0 %v3455_v19  ;;  %v3244_v3 = vpop.permute.xlu0 %3243 }
 0x38c   :  { %v8879_v18 = vmul.f32 %v3224_v25, %v2965_v22  ;;  %v2919_v51 = vadd.f32 %v8648_v43, %v2795_v46  ;;  %v3249_v25 = vpop.permute.xlu1 %3248 }
 0x38d   :  { %3350 = vst [vmem:[#allocation3 + $0x148] sm:$0xff] %v8876_v47  ;;  %v2968_v38 = vmax.f32 %v2920_v28, 0.0  ;;  %v3456_v0 = vld [vmem:[#allocation3 + $0x119] sm:$0xff]  ;;  %v3457_v9 = vld [vmem:[#allocation3 + $0x121] sm:$0xff] }
 0x38e   :  { %3349 = vst [vmem:[#allocation3 + $0x140] sm:$0xff] %v8879_v18  ;;  %v2967_v11 = vmax.f32 %v2919_v51, 0.0  ;;  %v6078_v58 = vpop.f32.mrb[92].mxu1  ;;  %6166 = vmatmul.mubr.f32.gmra.mrb[82].mxu0 %v3456_v0 }
 0x38f   :  { %v8884_v52 = vmul.f32 %v3239_v49, %v2968_v38  ;;  %v2922_v61 = vadd.f32 %v6078_v58, %v8648_v43  ;;  %v2805_v44 = vpop.f32.mrb[93].mxu1  ;;  %6168 = vmatprep.mubr.f32.mxu0 %v3457_v9 }
 0x390   :  { %v8887_v31 = vmul.f32 %v3234_v54, %v2967_v11  ;;  %v2921_v14 = vadd.f32 %v8648_v43, %v2805_v44 }
 0x391   :  { %3352 = vst [vmem:[#allocation3 + $0x158] sm:$0xff] %v8884_v52  ;;  %v2970_v19 = vmax.f32 %v2922_v61, 0.0  ;;  %v3458_v22 = vld [vmem:[#allocation3 + $0x129] sm:$0xff]  ;;  %v3459_v21 = vld [vmem:[#allocation3 + $0x131] sm:$0xff]  ;;  %v3259_v61 = vpop.permute.xlu1 %3258 }
 0x392   :  { %3351 = vst [vmem:[#allocation3 + $0x150] sm:$0xff] %v8887_v31  ;;  %v2969_v28 = vmax.f32 %v2921_v14, 0.0  ;;  %v6081_v49 = vpop.f32.mrb[94].mxu1  ;;  %6169 = vmatmul.mubr.f32.gmra.mrb[84].mxu0 %v3458_v22 }
 0x393   :  { %v8892_v46 = vmul.f32 %v3249_v25, %v2970_v19  ;;  %v2924_v51 = vadd.f32 %v6081_v49, %v8648_v43  ;;  %v2815_v38 = vpop.f32.mrb[95].mxu1  ;;  %6171 = vmatprep.mubr.f32.mxu0 %v3459_v21  ;;  %v3254_v25 = vpop.permute.xlu0 %3253 }
 0x394   :  { %v8895_v54 = vmul.f32 %v3244_v3, %v2969_v28  ;;  %v2923_v0 = vadd.f32 %v8648_v43, %v2815_v38  ;;  %v4147_v38 = vld [vmem:[#allocation7 + $0x110] sm:$0xff] }
 0x395   :  { %3354 = vst [vmem:[#allocation3 + $0x168] sm:$0xff] %v8892_v46  ;;  %v2972_v9 = vmax.f32 %v2924_v51, 0.0  ;;  %v3460_v11 = vld [vmem:[#allocation3 + $0x139] sm:$0xff]  ;;  %v3461_v58 = vld [vmem:[#allocation3 + $0x141] sm:$0xff] }
 0x396   :  { %3353 = vst [vmem:[#allocation3 + $0x160] sm:$0xff] %v8895_v54  ;;  %v2971_v44 = vmax.f32 %v2923_v0, 0.0  ;;  %6172 = vmatmul.mubr.f32.gmra.mrb[86].mxu0 %v3460_v11  ;;  %v4148_v0 = vld [vmem:[#allocation7 + $0x118] sm:$0xff]  ;;  %v4149_v11 = vld [vmem:[#allocation7 + $0x120] sm:$0xff] }
 0x397   :  { %v8900_v14 = vmul.f32 %v3259_v61, %v2972_v9  ;;  %6174 = vmatprep.mubr.f32.mxu0 %v3461_v58  ;;  %v6689_v9 = vpack.c.bf16 %v4148_v0, %v4147_v38  ;;  %v4150_v58 = vld [vmem:[#allocation7 + $0x128] sm:$0xff] }
 0x398   :  { %v8902_v19 = vmul.f32 %v3254_v25, %v2971_v44  ;;  %v6693_v61 = vpack.c.bf16 %v4150_v58, %v4149_v11  ;;  %v4151_v44 = vld [vmem:[#allocation7 + $0x130] sm:$0xff]  ;;  %v4152_v25 = vld [vmem:[#allocation7 + $0x138] sm:$0xff] }
 0x399   :  { %3356 = vst [vmem:[#allocation3 + $0x178] sm:$0xff] %v8900_v14  ;;  %v3462_v3 = vld [vmem:[#allocation3 + $0x149] sm:$0xff]  ;;  %v3463_v43 = vld [vmem:[#allocation3 + $0x151] sm:$0xff] }
 0x39a   :  { %3355 = vst [vmem:[#allocation3 + $0x170] sm:$0xff] %v8902_v19  ;;  %6175 = vmatmul.mubr.f32.gmra.mrb[88].mxu0 %v3462_v3  ;;  %v4153_v3 = vld [vmem:[#allocation7 + $0x140] sm:$0xff] }
 0x39b   :  { %6177 = vmatprep.mubr.f32.mxu0 %v3463_v43  ;;  %v4154_v43 = vld [vmem:[#allocation7 + $0x148] sm:$0xff] }
 0x39d   :  { %v3464_v22 = vld [vmem:[#allocation3 + $0x159] sm:$0xff]  ;;  %v3465_v21 = vld [vmem:[#allocation3 + $0x161] sm:$0xff] }
 0x39e   :  { %6178 = vmatmul.mubr.f32.gmra.mrb[90].mxu0 %v3464_v22  ;;  %v4158_v22 = vld [vmem:[#allocation7 + $0x168] sm:$0xff]  ;;  %v4139_v38 = vld [vmem:[#allocation3 + $0x15a] sm:$0xff]  ;;  %v4140_v0 = vld [vmem:[#allocation3 + $0x162] sm:$0xff] }
 0x39f   :  { %6180 = vmatprep.mubr.f32.mxu0 %v3465_v21  ;;  %v4160_v21 = vld [vmem:[#allocation7 + $0x178] sm:$0xff] }
 0x3a0   :  { %v3468_v51 = vld [vmem:[#allocation3 + $0x179] sm:$0xff] }
 0x3a1   :  { %v3466_v28 = vld [vmem:[#allocation3 + $0x169] sm:$0xff]  ;;  %v3467_v49 = vld [vmem:[#allocation3 + $0x171] sm:$0xff]  ;;  %v4143_v58 = vld [vmem:[#allocation3 + $0x17a] sm:$0xff] }
 0x3a2   :  { %6181 = vmatmul.mubr.f32.gmra.mrb[92].mxu0 %v3466_v28  ;;  %v4136_v28 = vld [vmem:[#allocation3 + $0x142] sm:$0xff]  ;;  %v4142_v11 = vld [vmem:[#allocation3 + $0x172] sm:$0xff] }
 0x3a3   :  { %6183 = vmatprep.mubr.f32.mxu0 %v3467_v49  ;;  %v4137_v49 = vld [vmem:[#allocation3 + $0x14a] sm:$0xff] }
 0x3a6   :  { %6184 = vmatmul.mubr.f32.gmra.mrb[94].mxu0 %v3468_v51  ;;  %v4138_v51 = vld [vmem:[#allocation3 + $0x152] sm:$0xff] }
 0x3a7   :  { %6218 = vmatprep.mubr.f32.mxu0 %v8661_v27  ;;  %v6697_v27 = vpack.c.bf16 %v4152_v25, %v4151_v44  ;;  %v8958_v44 = vld [vmem:[%s9051_s4 + $0x2] ss:$0 sm:$0xff]  ;;  %s7184_s4 = smov [#allocation10]  }
 0x3a8   :  { %s4778_s6 = sshll.u32 %s7184_s4, 4  ;;  %s4779_s6 = int_to_ptr.vmem [resolvable:$true] %s4778_s6 }
 0x3a9   :  { %s7147_s23 = scalar_lea.vmem %s4779_s6, 256  ;;  %p7152_p11 = scmp.lt.s32.totalorder %s4779_s6, %s4779_s6 }
 0x3aa   :  { %6219 = vmatmul.mubr.f32.vlgmr.msra.gmra.mrb[48].mxu0 %v8656_v16  ;;  %v6701_v16 = vpack.c.bf16 %v4154_v43, %v4153_v3  ;;  %p7148_p10 = scmp.ne.s32.totalorder %s4779_s6, %s7147_s23  ;;  %p7153_p12 = scmp.lt.s32.totalorder %s7147_s23, %s7147_s23 }
 0x3ab   :  { %6221 = vmatprep.mubr.f32.mxu0 %v8671_v13  ;;  %6688 = vmatpush3.bf16.msra.mxu0 %v8799_v12  ;;  %v4155_v13 = vld [vmem:[#allocation7 + $0x150] sm:$0xff]  ;;  %v4156_v12 = vld [vmem:[#allocation7 + $0x158] sm:$0xff] }
 0x3ac   :  { %6690 = vmatprep.subr.bf16.mxu0 %v6689_v9  ;;  %p7154_p13 = por %p7153_p12, %p7152_p11 }
 0x3ae   :  { %6222 = vmatmul.mubr.f32.gmra.mrb[50].mxu0 %v8668_v10  ;;  %v6705_v10 = vpack.c.bf16 %v4156_v12, %v4155_v13  ;;  %p7155_p0 = pnand %p7154_p13, %p7148_p10 }
 0x3af   :  { %6224 = vmatprep.mubr.f32.mxu0 %v8683_v62  ;;  %6692 = vmatpush3.bf16.msra.mxu0 %v6689_v9  ;;  %v4157_v62 = vld [vmem:[#allocation7 + $0x160] sm:$0xff] }
 0x3b0   :  { %6694 = vmatprep.subr.bf16.mxu0 %v6693_v61  ;;  %v4141_v9 = vld [vmem:[#allocation3 + $0x16a] sm:$0xff] }
 0x3b2   :  { %6225 = vmatmul.mubr.f32.gmra.mrb[52].mxu0 %v8680_v48  ;;  %v6709_v48 = vpack.c.bf16 %v4158_v22, %v4157_v62 }
 0x3b3   :  { %6227 = vmatprep.mubr.f32.mxu0 %v8693_v33  ;;  %6696 = vmatpush3.bf16.msra.mxu0 %v6693_v61  ;;  %v4159_v33 = vld [vmem:[#allocation7 + $0x170] sm:$0xff]  ;;  %v4616_v61 = vld [vmem:[#allocation9 + $0x8] sm:$0xff] }
 0x3b4   :  { %6698 = vmatprep.subr.bf16.mxu0 %v6697_v27  ;;  %4685 = vmatprep.mubr.f32.mxu1 %v4616_v61 }
 0x3b6   :  { %6228 = vmatmul.mubr.f32.gmra.mrb[54].mxu0 %v8688_v56  ;;  %v6713_v56 = vpack.c.bf16 %v4160_v21, %v4159_v33 }
 0x3b7   :  { %6230 = vmatprep.mubr.f32.mxu0 %v8706_v41  ;;  %6700 = vmatpush3.bf16.msra.mxu0 %v6697_v27  ;;  %v4097_v41 = vld [vmem:[#allocation3 + $0xa] sm:$0xff] }
 0x3b8   :  { %6702 = vmatprep.subr.bf16.mxu0 %v6701_v16 }
 0x3ba   :  { %6231 = vmatmul.mubr.f32.gmra.mrb[56].mxu0 %v8701_v50  ;;  %v4096_v50 = vld [vmem:[#allocation3 + $0x2] sm:$0xff] }
 0x3bb   :  { %6233 = vmatprep.mubr.f32.mxu0 %v8720_v30  ;;  %6704 = vmatpush3.bf16.msra.mxu0 %v6701_v16  ;;  %v4099_v30 = vld [vmem:[#allocation3 + $0x1a] sm:$0xff] }
 0x3bc   :  { %6706 = vmatprep.subr.bf16.mxu0 %v6705_v10 }
 0x3be   :  { %6234 = vmatmul.mubr.f32.gmra.mrb[58].mxu0 %v8716_v39  ;;  %v4098_v39 = vld [vmem:[#allocation3 + $0x12] sm:$0xff] }
 0x3bf   :  { %6236 = vmatprep.mubr.f32.mxu0 %v8732_v26  ;;  %6708 = vmatpush3.bf16.msra.mxu0 %v6705_v10  ;;  %v4101_v26 = vld [vmem:[#allocation3 + $0x2a] sm:$0xff] }
 0x3c0   :  { %6710 = vmatprep.subr.bf16.mxu0 %v6709_v48 }
 0x3c2   :  { %6237 = vmatmul.mubr.f32.gmra.mrb[60].mxu0 %v8726_v15  ;;  %v4100_v15 = vld [vmem:[#allocation3 + $0x22] sm:$0xff] }
 0x3c3   :  { %6239 = vmatprep.mubr.f32.mxu0 %v8744_v2  ;;  %6712 = vmatpush3.bf16.msra.mxu0 %v6709_v48  ;;  %v4103_v2 = vld [vmem:[#allocation3 + $0x3a] sm:$0xff] }
 0x3c4   :  { %6714 = vmatprep.subr.bf16.mxu0 %v6713_v56 }
 0x3c6   :  { %6240 = vmatmul.mubr.f32.gmra.mrb[62].mxu0 %v8740_v20  ;;  %v4102_v20 = vld [vmem:[#allocation3 + $0x32] sm:$0xff] }
 0x3c7   :  { %6242 = vmatprep.mubr.f32.mxu0 %v8758_v45  ;;  %6716 = vmatpush3.bf16.msra.mxu0 %v6713_v56  ;;  %v4105_v45 = vld [vmem:[#allocation3 + $0x4a] sm:$0xff] }
 0x3ca   :  { %6243 = vmatmul.mubr.f32.gmra.mrb[64].mxu0 %v8754_v53  ;;  %v4104_v53 = vld [vmem:[#allocation3 + $0x42] sm:$0xff] }
 0x3cb   :  { %6245 = vmatprep.mubr.f32.mxu0 %v8770_v8  ;;  %v4107_v8 = vld [vmem:[#allocation3 + $0x5a] sm:$0xff] }
 0x3ce   :  { %6246 = vmatmul.mubr.f32.gmra.mrb[66].mxu0 %v8764_v35  ;;  %v4106_v35 = vld [vmem:[#allocation3 + $0x52] sm:$0xff] }
 0x3cf   :  { %6248 = vmatprep.mubr.f32.mxu0 %v8782_v37  ;;  %v4109_v37 = vld [vmem:[#allocation3 + $0x6a] sm:$0xff] }
 0x3d2   :  { %6249 = vmatmul.mubr.f32.gmra.mrb[68].mxu0 %v8778_v29  ;;  %v4108_v29 = vld [vmem:[#allocation3 + $0x62] sm:$0xff] }
 0x3d3   :  { %6251 = vmatprep.mubr.f32.mxu0 %v8796_v59  ;;  %v4111_v59 = vld [vmem:[#allocation3 + $0x7a] sm:$0xff] }
 0x3d6   :  { %6252 = vmatmul.mubr.f32.gmra.mrb[70].mxu0 %v8792_v7  ;;  %v4110_v7 = vld [vmem:[#allocation3 + $0x72] sm:$0xff] }
 0x3d7   :  { %6254 = vmatprep.mubr.f32.mxu0 %v8809_v32  ;;  %v4113_v32 = vld [vmem:[#allocation3 + $0x8a] sm:$0xff] }
 0x3da   :  { %6255 = vmatmul.mubr.f32.gmra.mrb[72].mxu0 %v8805_v60  ;;  %v4112_v60 = vld [vmem:[#allocation3 + $0x82] sm:$0xff] }
 0x3db   :  { %6257 = vmatprep.mubr.f32.mxu0 %v8819_v57  ;;  %v4115_v57 = vld [vmem:[#allocation3 + $0x9a] sm:$0xff] }
 0x3de   :  { %6258 = vmatmul.mubr.f32.gmra.mrb[74].mxu0 %v8815_v40  ;;  %v4114_v40 = vld [vmem:[#allocation3 + $0x92] sm:$0xff] }
 0x3df   :  { %6260 = vmatprep.mubr.f32.mxu0 %v8829_v55  ;;  %v4117_v55 = vld [vmem:[#allocation3 + $0xaa] sm:$0xff] }
 0x3e2   :  { %6261 = vmatmul.mubr.f32.gmra.mrb[76].mxu0 %v8825_v17  ;;  %v4116_v17 = vld [vmem:[#allocation3 + $0xa2] sm:$0xff] }
 0x3e3   :  { %6263 = vmatprep.mubr.f32.mxu0 %v8839_v36  ;;  %v4119_v36 = vld [vmem:[#allocation3 + $0xba] sm:$0xff] }
 0x3e6   :  { %6264 = vmatmul.mubr.f32.gmra.mrb[78].mxu0 %v8835_v34  ;;  %v4118_v34 = vld [vmem:[#allocation3 + $0xb2] sm:$0xff] }
 0x3e7   :  { %6266 = vmatprep.mubr.f32.mxu0 %v8847_v63  ;;  %v4121_v63 = vld [vmem:[#allocation3 + $0xca] sm:$0xff] }
 0x3ea   :  { %6267 = vmatmul.mubr.f32.gmra.mrb[80].mxu0 %v8844_v42  ;;  %v4120_v42 = vld [vmem:[#allocation3 + $0xc2] sm:$0xff] }
 0x3eb   :  { %6269 = vmatprep.mubr.f32.mxu0 %v8855_v24  ;;  %v4123_v24 = vld [vmem:[#allocation3 + $0xda] sm:$0xff] }
 0x3ee   :  { %6270 = vmatmul.mubr.f32.gmra.mrb[82].mxu0 %v8852_v6  ;;  %v4122_v6 = vld [vmem:[#allocation3 + $0xd2] sm:$0xff] }
 0x3ef   :  { %6272 = vmatprep.mubr.f32.mxu0 %v8863_v4  ;;  %v4125_v4 = vld [vmem:[#allocation3 + $0xea] sm:$0xff] }
 0x3f2   :  { %6273 = vmatmul.mubr.f32.gmra.mrb[84].mxu0 %v8860_v23  ;;  %v4124_v23 = vld [vmem:[#allocation3 + $0xe2] sm:$0xff] }
 0x3f3   :  { %6275 = vmatprep.mubr.f32.mxu0 %v8871_v1  ;;  %v4127_v1 = vld [vmem:[#allocation3 + $0xfa] sm:$0xff] }
 0x3f6   :  { %6276 = vmatmul.mubr.f32.gmra.mrb[86].mxu0 %v8868_v5  ;;  %v4126_v5 = vld [vmem:[#allocation3 + $0xf2] sm:$0xff] }
 0x3f7   :  { %6278 = vmatprep.mubr.f32.mxu0 %v8879_v18  ;;  %v4129_v18 = vld [vmem:[#allocation3 + $0x10a] sm:$0xff] }
 0x3fa   :  { %6279 = vmatmul.mubr.f32.gmra.mrb[88].mxu0 %v8876_v47  ;;  %v4128_v47 = vld [vmem:[#allocation3 + $0x102] sm:$0xff] }
 0x3fb   :  { %6281 = vmatprep.mubr.f32.mxu0 %v8887_v31  ;;  %v4131_v31 = vld [vmem:[#allocation3 + $0x11a] sm:$0xff] }
 0x3fe   :  { %6282 = vmatmul.mubr.f32.gmra.mrb[90].mxu0 %v8884_v52  ;;  %v4130_v52 = vld [vmem:[#allocation3 + $0x112] sm:$0xff] }
 0x3ff   :  { %6284 = vmatprep.mubr.f32.mxu0 %v8895_v54  ;;  %v4133_v54 = vld [vmem:[#allocation3 + $0x12a] sm:$0xff] }
 0x402   :  { %6285 = vmatmul.mubr.f32.gmra.mrb[92].mxu0 %v8892_v46  ;;  %v4132_v46 = vld [vmem:[#allocation3 + $0x122] sm:$0xff] }
 0x403   :  { %6287 = vmatprep.mubr.f32.mxu0 %v8902_v19  ;;  %v4135_v19 = vld [vmem:[#allocation3 + $0x13a] sm:$0xff] }
 0x406   :  { %6288 = vmatmul.mubr.f32.gmra.mrb[94].mxu0 %v8900_v14  ;;  %v4134_v14 = vld [vmem:[#allocation3 + $0x132] sm:$0xff] }
 0x407   :  { %6322 = vmatprep.mubr.f32.mxu0 %v4096_v50 }
 0x40a   :  { %6323 = vmatmul.mubr.f32.vlgmr.msra.gmra.mrb[48].mxu0 %v4097_v41 }
 0x40b   :  { %6325 = vmatprep.mubr.f32.mxu0 %v4098_v39 }
 0x40e   :  { %6326 = vmatmul.mubr.f32.gmra.mrb[50].mxu0 %v4099_v30 }
 0x40f   :  { %6328 = vmatprep.mubr.f32.mxu0 %v4100_v15 }
 0x412   :  { %6329 = vmatmul.mubr.f32.gmra.mrb[52].mxu0 %v4101_v26 }
 0x413   :  { %6331 = vmatprep.mubr.f32.mxu0 %v4102_v20 }
 0x416   :  { %6332 = vmatmul.mubr.f32.gmra.mrb[54].mxu0 %v4103_v2 }
 0x417   :  { %6334 = vmatprep.mubr.f32.mxu0 %v4104_v53 }
 0x41a   :  { %6335 = vmatmul.mubr.f32.gmra.mrb[56].mxu0 %v4105_v45 }
 0x41b   :  { %6337 = vmatprep.mubr.f32.mxu0 %v4106_v35 }
 0x41e   :  { %6338 = vmatmul.mubr.f32.gmra.mrb[58].mxu0 %v4107_v8 }
 0x41f   :  { %6340 = vmatprep.mubr.f32.mxu0 %v4108_v29 }
 0x422   :  { %6341 = vmatmul.mubr.f32.gmra.mrb[60].mxu0 %v4109_v37 }
 0x423   :  { %6343 = vmatprep.mubr.f32.mxu0 %v4110_v7 }
 0x426   :  { %6344 = vmatmul.mubr.f32.gmra.mrb[62].mxu0 %v4111_v59 }
 0x427   :  { %6346 = vmatprep.mubr.f32.mxu0 %v4112_v60 }
 0x42a   :  { %6347 = vmatmul.mubr.f32.gmra.mrb[64].mxu0 %v4113_v32 }
 0x42b   :  { %6349 = vmatprep.mubr.f32.mxu0 %v4114_v40 }
 0x42e   :  { %6350 = vmatmul.mubr.f32.gmra.mrb[66].mxu0 %v4115_v57 }
 0x42f   :  { %6352 = vmatprep.mubr.f32.mxu0 %v4116_v17 }
 0x432   :  { %6353 = vmatmul.mubr.f32.gmra.mrb[68].mxu0 %v4117_v55 }
 0x433   :  { %6355 = vmatprep.mubr.f32.mxu0 %v4118_v34 }
 0x436   :  { %6356 = vmatmul.mubr.f32.gmra.mrb[70].mxu0 %v4119_v36 }
 0x437   :  { %6358 = vmatprep.mubr.f32.mxu0 %v4120_v42 }
 0x43a   :  { %6359 = vmatmul.mubr.f32.gmra.mrb[72].mxu0 %v4121_v63 }
 0x43b   :  { %6361 = vmatprep.mubr.f32.mxu0 %v4122_v6 }
 0x43e   :  { %6362 = vmatmul.mubr.f32.gmra.mrb[74].mxu0 %v4123_v24 }
 0x43f   :  { %6364 = vmatprep.mubr.f32.mxu0 %v4124_v23 }
 0x442   :  { %6365 = vmatmul.mubr.f32.gmra.mrb[76].mxu0 %v4125_v4 }
 0x443   :  { %6367 = vmatprep.mubr.f32.mxu0 %v4126_v5 }
 0x446   :  { %6368 = vmatmul.mubr.f32.gmra.mrb[78].mxu0 %v4127_v1 }
 0x447   :  { %6370 = vmatprep.mubr.f32.mxu0 %v4128_v47 }
 0x44a   :  { %6371 = vmatmul.mubr.f32.gmra.mrb[80].mxu0 %v4129_v18 }
 0x44b   :  { %6373 = vmatprep.mubr.f32.mxu0 %v4130_v52 }
 0x44e   :  { %6374 = vmatmul.mubr.f32.gmra.mrb[82].mxu0 %v4131_v31 }
 0x44f   :  { %6376 = vmatprep.mubr.f32.mxu0 %v4132_v46 }
 0x452   :  { %6377 = vmatmul.mubr.f32.gmra.mrb[84].mxu0 %v4133_v54 }
 0x453   :  { %6379 = vmatprep.mubr.f32.mxu0 %v4134_v14 }
 0x456   :  { %6380 = vmatmul.mubr.f32.gmra.mrb[86].mxu0 %v4135_v19 }
 0x457   :  { %6382 = vmatprep.mubr.f32.mxu0 %v4136_v28 }
 0x45a   :  { %6383 = vmatmul.mubr.f32.gmra.mrb[88].mxu0 %v4137_v49 }
 0x45b   :  { %6385 = vmatprep.mubr.f32.mxu0 %v4138_v51 }
 0x45e   :  { %6386 = vmatmul.mubr.f32.gmra.mrb[90].mxu0 %v4139_v38 }
 0x45f   :  { %6388 = vmatprep.mubr.f32.mxu0 %v4140_v0 }
 0x462   :  { %6389 = vmatmul.mubr.f32.gmra.mrb[92].mxu0 %v4141_v9 }
 0x463   :  { %6391 = vmatprep.mubr.f32.mxu0 %v4142_v11 }
 0x466   :  { %6392 = vmatmul.mubr.f32.gmra.mrb[94].mxu0 %v4143_v58 }
 0x4dd   :  { %v6324_v25 = vpop.f32.mrb[48].mxu0 }
 0x4de   :  { %v4520_v27 = vadd.f32 %v6324_v25, %v8958_v44  ;;  %v4227_v3 = vpop.f32.mrb[49].mxu0 }
 0x4df   :  { %v4519_v43 = vadd.f32 %v8958_v44, %v4227_v3 }
 0x4e0   :  { %v4568_v16 = vmax.f32 %v4520_v27, 0.0 }
 0x4e1   :  { %v4567_v13 = vmax.f32 %v4519_v43, 0.0  ;;  %v6327_v12 = vpop.f32.mrb[50].mxu0 }
 0x4e2   :  { %v4522_v10 = vadd.f32 %v6327_v12, %v8958_v44  ;;  %v4237_v62 = vpop.f32.mrb[51].mxu0 }
 0x4e3   :  { %v8963_v22 = vpack.c.bf16 %v4568_v16, %v4567_v13  ;;  %v4521_v48 = vadd.f32 %v8958_v44, %v4237_v62 }
 0x4e4   :  { %v4570_v33 = vmax.f32 %v4522_v10, 0.0 }
 0x4e5   :  { %v4569_v21 = vmax.f32 %v4521_v48, 0.0  ;;  %v6330_v56 = vpop.f32.mrb[52].mxu0 }
 0x4e6   :  { %v4524_v50 = vadd.f32 %v6330_v56, %v8958_v44  ;;  %v4247_v41 = vpop.f32.mrb[53].mxu0 }
 0x4e7   :  { %v8967_v39 = vpack.c.bf16 %v4570_v33, %v4569_v21  ;;  %v4523_v30 = vadd.f32 %v8958_v44, %v4247_v41 }
 0x4e8   :  { %v4572_v15 = vmax.f32 %v4524_v50, 0.0 }
 0x4e9   :  { %v4571_v26 = vmax.f32 %v4523_v30, 0.0  ;;  %v6333_v20 = vpop.f32.mrb[54].mxu0 }
 0x4ea   :  { %v4526_v2 = vadd.f32 %v6333_v20, %v8958_v44  ;;  %v4257_v53 = vpop.f32.mrb[55].mxu0 }
 0x4eb   :  { %v8971_v45 = vpack.c.bf16 %v4572_v15, %v4571_v26  ;;  %v4525_v35 = vadd.f32 %v8958_v44, %v4257_v53 }
 0x4ec   :  { %v4574_v8 = vmax.f32 %v4526_v2, 0.0 }
 0x4ed   :  { %v4573_v29 = vmax.f32 %v4525_v35, 0.0  ;;  %v6336_v37 = vpop.f32.mrb[56].mxu0 }
 0x4ee   :  { %v4528_v7 = vadd.f32 %v6336_v37, %v8958_v44  ;;  %v4267_v59 = vpop.f32.mrb[57].mxu0 }
 0x4ef   :  { %v8975_v60 = vpack.c.bf16 %v4574_v8, %v4573_v29  ;;  %v4527_v32 = vadd.f32 %v8958_v44, %v4267_v59 }
 0x4f0   :  { %v4576_v40 = vmax.f32 %v4528_v7, 0.0 }
 0x4f1   :  { %v4575_v57 = vmax.f32 %v4527_v32, 0.0  ;;  %v6339_v17 = vpop.f32.mrb[58].mxu0 }
 0x4f2   :  { %v4530_v55 = vadd.f32 %v6339_v17, %v8958_v44  ;;  %v4277_v34 = vpop.f32.mrb[59].mxu0 }
 0x4f3   :  { %v8979_v36 = vpack.c.bf16 %v4576_v40, %v4575_v57  ;;  %v4529_v42 = vadd.f32 %v8958_v44, %v4277_v34 }
 0x4f4   :  { %v4578_v63 = vmax.f32 %v4530_v55, 0.0 }
 0x4f5   :  { %v4577_v6 = vmax.f32 %v4529_v42, 0.0  ;;  %v6342_v24 = vpop.f32.mrb[60].mxu0 }
 0x4f6   :  { %v4532_v23 = vadd.f32 %v6342_v24, %v8958_v44  ;;  %v4287_v4 = vpop.f32.mrb[61].mxu0 }
 0x4f7   :  { %v8983_v5 = vpack.c.bf16 %v4578_v63, %v4577_v6  ;;  %v4531_v1 = vadd.f32 %v8958_v44, %v4287_v4 }
 0x4f8   :  { %v4580_v47 = vmax.f32 %v4532_v23, 0.0 }
 0x4f9   :  { %v4579_v18 = vmax.f32 %v4531_v1, 0.0  ;;  %v6345_v52 = vpop.f32.mrb[62].mxu0 }
 0x4fa   :  { %v4534_v31 = vadd.f32 %v6345_v52, %v8958_v44  ;;  %v4297_v46 = vpop.f32.mrb[63].mxu0 }
 0x4fb   :  { %v8987_v54 = vpack.c.bf16 %v4580_v47, %v4579_v18  ;;  %v4533_v14 = vadd.f32 %v8958_v44, %v4297_v46 }
 0x4fc   :  { %v4582_v19 = vmax.f32 %v4534_v31, 0.0 }
 0x4fd   :  { %v4581_v28 = vmax.f32 %v4533_v14, 0.0  ;;  %v6348_v49 = vpop.f32.mrb[64].mxu0 }
 0x4fe   :  { %v4536_v51 = vadd.f32 %v6348_v49, %v8958_v44  ;;  %v4307_v38 = vpop.f32.mrb[65].mxu0 }
 0x4ff   :  { %v8991_v0 = vpack.c.bf16 %v4582_v19, %v4581_v28  ;;  %v4535_v9 = vadd.f32 %v8958_v44, %v4307_v38 }
 0x500   :  { %v4584_v11 = vmax.f32 %v4536_v51, 0.0 }
 0x501   :  { %v4583_v58 = vmax.f32 %v4535_v9, 0.0  ;;  %v6351_v61 = vpop.f32.mrb[66].mxu0 }
 0x502   :  { %v4538_v25 = vadd.f32 %v6351_v61, %v8958_v44  ;;  %v4317_v27 = vpop.f32.mrb[67].mxu0 }
 0x503   :  { %v6717_v3 = vpack.c.bf16 %v4584_v11, %v4583_v58  ;;  %v4537_v43 = vadd.f32 %v8958_v44, %v4317_v27  ;;  %v4615_v11 = vld [vmem:[#allocation9] sm:$0xff] }
 0x504   :  { %v4586_v16 = vmax.f32 %v4538_v25, 0.0  ;;  %v4619_v25 = vld [vmem:[#allocation9 + $0x20] sm:$0xff] }
 0x505   :  { %v4585_v13 = vmax.f32 %v4537_v43, 0.0  ;;  %v6354_v12 = vpop.f32.mrb[68].mxu0  ;;  %6718 = vmatprep.subr.bf16.mxu1 %v6717_v3 }
 0x506   :  { %v4540_v10 = vadd.f32 %v6354_v12, %v8958_v44  ;;  %v4327_v62 = vpop.f32.mrb[69].mxu0  ;;  %6720 = vmatpush3.bf16.msra.mxu1 %v8963_v22 }
 0x507   :  { %v6721_v48 = vpack.c.bf16 %v4586_v16, %v4585_v13  ;;  %v4539_v33 = vadd.f32 %v8958_v44, %v4327_v62  ;;  %v4618_v13 = vld [vmem:[#allocation9 + $0x18] sm:$0xff] }
 0x508   :  { %v4588_v21 = vmax.f32 %v4540_v10, 0.0 }
 0x509   :  { %v4587_v56 = vmax.f32 %v4539_v33, 0.0  ;;  %v6357_v50 = vpop.f32.mrb[70].mxu0  ;;  %6722 = vmatprep.subr.bf16.mxu1 %v6721_v48 }
 0x50a   :  { %v4542_v41 = vadd.f32 %v6357_v50, %v8958_v44  ;;  %v4337_v30 = vpop.f32.mrb[71].mxu0  ;;  %6724 = vmatpush3.bf16.msra.mxu1 %v8967_v39 }
 0x50b   :  { %v6725_v15 = vpack.c.bf16 %v4588_v21, %v4587_v56  ;;  %v4541_v26 = vadd.f32 %v8958_v44, %v4337_v30 }
 0x50c   :  { %v4590_v20 = vmax.f32 %v4542_v41, 0.0 }
 0x50d   :  { %v4589_v2 = vmax.f32 %v4541_v26, 0.0  ;;  %v6360_v53 = vpop.f32.mrb[72].mxu0  ;;  %6726 = vmatprep.subr.bf16.mxu1 %v6725_v15 }
 0x50e   :  { %v4544_v22 = vadd.f32 %v6360_v53, %v8958_v44  ;;  %v4347_v35 = vpop.f32.mrb[73].mxu0  ;;  %6728 = vmatpush3.bf16.msra.mxu1 %v8971_v45 }
 0x50f   :  { %v6729_v8 = vpack.c.bf16 %v4590_v20, %v4589_v2  ;;  %v4543_v29 = vadd.f32 %v8958_v44, %v4347_v35 }
 0x510   :  { %v4592_v37 = vmax.f32 %v4544_v22, 0.0 }
 0x511   :  { %v4591_v7 = vmax.f32 %v4543_v29, 0.0  ;;  %v6363_v59 = vpop.f32.mrb[74].mxu0  ;;  %6730 = vmatprep.subr.bf16.mxu1 %v6729_v8 }
 0x512   :  { %v4546_v39 = vadd.f32 %v6363_v59, %v8958_v44  ;;  %v4357_v32 = vpop.f32.mrb[75].mxu0  ;;  %6732 = vmatpush3.bf16.msra.mxu1 %v8975_v60 }
 0x513   :  { %v6733_v40 = vpack.c.bf16 %v4592_v37, %v4591_v7  ;;  %v4545_v57 = vadd.f32 %v8958_v44, %v4357_v32 }
 0x514   :  { %v4594_v17 = vmax.f32 %v4546_v39, 0.0 }
 0x515   :  { %v4593_v55 = vmax.f32 %v4545_v57, 0.0  ;;  %v6366_v34 = vpop.f32.mrb[76].mxu0  ;;  %6734 = vmatprep.subr.bf16.mxu1 %v6733_v40 }
 0x516   :  { %v4548_v45 = vadd.f32 %v6366_v34, %v8958_v44  ;;  %v4367_v42 = vpop.f32.mrb[77].mxu0  ;;  %6736 = vmatpush3.bf16.msra.mxu1 %v8979_v36 }
 0x517   :  { %v6737_v63 = vpack.c.bf16 %v4594_v17, %v4593_v55  ;;  %v4547_v6 = vadd.f32 %v8958_v44, %v4367_v42 }
 0x518   :  { %v4596_v24 = vmax.f32 %v4548_v45, 0.0 }
 0x519   :  { %v4595_v23 = vmax.f32 %v4547_v6, 0.0  ;;  %v6369_v4 = vpop.f32.mrb[78].mxu0  ;;  %6738 = vmatprep.subr.bf16.mxu1 %v6737_v63 }
 0x51a   :  { %v4550_v60 = vadd.f32 %v6369_v4, %v8958_v44  ;;  %v4377_v1 = vpop.f32.mrb[79].mxu0  ;;  %6740 = vmatpush3.bf16.msra.mxu1 %v8983_v5 }
 0x51b   :  { %v6741_v47 = vpack.c.bf16 %v4596_v24, %v4595_v23  ;;  %v4549_v18 = vadd.f32 %v8958_v44, %v4377_v1 }
 0x51c   :  { %v4598_v52 = vmax.f32 %v4550_v60, 0.0 }
 0x51d   :  { %v4597_v31 = vmax.f32 %v4549_v18, 0.0  ;;  %v6372_v46 = vpop.f32.mrb[80].mxu0  ;;  %6742 = vmatprep.subr.bf16.mxu1 %v6741_v47 }
 0x51e   :  { %v4552_v36 = vadd.f32 %v6372_v46, %v8958_v44  ;;  %v4387_v14 = vpop.f32.mrb[81].mxu0  ;;  %6744 = vmatpush3.bf16.msra.mxu1 %v8987_v54 }
 0x51f   :  { %v6745_v19 = vpack.c.bf16 %v4598_v52, %v4597_v31  ;;  %v4551_v28 = vadd.f32 %v8958_v44, %v4387_v14  ;;  %v4620_v52 = vld [vmem:[#allocation9 + $0x28] sm:$0xff] }
 0x520   :  { %v4600_v49 = vmax.f32 %v4552_v36, 0.0 }
 0x521   :  { %v4599_v51 = vmax.f32 %v4551_v28, 0.0  ;;  %v6375_v38 = vpop.f32.mrb[82].mxu0  ;;  %6746 = vmatprep.subr.bf16.mxu1 %v6745_v19 }
 0x522   :  { %v4554_v5 = vadd.f32 %v6375_v38, %v8958_v44  ;;  %v4397_v9 = vpop.f32.mrb[83].mxu0  ;;  %6748 = vmatpush3.bf16.msra.mxu1 %v8991_v0  ;;  %v4617_v0 = vld [vmem:[#allocation9 + $0x10] sm:$0xff] }
 0x523   :  { %v6749_v58 = vpack.c.bf16 %v4600_v49, %v4599_v51  ;;  %v4553_v61 = vadd.f32 %v8958_v44, %v4397_v9 }
 0x524   :  { %v4602_v27 = vmax.f32 %v4554_v5, 0.0 }
 0x525   :  { %v4601_v3 = vmax.f32 %v4553_v61, 0.0  ;;  %v6378_v54 = vpop.f32.mrb[84].mxu0  ;;  %6750 = vmatprep.subr.bf16.mxu1 %v6749_v58  ;;  %4686 = vmatmul.mubr.f32.vlgmr.msra.gmra.mrb[96].mxu1 %v4615_v11 }
 0x526   :  { %v4556_v43 = vadd.f32 %v6378_v54, %v8958_v44  ;;  %v4407_v16 = vpop.f32.mrb[85].mxu0  ;;  %6752 = vmatpush3.bf16.msra.mxu1 %v6749_v58  ;;  %4690 = vmatprep.mubr.f32.mxu1 %v4619_v25 }
 0x527   :  { %v6753_v12 = vpack.c.bf16 %v4602_v27, %v4601_v3  ;;  %v4555_v10 = vadd.f32 %v8958_v44, %v4407_v16 }
 0x528   :  { %v4604_v62 = vmax.f32 %v4556_v43, 0.0 }
 0x529   :  { %v4603_v48 = vmax.f32 %v4555_v10, 0.0  ;;  %v6381_v33 = vpop.f32.mrb[86].mxu0  ;;  %6754 = vmatprep.subr.bf16.mxu1 %v6753_v12  ;;  %4691 = vmatmul.mubr.f32.gmra.mrb[98].mxu1 %v4618_v13 }
 0x52a   :  { %v4558_v21 = vadd.f32 %v6381_v33, %v8958_v44  ;;  %v4417_v56 = vpop.f32.mrb[87].mxu0  ;;  %6756 = vmatpush3.bf16.msra.mxu1 %v6753_v12  ;;  %6426 = vmatprep.mubr.f32.mxu1 %v4617_v0 }
 0x52b   :  { %v6757_v50 = vpack.c.bf16 %v4604_v62, %v4603_v48  ;;  %v4557_v41 = vadd.f32 %v8958_v44, %v4417_v56 }
 0x52c   :  { %v4606_v30 = vmax.f32 %v4558_v21, 0.0 }
 0x52d   :  { %v4605_v15 = vmax.f32 %v4557_v41, 0.0  ;;  %v6384_v26 = vpop.f32.mrb[88].mxu0  ;;  %6758 = vmatprep.subr.bf16.mxu1 %v6757_v50 }
 0x52e   :  { %v4560_v20 = vadd.f32 %v6384_v26, %v8958_v44  ;;  %v4427_v2 = vpop.f32.mrb[89].mxu0  ;;  %6760 = vmatpush3.bf16.msra.mxu1 %v6757_v50 }
 0x52f   :  { %v6761_v53 = vpack.c.bf16 %v4606_v30, %v4605_v15  ;;  %v4559_v22 = vadd.f32 %v8958_v44, %v4427_v2 }
 0x530   :  { %v4608_v35 = vmax.f32 %v4560_v20, 0.0 }
 0x531   :  { %v4607_v8 = vmax.f32 %v4559_v22, 0.0  ;;  %v6387_v29 = vpop.f32.mrb[90].mxu0  ;;  %6762 = vmatprep.subr.bf16.mxu1 %v6761_v53 }
 0x532   :  { %v4562_v37 = vadd.f32 %v6387_v29, %v8958_v44  ;;  %v4437_v7 = vpop.f32.mrb[91].mxu0  ;;  %6764 = vmatpush3.bf16.msra.mxu1 %v6761_v53 }
 0x533   :  { %v6765_v59 = vpack.c.bf16 %v4608_v35, %v4607_v8  ;;  %v4561_v39 = vadd.f32 %v8958_v44, %v4437_v7 }
 0x534   :  { %v4610_v32 = vmax.f32 %v4562_v37, 0.0 }
 0x535   :  { %v4609_v40 = vmax.f32 %v4561_v39, 0.0  ;;  %v6390_v57 = vpop.f32.mrb[92].mxu0  ;;  %6766 = vmatprep.subr.bf16.mxu1 %v6765_v59 }
 0x536   :  { %v4564_v17 = vadd.f32 %v6390_v57, %v8958_v44  ;;  %v4447_v55 = vpop.f32.mrb[93].mxu0  ;;  %6768 = vmatpush3.bf16.msra.mxu1 %v6765_v59 }
 0x537   :  { %v6769_v34 = vpack.c.bf16 %v4610_v32, %v4609_v40  ;;  %v4563_v45 = vadd.f32 %v8958_v44, %v4447_v55 }
 0x538   :  { %v4612_v42 = vmax.f32 %v4564_v17, 0.0 }
 0x539   :  { %v4611_v63 = vmax.f32 %v4563_v45, 0.0  ;;  %v6393_v6 = vpop.f32.mrb[94].mxu0  ;;  %6770 = vmatprep.subr.bf16.mxu1 %v6769_v34 }
 0x53a   :  { %v4566_v24 = vadd.f32 %v6393_v6, %v8958_v44  ;;  %v4457_v23 = vpop.f32.mrb[95].mxu0  ;;  %6772 = vmatpush3.bf16.msra.mxu1 %v6769_v34 }
 0x53b   :  { %v6773_v4 = vpack.c.bf16 %v4612_v42, %v4611_v63  ;;  %v4565_v60 = vadd.f32 %v8958_v44, %v4457_v23 }
 0x53c   :  { %v4614_v1 = vmax.f32 %v4566_v24, 0.0 }
 0x53d   :  { %v4613_v47 = vmax.f32 %v4565_v60, 0.0  ;;  %6774 = vmatprep.subr.bf16.mxu1 %v6773_v4 }
 0x53e   :  { %6776 = vmatpush3.bf16.msra.mxu1 %v6773_v4 }
 0x53f   :  { %v6777_v18 = vpack.c.bf16 %v4614_v1, %v4613_v47 }
 0x541   :  { %6778 = vmatprep.subr.bf16.mxu1 %v6777_v18 }
 0x542   :  { %6780 = vmatpush3.bf16.msra.mxu1 %v6777_v18 }
 0x545   :  { %6427 = vmatmul.mubr.f32.vlgmr.msra.gmra.mrb[100].mxu1 %v4620_v52 }
 0x5f8   :  { %v5434_v31 = vpop.f32.mrb[96].mxu1 }
 0x5f9   :  { %v5435_v46 = vpop.f32.mrb[97].mxu1 }
 0x5fa   :  { %v5436_v36 = vadd.f32 %v5435_v46, %v5434_v31 }
 0x5fc   :  { %v5437_v14 = vpop.f32.mrb[98].mxu1 }
 0x5fd   :  { %v5438_v19 = vpop.f32.mrb[99].mxu1 }
 0x5fe   :  { %v5439_v28 = vadd.f32 %v5438_v19, %v5437_v14 }
 0x618   :  { %v6428_v49 = vpop.f32.mrb[100].mxu1 }
 0x619   :  { %v4768_v51 = vadd.f32 %v6428_v49, %v5439_v28  ;;  %v4762_v44 = vpop.f32.mrb[101].mxu1 }
 0x61a   :  { %v4763_v38 = vadd.f32 %v5436_v36, %v4762_v44 }
 0x61b   :  { %4772 = vst [vmem:[#allocation10 + $0x8] sm:$0xff] %v4768_v51 }
 0x61c   :  { %4771 = vst [vmem:[#allocation10] sm:$0xff] %v4763_v38 }
 0x61d   :  { %7158 = shalt.err (!%p7155_p0)
}
 0x61e   :  { %s7159_s25 = scalar_lea.hbm %s9055_s8, 256 }
 0x61f   :  { %p7160_p1 = scmp.ne.s32.totalorder %s9055_s8, %s7159_s25  ;;  %p7163_p2 = scmp.lt.u32.totalorder %s7159_s25, %s9055_s8 }
 0x621   :  { %p7165_p3 = pnand %p7163_p2, %p7160_p1 }
 0x623   :  { %7168 = shalt.err (!%p7165_p3)
}
 0x624   :  { %4784 = dma.vmem_to_hbm [thread:$0]  %s4779_s6, 256, %s9055_s8, [#allocation6], %s7177_s17, %s7177_s17, %s7178_s18  }
 0x625   :  { %7173 = dma.done.wait [#allocation6], 256  }
 0x626   :  { %7174 = vsyncadd [#allocation6], 4294967040 }
 0x627   :  { %4788 = vsyncpa [#allocation5], 1 }
 0x628   :  { %4789 = vsyncpa [#allocation8], 1 }
 0x629   :  { %4790 = vsyncpa [#allocation6], 1 }

</bundles_post_ra>
